<compile_context>
chip_gen: v5e
topology: v5e:2x2
jax: 0.10.0
libtpu: 0.0.40
codegen_flags: <defaults>
</compile_context>

<pallas_src>
import functools

import numpy as np
import jax
import jax.numpy as jnp
from jax.experimental import pallas as pl
from jax.experimental.pallas import tpu as pltpu

# ---- config (matches PyTorch defaults) -------------------------------------
INPUT_EMB_WIDTH = 3
OUTPUT_EMB_WIDTH = 16
DOWN_T = 3
STRIDE_T = 2
WIDTH = 16
DEPTH = 3
DILATION_GROWTH_RATE = 3

LANE_PACK = 8          # batch elements packed on the lane axis (8*16 = 128)
_OFF = 16              # aligned left margin in the padded scratch (>= max pad 9)


# ---- fused encoder kernel (one batch group per grid step) --------------------
def _encoder_kernel(x_ref, w_in_ref, b_in_ref, w_dn_ref, b_dn_ref,
                    w_r1_ref, b_r1_ref, w_r2_ref, b_r2_ref,
                    w_out_ref, b_out_ref, sel0_ref, sel1_ref, sel2_ref,
                    o_ref, buf,
                    *, T0, down_t, depth, dils):
    TB, C = buf.shape
    sels = (sel0_ref, sel1_ref, sel2_ref)

    def pad_store(h, t):
        # In-kernel zero padding: clear the scratch, place h at rows
        # [_OFF, _OFF + t) (sublane-aligned store); both margins are zeros.
        buf[...] = jnp.zeros((TB, C), jnp.float32)
        buf[pl.ds(_OFF, t), :] = h

    def conv_taps(t_out, pad, dil, taps_w, bias):
        # Stride-1 dilated conv over the zero-padded scratch: one lane-dense
        # matmul per tap (block-diagonal weights keep batch groups separate).
        acc = jnp.dot(buf[pl.ds(_OFF - pad, t_out), :], taps_w[0],
                      preferred_element_type=jnp.float32)
        for k in range(1, len(taps_w)):
            xs = buf[pl.ds(_OFF - pad + k * dil, t_out), :]
            acc = acc + jnp.dot(xs, taps_w[k], preferred_element_type=jnp.float32)
        return acc + bias

    x = x_ref[0]                              # (T0, lane_pack*WIDTH)

    # ---- Conv1d(in, width, 3, 1, 1) + ReLU ----
    pad_store(x, T0)
    h = conv_taps(T0, 1, 1, [w_in_ref[k] for k in range(3)], b_in_ref[...])
    h = jnp.maximum(h, 0.0)

    t = T0
    for i in range(down_t):
        # ---- Conv1d(width, width, 4, 2, 1): stride-1 conv + even-row select ----
        pad_store(h, t)
        z = conv_taps(t - 1, 1, 1,
                      [w_dn_ref[i * 4 + k] for k in range(4)], b_dn_ref[i])
        t = t // 2
        # out[r] = z[2r]; sel is a constant 0/1 matrix -> exact selection.
        h = jnp.dot(sels[i][...], z, preferred_element_type=jnp.float32)

        # ---- Resnet1D: depth x ResConv1DBlock, dilations [9, 3, 1] ----
        for j in range(depth):
            d = dils[j]
            base = i * depth + j
            xr = jnp.maximum(h, 0.0)                        # activation1 (once)
            pad_store(xr, t)
            u = conv_taps(t, d, d,
                          [w_r1_ref[base * 3 + k] for k in range(3)],
                          b_r1_ref[base])
            u = jnp.maximum(u, 0.0)                         # activation2
            u = jnp.dot(u, w_r2_ref[base],
                        preferred_element_type=jnp.float32) + b_r2_ref[base]
            h = h + u                                       # residual

    # ---- Conv1d(width, output_emb_width, 3, 1, 1) ----
    pad_store(h, t)
    h = conv_taps(t, 1, 1, [w_out_ref[k] for k in range(3)], b_out_ref[...])
    o_ref[0] = h.astype(o_ref.dtype)


# ---- deterministic parameter init (torch Conv1d default: U(-1/sqrt(fan_in), .)) --
def _init_conv(key, c_in, c_out, k):
    fan_in = c_in * k
    bound = 1.0 / (fan_in ** 0.5)
    kw, kb = jax.random.split(key)
    w = jax.random.uniform(kw, (k, c_in, c_out), jnp.float32, -bound, bound)
    b = jax.random.uniform(kb, (c_out,), jnp.float32, -bound, bound)
    return w, b


def init_encoder_params(key):
    keys = iter(jax.random.split(key, 64))
    params = {"conv_in": _init_conv(next(keys), INPUT_EMB_WIDTH, WIDTH, 3),
              "downs": []}
    filter_t = STRIDE_T * 2
    for _ in range(DOWN_T):
        down = {"conv": _init_conv(next(keys), WIDTH, WIDTH, filter_t), "res": []}
        for _ in range(DEPTH):
            down["res"].append({
                "conv1": _init_conv(next(keys), WIDTH, WIDTH, 3),
                "conv2": _init_conv(next(keys), WIDTH, WIDTH, 1),
            })
        params["downs"].append(down)
    params["conv_out"] = _init_conv(next(keys), WIDTH, OUTPUT_EMB_WIDTH, 3)
    return params


def _block_diag(w, bb):
    """(K, C_in, C_out) -> (K, bb*C_in, bb*C_out) block-diagonal (exact)."""
    k, ci, co = w.shape
    eye = jnp.eye(bb, dtype=w.dtype)
    return jnp.einsum('gh,kio->kgiho', eye, w).reshape(k, bb * ci, bb * co)


def pack_encoder_params(params, lane_pack=LANE_PACK):
    """Pack nested params into the flat lane-packed arrays the kernel indexes."""
    def bd(w):
        return _block_diag(w, lane_pack)

    def bt1(b):                       # (C,) -> (1, lane_pack*C)
        return jnp.tile(b, lane_pack)[None, :]

    def bt2(b):                       # (N, C) -> (N, 1, lane_pack*C)
        return jnp.tile(b, (1, lane_pack))[:, None, :]

    w_in, b_in = params["conv_in"]
    # zero-pad input channels 3 -> WIDTH so the in-kernel lane layout is uniform
    w_in = jnp.pad(w_in, ((0, 0), (0, WIDTH - w_in.shape[1]), (0, 0)))
    w_dn = jnp.concatenate([d["conv"][0] for d in params["downs"]], axis=0)
    b_dn = jnp.stack([d["conv"][1] for d in params["downs"]])
    res = [r for d in params["downs"] for r in d["res"]]
    w_r1 = jnp.concatenate([r["conv1"][0] for r in res], axis=0)
    b_r1 = jnp.stack([r["conv1"][1] for r in res])
    w_r2 = jnp.concatenate([r["conv2"][0] for r in res], axis=0)
    b_r2 = jnp.stack([r["conv2"][1] for r in res])
    w_out, b_out = params["conv_out"]
    return dict(w_in=bd(w_in), b_in=bt1(b_in),
                w_dn=bd(w_dn), b_dn=bt2(b_dn),
                w_r1=bd(w_r1), b_r1=bt2(b_r1),
                w_r2=bd(w_r2), b_r2=bt2(b_r2),
                w_out=bd(w_out), b_out=bt1(b_out))


def _even_select(t_out, t_in):
    """Constant (t_out, t_in) matrix with m[r, 2r] = 1 (stride-2 row selection)."""
    m = np.zeros((t_out, t_in), np.float32)
    m[np.arange(t_out), 2 * np.arange(t_out)] = 1.0
    return jnp.asarray(m)


# ---- forward (single fused pallas_call) --------------------------------------
def encoder_forward(packed, x_nct):
    assert STRIDE_T == 2 and DOWN_T == 3
    B, c_in, T0 = x_nct.shape
    assert c_in == INPUT_EMB_WIDTH and T0 % (STRIDE_T ** DOWN_T) == 0

    bb = packed["w_in"].shape[1] // WIDTH          # lane-pack factor (static)
    C_in_lanes = bb * WIDTH
    C_out_lanes = bb * OUTPUT_EMB_WIDTH
    G = (B + bb - 1) // bb                         # batch groups
    Bp = G * bb

    # (B, C, T) -> (G, T, bb*WIDTH): time on sublanes, (batch, chan) on lanes
    x = jnp.transpose(x_nct, (0, 2, 1))                        # (B, T, 3)
    x = jnp.pad(x, ((0, Bp - B), (0, 0), (0, WIDTH - c_in)))   # (Bp, T, 16)
    x = x.reshape(G, bb, T0, WIDTH).transpose(0, 2, 1, 3).reshape(G, T0, C_in_lanes)

    t_final = T0 // (STRIDE_T ** DOWN_T)
    # even-row selection matrices realizing the stride-2 downsample convs
    sels, t = [], T0
    for _ in range(DOWN_T):
        sels.append(_even_select(t // 2, t - 1))
        t //= 2

    dils = tuple(DILATION_GROWTH_RATE ** d for d in range(DEPTH))[::-1]   # (9,3,1)
    TB = _OFF + T0 + _OFF                                      # padded scratch rows

    kern = functools.partial(_encoder_kernel, T0=T0, down_t=DOWN_T,
                             depth=DEPTH, dils=dils)

    def full(shape):
        return pl.BlockSpec(shape, lambda g, _n=len(shape): (0,) * _n)

    args = (x, packed["w_in"], packed["b_in"], packed["w_dn"], packed["b_dn"],
            packed["w_r1"], packed["b_r1"], packed["w_r2"], packed["b_r2"],
            packed["w_out"], packed["b_out"], *sels)

    in_specs = [pl.BlockSpec((1, T0, C_in_lanes), lambda g: (g, 0, 0))]
    in_specs += [full(a.shape) for a in args[1:]]              # weights/sels resident

    out = pl.pallas_call(
        kern,
        out_shape=jax.ShapeDtypeStruct((G, t_final, C_out_lanes), x.dtype),
        grid=(G,),
        in_specs=in_specs,
        out_specs=pl.BlockSpec((1, t_final, C_out_lanes), lambda g: (g, 0, 0)),
        scratch_shapes=[pltpu.VMEM((TB, C_in_lanes), jnp.float32)],
        compiler_params=pltpu.CompilerParams(
            dimension_semantics=("parallel",),
            vmem_limit_bytes=32 * 1024 * 1024),
    )(*args)

    # (G, t_final, bb*OW) -> (B, OW, t_final)
    out = out.reshape(G, t_final, bb, OUTPUT_EMB_WIDTH).transpose(0, 2, 1, 3)
    out = out.reshape(Bp, t_final, OUTPUT_EMB_WIDTH)[:B]
    return jnp.transpose(out, (0, 2, 1))


# ---- pure-JAX reference (for numerical self-check) ---------------------------
def _conv1d_ref(x, w, b, stride=1, padding=0, dilation=1):
    # x: (B, C_in, T), w: (K, C_in, C_out) -> (B, C_out, T_out)
    out = jax.lax.conv_general_dilated(
        x, jnp.transpose(w, (2, 1, 0)),
        window_strides=(stride,), padding=[(padding, padding)],
        rhs_dilation=(dilation,),
        dimension_numbers=("NCH", "OIH", "NCH"))
    return out + b[None, :, None]


def encoder_reference(params, x):
    w, b = params["conv_in"]
    h = jax.nn.relu(_conv1d_ref(x, w, b, stride=1, padding=1))
    dils = tuple(DILATION_GROWTH_RATE ** d for d in range(DEPTH))[::-1]
    for d_blk in params["downs"]:
        w, b = d_blk["conv"]
        h = _conv1d_ref(h, w, b, stride=STRIDE_T, padding=STRIDE_T // 2)
        for j, r in enumerate(d_blk["res"]):
            dil = dils[j]
            w1, b1 = r["conv1"]
            w2, b2 = r["conv2"]
            u = _conv1d_ref(jax.nn.relu(h), w1, b1, 1, dil, dil)
            u = _conv1d_ref(jax.nn.relu(u), w2, b2, 1, 0, 1)
            h = h + u
    w, b = params["conv_out"]
    return _conv1d_ref(h, w, b, stride=1, padding=1)


if __name__ == "__main__":
    key = jax.random.PRNGKey(0)
    pkey, xkey = jax.random.split(key)
    params = init_encoder_params(pkey)
    packed = pack_encoder_params(params, lane_pack=LANE_PACK)

    B, T = 2, 64                                   # (B, input_emb_width, T)
    x = jax.random.normal(xkey, (B, INPUT_EMB_WIDTH, T), jnp.float32)

    out = jax.jit(encoder_forward)(packed, x)
    jax.block_until_ready(out)
    assert out.shape == (B, OUTPUT_EMB_WIDTH, T // (STRIDE_T ** DOWN_T)), out.shape

    ref = encoder_reference(params, x)
    np.testing.assert_allclose(np.asarray(out), np.asarray(ref),
                               rtol=1e-3, atol=1e-3)
    print("KERNEL_OK")
</pallas_src>

<mosaic_0001>
module attributes {stable_mosaic.version = 11 : i64} {
  func.func @_encoder_kernel(%arg0: i32, %arg1: memref<1x64x128xf32, #tpu.memory_space<vmem>>, %arg2: memref<3x128x128xf32, #tpu.memory_space<vmem>>, %arg3: memref<1x128xf32, #tpu.memory_space<vmem>>, %arg4: memref<12x128x128xf32, #tpu.memory_space<vmem>>, %arg5: memref<3x1x128xf32, #tpu.memory_space<vmem>>, %arg6: memref<27x128x128xf32, #tpu.memory_space<vmem>>, %arg7: memref<9x1x128xf32, #tpu.memory_space<vmem>>, %arg8: memref<9x128x128xf32, #tpu.memory_space<vmem>>, %arg9: memref<9x1x128xf32, #tpu.memory_space<vmem>>, %arg10: memref<3x128x128xf32, #tpu.memory_space<vmem>>, %arg11: memref<1x128xf32, #tpu.memory_space<vmem>>, %arg12: memref<32x63xf32, #tpu.memory_space<vmem>>, %arg13: memref<16x31xf32, #tpu.memory_space<vmem>>, %arg14: memref<8x15xf32, #tpu.memory_space<vmem>>, %arg15: memref<1x8x128xf32, #tpu.memory_space<vmem>>, %arg16: memref<96x128xf32, #tpu.memory_space<vmem>>) attributes {dimension_semantics = [#tpu.dimension_semantics<parallel>], iteration_bounds = array<i64: 1>, scalar_prefetch = 0 : i64, scratch_operands = 1 : i64, tpu.core_type = #tpu.core_type<tc>, window_params = [{transform_indices = @transform_0, window_bounds = array<i64: 1, 64, 128>}, {pipeline_mode = #tpu.pipeline_mode<synchronous>, transform_indices = @transform_1, window_bounds = array<i64: 3, 128, 128>}, {pipeline_mode = #tpu.pipeline_mode<synchronous>, transform_indices = @transform_2, window_bounds = array<i64: 1, 128>}, {pipeline_mode = #tpu.pipeline_mode<synchronous>, transform_indices = @transform_3, window_bounds = array<i64: 12, 128, 128>}, {pipeline_mode = #tpu.pipeline_mode<synchronous>, transform_indices = @transform_4, window_bounds = array<i64: 3, 1, 128>}, {pipeline_mode = #tpu.pipeline_mode<synchronous>, transform_indices = @transform_5, window_bounds = array<i64: 27, 128, 128>}, {pipeline_mode = #tpu.pipeline_mode<synchronous>, transform_indices = @transform_6, window_bounds = array<i64: 9, 1, 128>}, {pipeline_mode = #tpu.pipeline_mode<synchronous>, transform_indices = @transform_7, window_bounds = array<i64: 9, 128, 128>}, {pipeline_mode = #tpu.pipeline_mode<synchronous>, transform_indices = @transform_8, window_bounds = array<i64: 9, 1, 128>}, {pipeline_mode = #tpu.pipeline_mode<synchronous>, transform_indices = @transform_9, window_bounds = array<i64: 3, 128, 128>}, {pipeline_mode = #tpu.pipeline_mode<synchronous>, transform_indices = @transform_10, window_bounds = array<i64: 1, 128>}, {pipeline_mode = #tpu.pipeline_mode<synchronous>, transform_indices = @transform_11, window_bounds = array<i64: 32, 63>}, {pipeline_mode = #tpu.pipeline_mode<synchronous>, transform_indices = @transform_12, window_bounds = array<i64: 16, 31>}, {pipeline_mode = #tpu.pipeline_mode<synchronous>, transform_indices = @transform_13, window_bounds = array<i64: 8, 15>}, {transform_indices = @transform_14, window_bounds = array<i64: 1, 8, 128>}]} {
    %c0 = arith.constant 0 : index
    %c0_0 = arith.constant 0 : index
    %c0_1 = arith.constant 0 : index
    %0 = vector.load %arg1[%c0, %c0_0, %c0_1] : memref<1x64x128xf32, #tpu.memory_space<vmem>>, vector<1x64x128xf32>
    %1 = vector.shape_cast %0 : vector<1x64x128xf32> to vector<64x128xf32>
    %cst = arith.constant 0.000000e+00 : f32
    %2 = vector.broadcast %cst : f32 to vector<96x128xf32>
    %c0_2 = arith.constant 0 : index
    %c0_3 = arith.constant 0 : index
    %3 = vector.load %arg16[%c0_2, %c0_3] : memref<96x128xf32, #tpu.memory_space<vmem>>, vector<96x128xf32>
    tpu.vector_store %arg16[%c0_2, %c0_3], %2 {strides = array<i32>} : memref<96x128xf32, #tpu.memory_space<vmem>>, vector<96x128xf32>,
    %c16 = arith.constant 16 : index
    %c0_4 = arith.constant 0 : index
    %4 = vector.load %arg16[%c16, %c0_4] : memref<96x128xf32, #tpu.memory_space<vmem>>, vector<64x128xf32>
    tpu.vector_store %arg16[%c16, %c0_4], %1 {strides = array<i32>} : memref<96x128xf32, #tpu.memory_space<vmem>>, vector<64x128xf32>,
    %c0_5 = arith.constant 0 : index
    %c0_6 = arith.constant 0 : index
    %c0_7 = arith.constant 0 : index
    %5 = vector.load %arg2[%c0_5, %c0_6, %c0_7] : memref<3x128x128xf32, #tpu.memory_space<vmem>>, vector<1x128x128xf32>
    %6 = vector.shape_cast %5 : vector<1x128x128xf32> to vector<128x128xf32>
    %c1 = arith.constant 1 : index
    %c0_8 = arith.constant 0 : index
    %c0_9 = arith.constant 0 : index
    %7 = vector.load %arg2[%c1, %c0_8, %c0_9] : memref<3x128x128xf32, #tpu.memory_space<vmem>>, vector<1x128x128xf32>
    %8 = vector.shape_cast %7 : vector<1x128x128xf32> to vector<128x128xf32>
    %c2 = arith.constant 2 : index
    %c0_10 = arith.constant 0 : index
    %c0_11 = arith.constant 0 : index
    %9 = vector.load %arg2[%c2, %c0_10, %c0_11] : memref<3x128x128xf32, #tpu.memory_space<vmem>>, vector<1x128x128xf32>
    %10 = vector.shape_cast %9 : vector<1x128x128xf32> to vector<128x128xf32>
    %c0_12 = arith.constant 0 : index
    %c0_13 = arith.constant 0 : index
    %11 = vector.load %arg3[%c0_12, %c0_13] : memref<1x128xf32, #tpu.memory_space<vmem>>, vector<1x128xf32>
    %c15 = arith.constant 15 : index
    %c0_14 = arith.constant 0 : index
    %12 = vector.load %arg16[%c15, %c0_14] : memref<96x128xf32, #tpu.memory_space<vmem>>, vector<64x128xf32>
    %cst_15 = arith.constant dense<0.000000e+00> : vector<64x128xf32>
    %13 = tpu.matmul %12, %6, %cst_15 {dimension_numbers = #tpu.dot_dimension_numbers<[1], [0], [0], [1], [0, 0, 1, 1], [], []>} : vector<64x128xf32>, vector<128x128xf32>, vector<64x128xf32> -> vector<64x128xf32>
    %c16_16 = arith.constant 16 : index
    %c0_17 = arith.constant 0 : index
    %14 = vector.load %arg16[%c16_16, %c0_17] : memref<96x128xf32, #tpu.memory_space<vmem>>, vector<64x128xf32>
    %cst_18 = arith.constant dense<0.000000e+00> : vector<64x128xf32>
    %15 = tpu.matmul %14, %8, %cst_18 {dimension_numbers = #tpu.dot_dimension_numbers<[1], [0], [0], [1], [0, 0, 1, 1], [], []>} : vector<64x128xf32>, vector<128x128xf32>, vector<64x128xf32> -> vector<64x128xf32>
    %16 = arith.addf %13, %15 : vector<64x128xf32>
    %c17 = arith.constant 17 : index
    %c0_19 = arith.constant 0 : index
    %17 = vector.load %arg16[%c17, %c0_19] : memref<96x128xf32, #tpu.memory_space<vmem>>, vector<64x128xf32>
    %cst_20 = arith.constant dense<0.000000e+00> : vector<64x128xf32>
    %18 = tpu.matmul %17, %10, %cst_20 {dimension_numbers = #tpu.dot_dimension_numbers<[1], [0], [0], [1], [0, 0, 1, 1], [], []>} : vector<64x128xf32>, vector<128x128xf32>, vector<64x128xf32> -> vector<64x128xf32>
    %19 = arith.addf %16, %18 : vector<64x128xf32>
    %20 = vector.broadcast %11 : vector<1x128xf32> to vector<64x128xf32>
    %21 = arith.addf %19, %20 : vector<64x128xf32>
    %cst_21 = arith.constant 0.000000e+00 : f32
    %22 = vector.broadcast %cst_21 : f32 to vector<64x128xf32>
    %23 = arith.maximumf %21, %22 : vector<64x128xf32>
    %cst_22 = arith.constant 0.000000e+00 : f32
    %24 = vector.broadcast %cst_22 : f32 to vector<96x128xf32>
    %c0_23 = arith.constant 0 : index
    %c0_24 = arith.constant 0 : index
    %25 = vector.load %arg16[%c0_23, %c0_24] : memref<96x128xf32, #tpu.memory_space<vmem>>, vector<96x128xf32>
    tpu.vector_store %arg16[%c0_23, %c0_24], %24 {strides = array<i32>} : memref<96x128xf32, #tpu.memory_space<vmem>>, vector<96x128xf32>,
    %c16_25 = arith.constant 16 : index
    %c0_26 = arith.constant 0 : index
    %26 = vector.load %arg16[%c16_25, %c0_26] : memref<96x128xf32, #tpu.memory_space<vmem>>, vector<64x128xf32>
    tpu.vector_store %arg16[%c16_25, %c0_26], %23 {strides = array<i32>} : memref<96x128xf32, #tpu.memory_space<vmem>>, vector<64x128xf32>,
    %c0_27 = arith.constant 0 : index
    %c0_28 = arith.constant 0 : index
    %c0_29 = arith.constant 0 : index
    %27 = vector.load %arg4[%c0_27, %c0_28, %c0_29] : memref<12x128x128xf32, #tpu.memory_space<vmem>>, vector<1x128x128xf32>
    %28 = vector.shape_cast %27 : vector<1x128x128xf32> to vector<128x128xf32>
    %c1_30 = arith.constant 1 : index
    %c0_31 = arith.constant 0 : index
    %c0_32 = arith.constant 0 : index
    %29 = vector.load %arg4[%c1_30, %c0_31, %c0_32] : memref<12x128x128xf32, #tpu.memory_space<vmem>>, vector<1x128x128xf32>
    %30 = vector.shape_cast %29 : vector<1x128x128xf32> to vector<128x128xf32>
    %c2_33 = arith.constant 2 : index
    %c0_34 = arith.constant 0 : index
    %c0_35 = arith.constant 0 : index
    %31 = vector.load %arg4[%c2_33, %c0_34, %c0_35] : memref<12x128x128xf32, #tpu.memory_space<vmem>>, vector<1x128x128xf32>
    %32 = vector.shape_cast %31 : vector<1x128x128xf32> to vector<128x128xf32>
    %c3 = arith.constant 3 : index
    %c0_36 = arith.constant 0 : index
    %c0_37 = arith.constant 0 : index
    %33 = vector.load %arg4[%c3, %c0_36, %c0_37] : memref<12x128x128xf32, #tpu.memory_space<vmem>>, vector<1x128x128xf32>
    %34 = vector.shape_cast %33 : vector<1x128x128xf32> to vector<128x128xf32>
    %c0_38 = arith.constant 0 : index
    %c0_39 = arith.constant 0 : index
    %c0_40 = arith.constant 0 : index
    %35 = vector.load %arg5[%c0_38, %c0_39, %c0_40] : memref<3x1x128xf32, #tpu.memory_space<vmem>>, vector<1x1x128xf32>
    %36 = vector.shape_cast %35 : vector<1x1x128xf32> to vector<1x128xf32>
    %c15_41 = arith.constant 15 : index
    %c0_42 = arith.constant 0 : index
    %37 = vector.load %arg16[%c15_41, %c0_42] : memref<96x128xf32, #tpu.memory_space<vmem>>, vector<63x128xf32>
    %cst_43 = arith.constant dense<0.000000e+00> : vector<63x128xf32>
    %38 = tpu.matmul %37, %28, %cst_43 {dimension_numbers = #tpu.dot_dimension_numbers<[1], [0], [0], [1], [0, 0, 1, 1], [], []>} : vector<63x128xf32>, vector<128x128xf32>, vector<63x128xf32> -> vector<63x128xf32>
    %c16_44 = arith.constant 16 : index
    %c0_45 = arith.constant 0 : index
    %39 = vector.load %arg16[%c16_44, %c0_45] : memref<96x128xf32, #tpu.memory_space<vmem>>, vector<63x128xf32>
    %cst_46 = arith.constant dense<0.000000e+00> : vector<63x128xf32>
    %40 = tpu.matmul %39, %30, %cst_46 {dimension_numbers = #tpu.dot_dimension_numbers<[1], [0], [0], [1], [0, 0, 1, 1], [], []>} : vector<63x128xf32>, vector<128x128xf32>, vector<63x128xf32> -> vector<63x128xf32>
    %41 = arith.addf %38, %40 : vector<63x128xf32>
    %c17_47 = arith.constant 17 : index
    %c0_48 = arith.constant 0 : index
    %42 = vector.load %arg16[%c17_47, %c0_48] : memref<96x128xf32, #tpu.memory_space<vmem>>, vector<63x128xf32>
    %cst_49 = arith.constant dense<0.000000e+00> : vector<63x128xf32>
    %43 = tpu.matmul %42, %32, %cst_49 {dimension_numbers = #tpu.dot_dimension_numbers<[1], [0], [0], [1], [0, 0, 1, 1], [], []>} : vector<63x128xf32>, vector<128x128xf32>, vector<63x128xf32> -> vector<63x128xf32>
    %44 = arith.addf %41, %43 : vector<63x128xf32>
    %c18 = arith.constant 18 : index
    %c0_50 = arith.constant 0 : index
    %45 = vector.load %arg16[%c18, %c0_50] : memref<96x128xf32, #tpu.memory_space<vmem>>, vector<63x128xf32>
    %cst_51 = arith.constant dense<0.000000e+00> : vector<63x128xf32>
    %46 = tpu.matmul %45, %34, %cst_51 {dimension_numbers = #tpu.dot_dimension_numbers<[1], [0], [0], [1], [0, 0, 1, 1], [], []>} : vector<63x128xf32>, vector<128x128xf32>, vector<63x128xf32> -> vector<63x128xf32>
    %47 = arith.addf %44, %46 : vector<63x128xf32>
    %48 = vector.broadcast %36 : vector<1x128xf32> to vector<63x128xf32>
    %49 = arith.addf %47, %48 : vector<63x128xf32>
    %c0_52 = arith.constant 0 : index
    %c0_53 = arith.constant 0 : index
    %50 = vector.load %arg12[%c0_52, %c0_53] : memref<32x63xf32, #tpu.memory_space<vmem>>, vector<32x63xf32>
    %cst_54 = arith.constant dense<0.000000e+00> : vector<32x128xf32>
    %51 = tpu.matmul %50, %49, %cst_54 {dimension_numbers = #tpu.dot_dimension_numbers<[1], [0], [0], [1], [0, 0, 1, 1], [], []>} : vector<32x63xf32>, vector<63x128xf32>, vector<32x128xf32> -> vector<32x128xf32>
    %cst_55 = arith.constant 0.000000e+00 : f32
    %52 = vector.broadcast %cst_55 : f32 to vector<32x128xf32>
    %53 = arith.maximumf %51, %52 : vector<32x128xf32>
    %cst_56 = arith.constant 0.000000e+00 : f32
    %54 = vector.broadcast %cst_56 : f32 to vector<96x128xf32>
    %c0_57 = arith.constant 0 : index
    %c0_58 = arith.constant 0 : index
    %55 = vector.load %arg16[%c0_57, %c0_58] : memref<96x128xf32, #tpu.memory_space<vmem>>, vector<96x128xf32>
    tpu.vector_store %arg16[%c0_57, %c0_58], %54 {strides = array<i32>} : memref<96x128xf32, #tpu.memory_space<vmem>>, vector<96x128xf32>,
    %c16_59 = arith.constant 16 : index
    %c0_60 = arith.constant 0 : index
    %56 = vector.load %arg16[%c16_59, %c0_60] : memref<96x128xf32, #tpu.memory_space<vmem>>, vector<32x128xf32>
    tpu.vector_store %arg16[%c16_59, %c0_60], %53 {strides = array<i32>} : memref<96x128xf32, #tpu.memory_space<vmem>>, vector<32x128xf32>,
    %c0_61 = arith.constant 0 : index
    %c0_62 = arith.constant 0 : index
    %c0_63 = arith.constant 0 : index
    %57 = vector.load %arg6[%c0_61, %c0_62, %c0_63] : memref<27x128x128xf32, #tpu.memory_space<vmem>>, vector<1x128x128xf32>
    %58 = vector.shape_cast %57 : vector<1x128x128xf32> to vector<128x128xf32>
    %c1_64 = arith.constant 1 : index
    %c0_65 = arith.constant 0 : index
    %c0_66 = arith.constant 0 : index
    %59 = vector.load %arg6[%c1_64, %c0_65, %c0_66] : memref<27x128x128xf32, #tpu.memory_space<vmem>>, vector<1x128x128xf32>
    %60 = vector.shape_cast %59 : vector<1x128x128xf32> to vector<128x128xf32>
    %c2_67 = arith.constant 2 : index
    %c0_68 = arith.constant 0 : index
    %c0_69 = arith.constant 0 : index
    %61 = vector.load %arg6[%c2_67, %c0_68, %c0_69] : memref<27x128x128xf32, #tpu.memory_space<vmem>>, vector<1x128x128xf32>
    %62 = vector.shape_cast %61 : vector<1x128x128xf32> to vector<128x128xf32>
    %c0_70 = arith.constant 0 : index
    %c0_71 = arith.constant 0 : index
    %c0_72 = arith.constant 0 : index
    %63 = vector.load %arg7[%c0_70, %c0_71, %c0_72] : memref<9x1x128xf32, #tpu.memory_space<vmem>>, vector<1x1x128xf32>
    %64 = vector.shape_cast %63 : vector<1x1x128xf32> to vector<1x128xf32>
    %c7 = arith.constant 7 : index
    %c0_73 = arith.constant 0 : index
    %65 = vector.load %arg16[%c7, %c0_73] : memref<96x128xf32, #tpu.memory_space<vmem>>, vector<32x128xf32>
    %cst_74 = arith.constant dense<0.000000e+00> : vector<32x128xf32>
    %66 = tpu.matmul %65, %58, %cst_74 {dimension_numbers = #tpu.dot_dimension_numbers<[1], [0], [0], [1], [0, 0, 1, 1], [], []>} : vector<32x128xf32>, vector<128x128xf32>, vector<32x128xf32> -> vector<32x128xf32>
    %c16_75 = arith.constant 16 : index
    %c0_76 = arith.constant 0 : index
    %67 = vector.load %arg16[%c16_75, %c0_76] : memref<96x128xf32, #tpu.memory_space<vmem>>, vector<32x128xf32>
    %cst_77 = arith.constant dense<0.000000e+00> : vector<32x128xf32>
    %68 = tpu.matmul %67, %60, %cst_77 {dimension_numbers = #tpu.dot_dimension_numbers<[1], [0], [0], [1], [0, 0, 1, 1], [], []>} : vector<32x128xf32>, vector<128x128xf32>, vector<32x128xf32> -> vector<32x128xf32>
    %69 = arith.addf %66, %68 : vector<32x128xf32>
    %c25 = arith.constant 25 : index
    %c0_78 = arith.constant 0 : index
    %70 = vector.load %arg16[%c25, %c0_78] : memref<96x128xf32, #tpu.memory_space<vmem>>, vector<32x128xf32>
    %cst_79 = arith.constant dense<0.000000e+00> : vector<32x128xf32>
    %71 = tpu.matmul %70, %62, %cst_79 {dimension_numbers = #tpu.dot_dimension_numbers<[1], [0], [0], [1], [0, 0, 1, 1], [], []>} : vector<32x128xf32>, vector<128x128xf32>, vector<32x128xf32> -> vector<32x128xf32>
    %72 = arith.addf %69, %71 : vector<32x128xf32>
    %73 = vector.broadcast %64 : vector<1x128xf32> to vector<32x128xf32>
    %74 = arith.addf %72, %73 : vector<32x128xf32>
    %cst_80 = arith.constant 0.000000e+00 : f32
    %75 = vector.broadcast %cst_80 : f32 to vector<32x128xf32>
    %76 = arith.maximumf %74, %75 : vector<32x128xf32>
    %c0_81 = arith.constant 0 : index
    %c0_82 = arith.constant 0 : index
    %c0_83 = arith.constant 0 : index
    %77 = vector.load %arg8[%c0_81, %c0_82, %c0_83] : memref<9x128x128xf32, #tpu.memory_space<vmem>>, vector<1x128x128xf32>
    %78 = vector.shape_cast %77 : vector<1x128x128xf32> to vector<128x128xf32>
    %cst_84 = arith.constant dense<0.000000e+00> : vector<32x128xf32>
    %79 = tpu.matmul %76, %78, %cst_84 {dimension_numbers = #tpu.dot_dimension_numbers<[1], [0], [0], [1], [0, 0, 1, 1], [], []>} : vector<32x128xf32>, vector<128x128xf32>, vector<32x128xf32> -> vector<32x128xf32>
    %c0_85 = arith.constant 0 : index
    %c0_86 = arith.constant 0 : index
    %c0_87 = arith.constant 0 : index
    %80 = vector.load %arg9[%c0_85, %c0_86, %c0_87] : memref<9x1x128xf32, #tpu.memory_space<vmem>>, vector<1x1x128xf32>
    %81 = vector.shape_cast %80 : vector<1x1x128xf32> to vector<1x128xf32>
    %82 = vector.broadcast %81 : vector<1x128xf32> to vector<32x128xf32>
    %83 = arith.addf %79, %82 : vector<32x128xf32>
    %84 = arith.addf %51, %83 : vector<32x128xf32>
    %cst_88 = arith.constant 0.000000e+00 : f32
    %85 = vector.broadcast %cst_88 : f32 to vector<32x128xf32>
    %86 = arith.maximumf %84, %85 : vector<32x128xf32>
    %cst_89 = arith.constant 0.000000e+00 : f32
    %87 = vector.broadcast %cst_89 : f32 to vector<96x128xf32>
    %c0_90 = arith.constant 0 : index
    %c0_91 = arith.constant 0 : index
    %88 = vector.load %arg16[%c0_90, %c0_91] : memref<96x128xf32, #tpu.memory_space<vmem>>, vector<96x128xf32>
    tpu.vector_store %arg16[%c0_90, %c0_91], %87 {strides = array<i32>} : memref<96x128xf32, #tpu.memory_space<vmem>>, vector<96x128xf32>,
    %c16_92 = arith.constant 16 : index
    %c0_93 = arith.constant 0 : index
    %89 = vector.load %arg16[%c16_92, %c0_93] : memref<96x128xf32, #tpu.memory_space<vmem>>, vector<32x128xf32>
    tpu.vector_store %arg16[%c16_92, %c0_93], %86 {strides = array<i32>} : memref<96x128xf32, #tpu.memory_space<vmem>>, vector<32x128xf32>,
    %c3_94 = arith.constant 3 : index
    %c0_95 = arith.constant 0 : index
    %c0_96 = arith.constant 0 : index
    %90 = vector.load %arg6[%c3_94, %c0_95, %c0_96] : memref<27x128x128xf32, #tpu.memory_space<vmem>>, vector<1x128x128xf32>
    %91 = vector.shape_cast %90 : vector<1x128x128xf32> to vector<128x128xf32>
    %c4 = arith.constant 4 : index
    %c0_97 = arith.constant 0 : index
    %c0_98 = arith.constant 0 : index
    %92 = vector.load %arg6[%c4, %c0_97, %c0_98] : memref<27x128x128xf32, #tpu.memory_space<vmem>>, vector<1x128x128xf32>
    %93 = vector.shape_cast %92 : vector<1x128x128xf32> to vector<128x128xf32>
    %c5 = arith.constant 5 : index
    %c0_99 = arith.constant 0 : index
    %c0_100 = arith.constant 0 : index
    %94 = vector.load %arg6[%c5, %c0_99, %c0_100] : memref<27x128x128xf32, #tpu.memory_space<vmem>>, vector<1x128x128xf32>
    %95 = vector.shape_cast %94 : vector<1x128x128xf32> to vector<128x128xf32>
    %c1_101 = arith.constant 1 : index
    %c0_102 = arith.constant 0 : index
    %c0_103 = arith.constant 0 : index
    %96 = vector.load %arg7[%c1_101, %c0_102, %c0_103] : memref<9x1x128xf32, #tpu.memory_space<vmem>>, vector<1x1x128xf32>
    %97 = vector.shape_cast %96 : vector<1x1x128xf32> to vector<1x128xf32>
    %c13 = arith.constant 13 : index
    %c0_104 = arith.constant 0 : index
    %98 = vector.load %arg16[%c13, %c0_104] : memref<96x128xf32, #tpu.memory_space<vmem>>, vector<32x128xf32>
    %cst_105 = arith.constant dense<0.000000e+00> : vector<32x128xf32>
    %99 = tpu.matmul %98, %91, %cst_105 {dimension_numbers = #tpu.dot_dimension_numbers<[1], [0], [0], [1], [0, 0, 1, 1], [], []>} : vector<32x128xf32>, vector<128x128xf32>, vector<32x128xf32> -> vector<32x128xf32>
    %c16_106 = arith.constant 16 : index
    %c0_107 = arith.constant 0 : index
    %100 = vector.load %arg16[%c16_106, %c0_107] : memref<96x128xf32, #tpu.memory_space<vmem>>, vector<32x128xf32>
    %cst_108 = arith.constant dense<0.000000e+00> : vector<32x128xf32>
    %101 = tpu.matmul %100, %93, %cst_108 {dimension_numbers = #tpu.dot_dimension_numbers<[1], [0], [0], [1], [0, 0, 1, 1], [], []>} : vector<32x128xf32>, vector<128x128xf32>, vector<32x128xf32> -> vector<32x128xf32>
    %102 = arith.addf %99, %101 : vector<32x128xf32>
    %c19 = arith.constant 19 : index
    %c0_109 = arith.constant 0 : index
    %103 = vector.load %arg16[%c19, %c0_109] : memref<96x128xf32, #tpu.memory_space<vmem>>, vector<32x128xf32>
    %cst_110 = arith.constant dense<0.000000e+00> : vector<32x128xf32>
    %104 = tpu.matmul %103, %95, %cst_110 {dimension_numbers = #tpu.dot_dimension_numbers<[1], [0], [0], [1], [0, 0, 1, 1], [], []>} : vector<32x128xf32>, vector<128x128xf32>, vector<32x128xf32> -> vector<32x128xf32>
    %105 = arith.addf %102, %104 : vector<32x128xf32>
    %106 = vector.broadcast %97 : vector<1x128xf32> to vector<32x128xf32>
    %107 = arith.addf %105, %106 : vector<32x128xf32>
    %cst_111 = arith.constant 0.000000e+00 : f32
    %108 = vector.broadcast %cst_111 : f32 to vector<32x128xf32>
    %109 = arith.maximumf %107, %108 : vector<32x128xf32>
    %c1_112 = arith.constant 1 : index
    %c0_113 = arith.constant 0 : index
    %c0_114 = arith.constant 0 : index
    %110 = vector.load %arg8[%c1_112, %c0_113, %c0_114] : memref<9x128x128xf32, #tpu.memory_space<vmem>>, vector<1x128x128xf32>
    %111 = vector.shape_cast %110 : vector<1x128x128xf32> to vector<128x128xf32>
    %cst_115 = arith.constant dense<0.000000e+00> : vector<32x128xf32>
    %112 = tpu.matmul %109, %111, %cst_115 {dimension_numbers = #tpu.dot_dimension_numbers<[1], [0], [0], [1], [0, 0, 1, 1], [], []>} : vector<32x128xf32>, vector<128x128xf32>, vector<32x128xf32> -> vector<32x128xf32>
    %c1_116 = arith.constant 1 : index
    %c0_117 = arith.constant 0 : index
    %c0_118 = arith.constant 0 : index
    %113 = vector.load %arg9[%c1_116, %c0_117, %c0_118] : memref<9x1x128xf32, #tpu.memory_space<vmem>>, vector<1x1x128xf32>
    %114 = vector.shape_cast %113 : vector<1x1x128xf32> to vector<1x128xf32>
    %115 = vector.broadcast %114 : vector<1x128xf32> to vector<32x128xf32>
    %116 = arith.addf %112, %115 : vector<32x128xf32>
    %117 = arith.addf %84, %116 : vector<32x128xf32>
    %cst_119 = arith.constant 0.000000e+00 : f32
    %118 = vector.broadcast %cst_119 : f32 to vector<32x128xf32>
    %119 = arith.maximumf %117, %118 : vector<32x128xf32>
    %cst_120 = arith.constant 0.000000e+00 : f32
    %120 = vector.broadcast %cst_120 : f32 to vector<96x128xf32>
    %c0_121 = arith.constant 0 : index
    %c0_122 = arith.constant 0 : index
    %121 = vector.load %arg16[%c0_121, %c0_122] : memref<96x128xf32, #tpu.memory_space<vmem>>, vector<96x128xf32>
    tpu.vector_store %arg16[%c0_121, %c0_122], %120 {strides = array<i32>} : memref<96x128xf32, #tpu.memory_space<vmem>>, vector<96x128xf32>,
    %c16_123 = arith.constant 16 : index
    %c0_124 = arith.constant 0 : index
    %122 = vector.load %arg16[%c16_123, %c0_124] : memref<96x128xf32, #tpu.memory_space<vmem>>, vector<32x128xf32>
    tpu.vector_store %arg16[%c16_123, %c0_124], %119 {strides = array<i32>} : memref<96x128xf32, #tpu.memory_space<vmem>>, vector<32x128xf32>,
    %c6 = arith.constant 6 : index
    %c0_125 = arith.constant 0 : index
    %c0_126 = arith.constant 0 : index
    %123 = vector.load %arg6[%c6, %c0_125, %c0_126] : memref<27x128x128xf32, #tpu.memory_space<vmem>>, vector<1x128x128xf32>
    %124 = vector.shape_cast %123 : vector<1x128x128xf32> to vector<128x128xf32>
    %c7_127 = arith.constant 7 : index
    %c0_128 = arith.constant 0 : index
    %c0_129 = arith.constant 0 : index
    %125 = vector.load %arg6[%c7_127, %c0_128, %c0_129] : memref<27x128x128xf32, #tpu.memory_space<vmem>>, vector<1x128x128xf32>
    %126 = vector.shape_cast %125 : vector<1x128x128xf32> to vector<128x128xf32>
    %c8 = arith.constant 8 : index
    %c0_130 = arith.constant 0 : index
    %c0_131 = arith.constant 0 : index
    %127 = vector.load %arg6[%c8, %c0_130, %c0_131] : memref<27x128x128xf32, #tpu.memory_space<vmem>>, vector<1x128x128xf32>
    %128 = vector.shape_cast %127 : vector<1x128x128xf32> to vector<128x128xf32>
    %c2_132 = arith.constant 2 : index
    %c0_133 = arith.constant 0 : index
    %c0_134 = arith.constant 0 : index
    %129 = vector.load %arg7[%c2_132, %c0_133, %c0_134] : memref<9x1x128xf32, #tpu.memory_space<vmem>>, vector<1x1x128xf32>
    %130 = vector.shape_cast %129 : vector<1x1x128xf32> to vector<1x128xf32>
    %c15_135 = arith.constant 15 : index
    %c0_136 = arith.constant 0 : index
    %131 = vector.load %arg16[%c15_135, %c0_136] : memref<96x128xf32, #tpu.memory_space<vmem>>, vector<32x128xf32>
    %cst_137 = arith.constant dense<0.000000e+00> : vector<32x128xf32>
    %132 = tpu.matmul %131, %124, %cst_137 {dimension_numbers = #tpu.dot_dimension_numbers<[1], [0], [0], [1], [0, 0, 1, 1], [], []>} : vector<32x128xf32>, vector<128x128xf32>, vector<32x128xf32> -> vector<32x128xf32>
    %c16_138 = arith.constant 16 : index
    %c0_139 = arith.constant 0 : index
    %133 = vector.load %arg16[%c16_138, %c0_139] : memref<96x128xf32, #tpu.memory_space<vmem>>, vector<32x128xf32>
    %cst_140 = arith.constant dense<0.000000e+00> : vector<32x128xf32>
    %134 = tpu.matmul %133, %126, %cst_140 {dimension_numbers = #tpu.dot_dimension_numbers<[1], [0], [0], [1], [0, 0, 1, 1], [], []>} : vector<32x128xf32>, vector<128x128xf32>, vector<32x128xf32> -> vector<32x128xf32>
    %135 = arith.addf %132, %134 : vector<32x128xf32>
    %c17_141 = arith.constant 17 : index
    %c0_142 = arith.constant 0 : index
    %136 = vector.load %arg16[%c17_141, %c0_142] : memref<96x128xf32, #tpu.memory_space<vmem>>, vector<32x128xf32>
    %cst_143 = arith.constant dense<0.000000e+00> : vector<32x128xf32>
    %137 = tpu.matmul %136, %128, %cst_143 {dimension_numbers = #tpu.dot_dimension_numbers<[1], [0], [0], [1], [0, 0, 1, 1], [], []>} : vector<32x128xf32>, vector<128x128xf32>, vector<32x128xf32> -> vector<32x128xf32>
    %138 = arith.addf %135, %137 : vector<32x128xf32>
    %139 = vector.broadcast %130 : vector<1x128xf32> to vector<32x128xf32>
    %140 = arith.addf %138, %139 : vector<32x128xf32>
    %cst_144 = arith.constant 0.000000e+00 : f32
    %141 = vector.broadcast %cst_144 : f32 to vector<32x128xf32>
    %142 = arith.maximumf %140, %141 : vector<32x128xf32>
    %c2_145 = arith.constant 2 : index
    %c0_146 = arith.constant 0 : index
    %c0_147 = arith.constant 0 : index
    %143 = vector.load %arg8[%c2_145, %c0_146, %c0_147] : memref<9x128x128xf32, #tpu.memory_space<vmem>>, vector<1x128x128xf32>
    %144 = vector.shape_cast %143 : vector<1x128x128xf32> to vector<128x128xf32>
    %cst_148 = arith.constant dense<0.000000e+00> : vector<32x128xf32>
    %145 = tpu.matmul %142, %144, %cst_148 {dimension_numbers = #tpu.dot_dimension_numbers<[1], [0], [0], [1], [0, 0, 1, 1], [], []>} : vector<32x128xf32>, vector<128x128xf32>, vector<32x128xf32> -> vector<32x128xf32>
    %c2_149 = arith.constant 2 : index
    %c0_150 = arith.constant 0 : index
    %c0_151 = arith.constant 0 : index
    %146 = vector.load %arg9[%c2_149, %c0_150, %c0_151] : memref<9x1x128xf32, #tpu.memory_space<vmem>>, vector<1x1x128xf32>
    %147 = vector.shape_cast %146 : vector<1x1x128xf32> to vector<1x128xf32>
    %148 = vector.broadcast %147 : vector<1x128xf32> to vector<32x128xf32>
    %149 = arith.addf %145, %148 : vector<32x128xf32>
    %150 = arith.addf %117, %149 : vector<32x128xf32>
    %cst_152 = arith.constant 0.000000e+00 : f32
    %151 = vector.broadcast %cst_152 : f32 to vector<96x128xf32>
    %c0_153 = arith.constant 0 : index
    %c0_154 = arith.constant 0 : index
    %152 = vector.load %arg16[%c0_153, %c0_154] : memref<96x128xf32, #tpu.memory_space<vmem>>, vector<96x128xf32>
    tpu.vector_store %arg16[%c0_153, %c0_154], %151 {strides = array<i32>} : memref<96x128xf32, #tpu.memory_space<vmem>>, vector<96x128xf32>,
    %c16_155 = arith.constant 16 : index
    %c0_156 = arith.constant 0 : index
    %153 = vector.load %arg16[%c16_155, %c0_156] : memref<96x128xf32, #tpu.memory_space<vmem>>, vector<32x128xf32>
    tpu.vector_store %arg16[%c16_155, %c0_156], %150 {strides = array<i32>} : memref<96x128xf32, #tpu.memory_space<vmem>>, vector<32x128xf32>,
    %c4_157 = arith.constant 4 : index
    %c0_158 = arith.constant 0 : index
    %c0_159 = arith.constant 0 : index
    %154 = vector.load %arg4[%c4_157, %c0_158, %c0_159] : memref<12x128x128xf32, #tpu.memory_space<vmem>>, vector<1x128x128xf32>
    %155 = vector.shape_cast %154 : vector<1x128x128xf32> to vector<128x128xf32>
    %c5_160 = arith.constant 5 : index
    %c0_161 = arith.constant 0 : index
    %c0_162 = arith.constant 0 : index
    %156 = vector.load %arg4[%c5_160, %c0_161, %c0_162] : memref<12x128x128xf32, #tpu.memory_space<vmem>>, vector<1x128x128xf32>
    %157 = vector.shape_cast %156 : vector<1x128x128xf32> to vector<128x128xf32>
    %c6_163 = arith.constant 6 : index
    %c0_164 = arith.constant 0 : index
    %c0_165 = arith.constant 0 : index
    %158 = vector.load %arg4[%c6_163, %c0_164, %c0_165] : memref<12x128x128xf32, #tpu.memory_space<vmem>>, vector<1x128x128xf32>
    %159 = vector.shape_cast %158 : vector<1x128x128xf32> to vector<128x128xf32>
    %c7_166 = arith.constant 7 : index
    %c0_167 = arith.constant 0 : index
    %c0_168 = arith.constant 0 : index
    %160 = vector.load %arg4[%c7_166, %c0_167, %c0_168] : memref<12x128x128xf32, #tpu.memory_space<vmem>>, vector<1x128x128xf32>
    %161 = vector.shape_cast %160 : vector<1x128x128xf32> to vector<128x128xf32>
    %c1_169 = arith.constant 1 : index
    %c0_170 = arith.constant 0 : index
    %c0_171 = arith.constant 0 : index
    %162 = vector.load %arg5[%c1_169, %c0_170, %c0_171] : memref<3x1x128xf32, #tpu.memory_space<vmem>>, vector<1x1x128xf32>
    %163 = vector.shape_cast %162 : vector<1x1x128xf32> to vector<1x128xf32>
    %c15_172 = arith.constant 15 : index
    %c0_173 = arith.constant 0 : index
    %164 = vector.load %arg16[%c15_172, %c0_173] : memref<96x128xf32, #tpu.memory_space<vmem>>, vector<31x128xf32>
    %cst_174 = arith.constant dense<0.000000e+00> : vector<31x128xf32>
    %165 = tpu.matmul %164, %155, %cst_174 {dimension_numbers = #tpu.dot_dimension_numbers<[1], [0], [0], [1], [0, 0, 1, 1], [], []>} : vector<31x128xf32>, vector<128x128xf32>, vector<31x128xf32> -> vector<31x128xf32>
    %c16_175 = arith.constant 16 : index
    %c0_176 = arith.constant 0 : index
    %166 = vector.load %arg16[%c16_175, %c0_176] : memref<96x128xf32, #tpu.memory_space<vmem>>, vector<31x128xf32>
    %cst_177 = arith.constant dense<0.000000e+00> : vector<31x128xf32>
    %167 = tpu.matmul %166, %157, %cst_177 {dimension_numbers = #tpu.dot_dimension_numbers<[1], [0], [0], [1], [0, 0, 1, 1], [], []>} : vector<31x128xf32>, vector<128x128xf32>, vector<31x128xf32> -> vector<31x128xf32>
    %168 = arith.addf %165, %167 : vector<31x128xf32>
    %c17_178 = arith.constant 17 : index
    %c0_179 = arith.constant 0 : index
    %169 = vector.load %arg16[%c17_178, %c0_179] : memref<96x128xf32, #tpu.memory_space<vmem>>, vector<31x128xf32>
    %cst_180 = arith.constant dense<0.000000e+00> : vector<31x128xf32>
    %170 = tpu.matmul %169, %159, %cst_180 {dimension_numbers = #tpu.dot_dimension_numbers<[1], [0], [0], [1], [0, 0, 1, 1], [], []>} : vector<31x128xf32>, vector<128x128xf32>, vector<31x128xf32> -> vector<31x128xf32>
    %171 = arith.addf %168, %170 : vector<31x128xf32>
    %c18_181 = arith.constant 18 : index
    %c0_182 = arith.constant 0 : index
    %172 = vector.load %arg16[%c18_181, %c0_182] : memref<96x128xf32, #tpu.memory_space<vmem>>, vector<31x128xf32>
    %cst_183 = arith.constant dense<0.000000e+00> : vector<31x128xf32>
    %173 = tpu.matmul %172, %161, %cst_183 {dimension_numbers = #tpu.dot_dimension_numbers<[1], [0], [0], [1], [0, 0, 1, 1], [], []>} : vector<31x128xf32>, vector<128x128xf32>, vector<31x128xf32> -> vector<31x128xf32>
    %174 = arith.addf %171, %173 : vector<31x128xf32>
    %175 = vector.broadcast %163 : vector<1x128xf32> to vector<31x128xf32>
    %176 = arith.addf %174, %175 : vector<31x128xf32>
    %c0_184 = arith.constant 0 : index
    %c0_185 = arith.constant 0 : index
    %177 = vector.load %arg13[%c0_184, %c0_185] : memref<16x31xf32, #tpu.memory_space<vmem>>, vector<16x31xf32>
    %cst_186 = arith.constant dense<0.000000e+00> : vector<16x128xf32>
    %178 = tpu.matmul %177, %176, %cst_186 {dimension_numbers = #tpu.dot_dimension_numbers<[1], [0], [0], [1], [0, 0, 1, 1], [], []>} : vector<16x31xf32>, vector<31x128xf32>, vector<16x128xf32> -> vector<16x128xf32>
    %cst_187 = arith.constant 0.000000e+00 : f32
    %179 = vector.broadcast %cst_187 : f32 to vector<16x128xf32>
    %180 = arith.maximumf %178, %179 : vector<16x128xf32>
    %cst_188 = arith.constant 0.000000e+00 : f32
    %181 = vector.broadcast %cst_188 : f32 to vector<96x128xf32>
    %c0_189 = arith.constant 0 : index
    %c0_190 = arith.constant 0 : index
    %182 = vector.load %arg16[%c0_189, %c0_190] : memref<96x128xf32, #tpu.memory_space<vmem>>, vector<96x128xf32>
    tpu.vector_store %arg16[%c0_189, %c0_190], %181 {strides = array<i32>} : memref<96x128xf32, #tpu.memory_space<vmem>>, vector<96x128xf32>,
    %c16_191 = arith.constant 16 : index
    %c0_192 = arith.constant 0 : index
    %183 = vector.load %arg16[%c16_191, %c0_192] : memref<96x128xf32, #tpu.memory_space<vmem>>, vector<16x128xf32>
    tpu.vector_store %arg16[%c16_191, %c0_192], %180 {strides = array<i32>} : memref<96x128xf32, #tpu.memory_space<vmem>>, vector<16x128xf32>,
    %c9 = arith.constant 9 : index
    %c0_193 = arith.constant 0 : index
    %c0_194 = arith.constant 0 : index
    %184 = vector.load %arg6[%c9, %c0_193, %c0_194] : memref<27x128x128xf32, #tpu.memory_space<vmem>>, vector<1x128x128xf32>
    %185 = vector.shape_cast %184 : vector<1x128x128xf32> to vector<128x128xf32>
    %c10 = arith.constant 10 : index
    %c0_195 = arith.constant 0 : index
    %c0_196 = arith.constant 0 : index
    %186 = vector.load %arg6[%c10, %c0_195, %c0_196] : memref<27x128x128xf32, #tpu.memory_space<vmem>>, vector<1x128x128xf32>
    %187 = vector.shape_cast %186 : vector<1x128x128xf32> to vector<128x128xf32>
    %c11 = arith.constant 11 : index
    %c0_197 = arith.constant 0 : index
    %c0_198 = arith.constant 0 : index
    %188 = vector.load %arg6[%c11, %c0_197, %c0_198] : memref<27x128x128xf32, #tpu.memory_space<vmem>>, vector<1x128x128xf32>
    %189 = vector.shape_cast %188 : vector<1x128x128xf32> to vector<128x128xf32>
    %c3_199 = arith.constant 3 : index
    %c0_200 = arith.constant 0 : index
    %c0_201 = arith.constant 0 : index
    %190 = vector.load %arg7[%c3_199, %c0_200, %c0_201] : memref<9x1x128xf32, #tpu.memory_space<vmem>>, vector<1x1x128xf32>
    %191 = vector.shape_cast %190 : vector<1x1x128xf32> to vector<1x128xf32>
    %c7_202 = arith.constant 7 : index
    %c0_203 = arith.constant 0 : index
    %192 = vector.load %arg16[%c7_202, %c0_203] : memref<96x128xf32, #tpu.memory_space<vmem>>, vector<16x128xf32>
    %cst_204 = arith.constant dense<0.000000e+00> : vector<16x128xf32>
    %193 = tpu.matmul %192, %185, %cst_204 {dimension_numbers = #tpu.dot_dimension_numbers<[1], [0], [0], [1], [0, 0, 1, 1], [], []>} : vector<16x128xf32>, vector<128x128xf32>, vector<16x128xf32> -> vector<16x128xf32>
    %c16_205 = arith.constant 16 : index
    %c0_206 = arith.constant 0 : index
    %194 = vector.load %arg16[%c16_205, %c0_206] : memref<96x128xf32, #tpu.memory_space<vmem>>, vector<16x128xf32>
    %cst_207 = arith.constant dense<0.000000e+00> : vector<16x128xf32>
    %195 = tpu.matmul %194, %187, %cst_207 {dimension_numbers = #tpu.dot_dimension_numbers<[1], [0], [0], [1], [0, 0, 1, 1], [], []>} : vector<16x128xf32>, vector<128x128xf32>, vector<16x128xf32> -> vector<16x128xf32>
    %196 = arith.addf %193, %195 : vector<16x128xf32>
    %c25_208 = arith.constant 25 : index
    %c0_209 = arith.constant 0 : index
    %197 = vector.load %arg16[%c25_208, %c0_209] : memref<96x128xf32, #tpu.memory_space<vmem>>, vector<16x128xf32>
    %cst_210 = arith.constant dense<0.000000e+00> : vector<16x128xf32>
    %198 = tpu.matmul %197, %189, %cst_210 {dimension_numbers = #tpu.dot_dimension_numbers<[1], [0], [0], [1], [0, 0, 1, 1], [], []>} : vector<16x128xf32>, vector<128x128xf32>, vector<16x128xf32> -> vector<16x128xf32>
    %199 = arith.addf %196, %198 : vector<16x128xf32>
    %200 = vector.broadcast %191 : vector<1x128xf32> to vector<16x128xf32>
    %201 = arith.addf %199, %200 : vector<16x128xf32>
    %cst_211 = arith.constant 0.000000e+00 : f32
    %202 = vector.broadcast %cst_211 : f32 to vector<16x128xf32>
    %203 = arith.maximumf %201, %202 : vector<16x128xf32>
    %c3_212 = arith.constant 3 : index
    %c0_213 = arith.constant 0 : index
    %c0_214 = arith.constant 0 : index
    %204 = vector.load %arg8[%c3_212, %c0_213, %c0_214] : memref<9x128x128xf32, #tpu.memory_space<vmem>>, vector<1x128x128xf32>
    %205 = vector.shape_cast %204 : vector<1x128x128xf32> to vector<128x128xf32>
    %cst_215 = arith.constant dense<0.000000e+00> : vector<16x128xf32>
    %206 = tpu.matmul %203, %205, %cst_215 {dimension_numbers = #tpu.dot_dimension_numbers<[1], [0], [0], [1], [0, 0, 1, 1], [], []>} : vector<16x128xf32>, vector<128x128xf32>, vector<16x128xf32> -> vector<16x128xf32>
    %c3_216 = arith.constant 3 : index
    %c0_217 = arith.constant 0 : index
    %c0_218 = arith.constant 0 : index
    %207 = vector.load %arg9[%c3_216, %c0_217, %c0_218] : memref<9x1x128xf32, #tpu.memory_space<vmem>>, vector<1x1x128xf32>
    %208 = vector.shape_cast %207 : vector<1x1x128xf32> to vector<1x128xf32>
    %209 = vector.broadcast %208 : vector<1x128xf32> to vector<16x128xf32>
    %210 = arith.addf %206, %209 : vector<16x128xf32>
    %211 = arith.addf %178, %210 : vector<16x128xf32>
    %cst_219 = arith.constant 0.000000e+00 : f32
    %212 = vector.broadcast %cst_219 : f32 to vector<16x128xf32>
    %213 = arith.maximumf %211, %212 : vector<16x128xf32>
    %cst_220 = arith.constant 0.000000e+00 : f32
    %214 = vector.broadcast %cst_220 : f32 to vector<96x128xf32>
    %c0_221 = arith.constant 0 : index
    %c0_222 = arith.constant 0 : index
    %215 = vector.load %arg16[%c0_221, %c0_222] : memref<96x128xf32, #tpu.memory_space<vmem>>, vector<96x128xf32>
    tpu.vector_store %arg16[%c0_221, %c0_222], %214 {strides = array<i32>} : memref<96x128xf32, #tpu.memory_space<vmem>>, vector<96x128xf32>,
    %c16_223 = arith.constant 16 : index
    %c0_224 = arith.constant 0 : index
    %216 = vector.load %arg16[%c16_223, %c0_224] : memref<96x128xf32, #tpu.memory_space<vmem>>, vector<16x128xf32>
    tpu.vector_store %arg16[%c16_223, %c0_224], %213 {strides = array<i32>} : memref<96x128xf32, #tpu.memory_space<vmem>>, vector<16x128xf32>,
    %c12 = arith.constant 12 : index
    %c0_225 = arith.constant 0 : index
    %c0_226 = arith.constant 0 : index
    %217 = vector.load %arg6[%c12, %c0_225, %c0_226] : memref<27x128x128xf32, #tpu.memory_space<vmem>>, vector<1x128x128xf32>
    %218 = vector.shape_cast %217 : vector<1x128x128xf32> to vector<128x128xf32>
    %c13_227 = arith.constant 13 : index
    %c0_228 = arith.constant 0 : index
    %c0_229 = arith.constant 0 : index
    %219 = vector.load %arg6[%c13_227, %c0_228, %c0_229] : memref<27x128x128xf32, #tpu.memory_space<vmem>>, vector<1x128x128xf32>
    %220 = vector.shape_cast %219 : vector<1x128x128xf32> to vector<128x128xf32>
    %c14 = arith.constant 14 : index
    %c0_230 = arith.constant 0 : index
    %c0_231 = arith.constant 0 : index
    %221 = vector.load %arg6[%c14, %c0_230, %c0_231] : memref<27x128x128xf32, #tpu.memory_space<vmem>>, vector<1x128x128xf32>
    %222 = vector.shape_cast %221 : vector<1x128x128xf32> to vector<128x128xf32>
    %c4_232 = arith.constant 4 : index
    %c0_233 = arith.constant 0 : index
    %c0_234 = arith.constant 0 : index
    %223 = vector.load %arg7[%c4_232, %c0_233, %c0_234] : memref<9x1x128xf32, #tpu.memory_space<vmem>>, vector<1x1x128xf32>
    %224 = vector.shape_cast %223 : vector<1x1x128xf32> to vector<1x128xf32>
    %c13_235 = arith.constant 13 : index
    %c0_236 = arith.constant 0 : index
    %225 = vector.load %arg16[%c13_235, %c0_236] : memref<96x128xf32, #tpu.memory_space<vmem>>, vector<16x128xf32>
    %cst_237 = arith.constant dense<0.000000e+00> : vector<16x128xf32>
    %226 = tpu.matmul %225, %218, %cst_237 {dimension_numbers = #tpu.dot_dimension_numbers<[1], [0], [0], [1], [0, 0, 1, 1], [], []>} : vector<16x128xf32>, vector<128x128xf32>, vector<16x128xf32> -> vector<16x128xf32>
    %c16_238 = arith.constant 16 : index
    %c0_239 = arith.constant 0 : index
    %227 = vector.load %arg16[%c16_238, %c0_239] : memref<96x128xf32, #tpu.memory_space<vmem>>, vector<16x128xf32>
    %cst_240 = arith.constant dense<0.000000e+00> : vector<16x128xf32>
    %228 = tpu.matmul %227, %220, %cst_240 {dimension_numbers = #tpu.dot_dimension_numbers<[1], [0], [0], [1], [0, 0, 1, 1], [], []>} : vector<16x128xf32>, vector<128x128xf32>, vector<16x128xf32> -> vector<16x128xf32>
    %229 = arith.addf %226, %228 : vector<16x128xf32>
    %c19_241 = arith.constant 19 : index
    %c0_242 = arith.constant 0 : index
    %230 = vector.load %arg16[%c19_241, %c0_242] : memref<96x128xf32, #tpu.memory_space<vmem>>, vector<16x128xf32>
    %cst_243 = arith.constant dense<0.000000e+00> : vector<16x128xf32>
    %231 = tpu.matmul %230, %222, %cst_243 {dimension_numbers = #tpu.dot_dimension_numbers<[1], [0], [0], [1], [0, 0, 1, 1], [], []>} : vector<16x128xf32>, vector<128x128xf32>, vector<16x128xf32> -> vector<16x128xf32>
    %232 = arith.addf %229, %231 : vector<16x128xf32>
    %233 = vector.broadcast %224 : vector<1x128xf32> to vector<16x128xf32>
    %234 = arith.addf %232, %233 : vector<16x128xf32>
    %cst_244 = arith.constant 0.000000e+00 : f32
    %235 = vector.broadcast %cst_244 : f32 to vector<16x128xf32>
    %236 = arith.maximumf %234, %235 : vector<16x128xf32>
    %c4_245 = arith.constant 4 : index
    %c0_246 = arith.constant 0 : index
    %c0_247 = arith.constant 0 : index
    %237 = vector.load %arg8[%c4_245, %c0_246, %c0_247] : memref<9x128x128xf32, #tpu.memory_space<vmem>>, vector<1x128x128xf32>
    %238 = vector.shape_cast %237 : vector<1x128x128xf32> to vector<128x128xf32>
    %cst_248 = arith.constant dense<0.000000e+00> : vector<16x128xf32>
    %239 = tpu.matmul %236, %238, %cst_248 {dimension_numbers = #tpu.dot_dimension_numbers<[1], [0], [0], [1], [0, 0, 1, 1], [], []>} : vector<16x128xf32>, vector<128x128xf32>, vector<16x128xf32> -> vector<16x128xf32>
    %c4_249 = arith.constant 4 : index
    %c0_250 = arith.constant 0 : index
    %c0_251 = arith.constant 0 : index
    %240 = vector.load %arg9[%c4_249, %c0_250, %c0_251] : memref<9x1x128xf32, #tpu.memory_space<vmem>>, vector<1x1x128xf32>
    %241 = vector.shape_cast %240 : vector<1x1x128xf32> to vector<1x128xf32>
    %242 = vector.broadcast %241 : vector<1x128xf32> to vector<16x128xf32>
    %243 = arith.addf %239, %242 : vector<16x128xf32>
    %244 = arith.addf %211, %243 : vector<16x128xf32>
    %cst_252 = arith.constant 0.000000e+00 : f32
    %245 = vector.broadcast %cst_252 : f32 to vector<16x128xf32>
    %246 = arith.maximumf %244, %245 : vector<16x128xf32>
    %cst_253 = arith.constant 0.000000e+00 : f32
    %247 = vector.broadcast %cst_253 : f32 to vector<96x128xf32>
    %c0_254 = arith.constant 0 : index
    %c0_255 = arith.constant 0 : index
    %248 = vector.load %arg16[%c0_254, %c0_255] : memref<96x128xf32, #tpu.memory_space<vmem>>, vector<96x128xf32>
    tpu.vector_store %arg16[%c0_254, %c0_255], %247 {strides = array<i32>} : memref<96x128xf32, #tpu.memory_space<vmem>>, vector<96x128xf32>,
    %c16_256 = arith.constant 16 : index
    %c0_257 = arith.constant 0 : index
    %249 = vector.load %arg16[%c16_256, %c0_257] : memref<96x128xf32, #tpu.memory_space<vmem>>, vector<16x128xf32>
    tpu.vector_store %arg16[%c16_256, %c0_257], %246 {strides = array<i32>} : memref<96x128xf32, #tpu.memory_space<vmem>>, vector<16x128xf32>,
    %c15_258 = arith.constant 15 : index
    %c0_259 = arith.constant 0 : index
    %c0_260 = arith.constant 0 : index
    %250 = vector.load %arg6[%c15_258, %c0_259, %c0_260] : memref<27x128x128xf32, #tpu.memory_space<vmem>>, vector<1x128x128xf32>
    %251 = vector.shape_cast %250 : vector<1x128x128xf32> to vector<128x128xf32>
    %c16_261 = arith.constant 16 : index
    %c0_262 = arith.constant 0 : index
    %c0_263 = arith.constant 0 : index
    %252 = vector.load %arg6[%c16_261, %c0_262, %c0_263] : memref<27x128x128xf32, #tpu.memory_space<vmem>>, vector<1x128x128xf32>
    %253 = vector.shape_cast %252 : vector<1x128x128xf32> to vector<128x128xf32>
    %c17_264 = arith.constant 17 : index
    %c0_265 = arith.constant 0 : index
    %c0_266 = arith.constant 0 : index
    %254 = vector.load %arg6[%c17_264, %c0_265, %c0_266] : memref<27x128x128xf32, #tpu.memory_space<vmem>>, vector<1x128x128xf32>
    %255 = vector.shape_cast %254 : vector<1x128x128xf32> to vector<128x128xf32>
    %c5_267 = arith.constant 5 : index
    %c0_268 = arith.constant 0 : index
    %c0_269 = arith.constant 0 : index
    %256 = vector.load %arg7[%c5_267, %c0_268, %c0_269] : memref<9x1x128xf32, #tpu.memory_space<vmem>>, vector<1x1x128xf32>
    %257 = vector.shape_cast %256 : vector<1x1x128xf32> to vector<1x128xf32>
    %c15_270 = arith.constant 15 : index
    %c0_271 = arith.constant 0 : index
    %258 = vector.load %arg16[%c15_270, %c0_271] : memref<96x128xf32, #tpu.memory_space<vmem>>, vector<16x128xf32>
    %cst_272 = arith.constant dense<0.000000e+00> : vector<16x128xf32>
    %259 = tpu.matmul %258, %251, %cst_272 {dimension_numbers = #tpu.dot_dimension_numbers<[1], [0], [0], [1], [0, 0, 1, 1], [], []>} : vector<16x128xf32>, vector<128x128xf32>, vector<16x128xf32> -> vector<16x128xf32>
    %c16_273 = arith.constant 16 : index
    %c0_274 = arith.constant 0 : index
    %260 = vector.load %arg16[%c16_273, %c0_274] : memref<96x128xf32, #tpu.memory_space<vmem>>, vector<16x128xf32>
    %cst_275 = arith.constant dense<0.000000e+00> : vector<16x128xf32>
    %261 = tpu.matmul %260, %253, %cst_275 {dimension_numbers = #tpu.dot_dimension_numbers<[1], [0], [0], [1], [0, 0, 1, 1], [], []>} : vector<16x128xf32>, vector<128x128xf32>, vector<16x128xf32> -> vector<16x128xf32>
    %262 = arith.addf %259, %261 : vector<16x128xf32>
    %c17_276 = arith.constant 17 : index
    %c0_277 = arith.constant 0 : index
    %263 = vector.load %arg16[%c17_276, %c0_277] : memref<96x128xf32, #tpu.memory_space<vmem>>, vector<16x128xf32>
    %cst_278 = arith.constant dense<0.000000e+00> : vector<16x128xf32>
    %264 = tpu.matmul %263, %255, %cst_278 {dimension_numbers = #tpu.dot_dimension_numbers<[1], [0], [0], [1], [0, 0, 1, 1], [], []>} : vector<16x128xf32>, vector<128x128xf32>, vector<16x128xf32> -> vector<16x128xf32>
    %265 = arith.addf %262, %264 : vector<16x128xf32>
    %266 = vector.broadcast %257 : vector<1x128xf32> to vector<16x128xf32>
    %267 = arith.addf %265, %266 : vector<16x128xf32>
    %cst_279 = arith.constant 0.000000e+00 : f32
    %268 = vector.broadcast %cst_279 : f32 to vector<16x128xf32>
    %269 = arith.maximumf %267, %268 : vector<16x128xf32>
    %c5_280 = arith.constant 5 : index
    %c0_281 = arith.constant 0 : index
    %c0_282 = arith.constant 0 : index
    %270 = vector.load %arg8[%c5_280, %c0_281, %c0_282] : memref<9x128x128xf32, #tpu.memory_space<vmem>>, vector<1x128x128xf32>
    %271 = vector.shape_cast %270 : vector<1x128x128xf32> to vector<128x128xf32>
    %cst_283 = arith.constant dense<0.000000e+00> : vector<16x128xf32>
    %272 = tpu.matmul %269, %271, %cst_283 {dimension_numbers = #tpu.dot_dimension_numbers<[1], [0], [0], [1], [0, 0, 1, 1], [], []>} : vector<16x128xf32>, vector<128x128xf32>, vector<16x128xf32> -> vector<16x128xf32>
    %c5_284 = arith.constant 5 : index
    %c0_285 = arith.constant 0 : index
    %c0_286 = arith.constant 0 : index
    %273 = vector.load %arg9[%c5_284, %c0_285, %c0_286] : memref<9x1x128xf32, #tpu.memory_space<vmem>>, vector<1x1x128xf32>
    %274 = vector.shape_cast %273 : vector<1x1x128xf32> to vector<1x128xf32>
    %275 = vector.broadcast %274 : vector<1x128xf32> to vector<16x128xf32>
    %276 = arith.addf %272, %275 : vector<16x128xf32>
    %277 = arith.addf %244, %276 : vector<16x128xf32>
    %cst_287 = arith.constant 0.000000e+00 : f32
    %278 = vector.broadcast %cst_287 : f32 to vector<96x128xf32>
    %c0_288 = arith.constant 0 : index
    %c0_289 = arith.constant 0 : index
    %279 = vector.load %arg16[%c0_288, %c0_289] : memref<96x128xf32, #tpu.memory_space<vmem>>, vector<96x128xf32>
    tpu.vector_store %arg16[%c0_288, %c0_289], %278 {strides = array<i32>} : memref<96x128xf32, #tpu.memory_space<vmem>>, vector<96x128xf32>,
    %c16_290 = arith.constant 16 : index
    %c0_291 = arith.constant 0 : index
    %280 = vector.load %arg16[%c16_290, %c0_291] : memref<96x128xf32, #tpu.memory_space<vmem>>, vector<16x128xf32>
    tpu.vector_store %arg16[%c16_290, %c0_291], %277 {strides = array<i32>} : memref<96x128xf32, #tpu.memory_space<vmem>>, vector<16x128xf32>,
    %c8_292 = arith.constant 8 : index
    %c0_293 = arith.constant 0 : index
    %c0_294 = arith.constant 0 : index
    %281 = vector.load %arg4[%c8_292, %c0_293, %c0_294] : memref<12x128x128xf32, #tpu.memory_space<vmem>>, vector<1x128x128xf32>
    %282 = vector.shape_cast %281 : vector<1x128x128xf32> to vector<128x128xf32>
    %c9_295 = arith.constant 9 : index
    %c0_296 = arith.constant 0 : index
    %c0_297 = arith.constant 0 : index
    %283 = vector.load %arg4[%c9_295, %c0_296, %c0_297] : memref<12x128x128xf32, #tpu.memory_space<vmem>>, vector<1x128x128xf32>
    %284 = vector.shape_cast %283 : vector<1x128x128xf32> to vector<128x128xf32>
    %c10_298 = arith.constant 10 : index
    %c0_299 = arith.constant 0 : index
    %c0_300 = arith.constant 0 : index
    %285 = vector.load %arg4[%c10_298, %c0_299, %c0_300] : memref<12x128x128xf32, #tpu.memory_space<vmem>>, vector<1x128x128xf32>
    %286 = vector.shape_cast %285 : vector<1x128x128xf32> to vector<128x128xf32>
    %c11_301 = arith.constant 11 : index
    %c0_302 = arith.constant 0 : index
    %c0_303 = arith.constant 0 : index
    %287 = vector.load %arg4[%c11_301, %c0_302, %c0_303] : memref<12x128x128xf32, #tpu.memory_space<vmem>>, vector<1x128x128xf32>
    %288 = vector.shape_cast %287 : vector<1x128x128xf32> to vector<128x128xf32>
    %c2_304 = arith.constant 2 : index
    %c0_305 = arith.constant 0 : index
    %c0_306 = arith.constant 0 : index
    %289 = vector.load %arg5[%c2_304, %c0_305, %c0_306] : memref<3x1x128xf32, #tpu.memory_space<vmem>>, vector<1x1x128xf32>
    %290 = vector.shape_cast %289 : vector<1x1x128xf32> to vector<1x128xf32>
    %c15_307 = arith.constant 15 : index
    %c0_308 = arith.constant 0 : index
    %291 = vector.load %arg16[%c15_307, %c0_308] : memref<96x128xf32, #tpu.memory_space<vmem>>, vector<15x128xf32>
    %cst_309 = arith.constant dense<0.000000e+00> : vector<15x128xf32>
    %292 = tpu.matmul %291, %282, %cst_309 {dimension_numbers = #tpu.dot_dimension_numbers<[1], [0], [0], [1], [0, 0, 1, 1], [], []>} : vector<15x128xf32>, vector<128x128xf32>, vector<15x128xf32> -> vector<15x128xf32>
    %c16_310 = arith.constant 16 : index
    %c0_311 = arith.constant 0 : index
    %293 = vector.load %arg16[%c16_310, %c0_311] : memref<96x128xf32, #tpu.memory_space<vmem>>, vector<15x128xf32>
    %cst_312 = arith.constant dense<0.000000e+00> : vector<15x128xf32>
    %294 = tpu.matmul %293, %284, %cst_312 {dimension_numbers = #tpu.dot_dimension_numbers<[1], [0], [0], [1], [0, 0, 1, 1], [], []>} : vector<15x128xf32>, vector<128x128xf32>, vector<15x128xf32> -> vector<15x128xf32>
    %295 = arith.addf %292, %294 : vector<15x128xf32>
    %c17_313 = arith.constant 17 : index
    %c0_314 = arith.constant 0 : index
    %296 = vector.load %arg16[%c17_313, %c0_314] : memref<96x128xf32, #tpu.memory_space<vmem>>, vector<15x128xf32>
    %cst_315 = arith.constant dense<0.000000e+00> : vector<15x128xf32>
    %297 = tpu.matmul %296, %286, %cst_315 {dimension_numbers = #tpu.dot_dimension_numbers<[1], [0], [0], [1], [0, 0, 1, 1], [], []>} : vector<15x128xf32>, vector<128x128xf32>, vector<15x128xf32> -> vector<15x128xf32>
    %298 = arith.addf %295, %297 : vector<15x128xf32>
    %c18_316 = arith.constant 18 : index
    %c0_317 = arith.constant 0 : index
    %299 = vector.load %arg16[%c18_316, %c0_317] : memref<96x128xf32, #tpu.memory_space<vmem>>, vector<15x128xf32>
    %cst_318 = arith.constant dense<0.000000e+00> : vector<15x128xf32>
    %300 = tpu.matmul %299, %288, %cst_318 {dimension_numbers = #tpu.dot_dimension_numbers<[1], [0], [0], [1], [0, 0, 1, 1], [], []>} : vector<15x128xf32>, vector<128x128xf32>, vector<15x128xf32> -> vector<15x128xf32>
    %301 = arith.addf %298, %300 : vector<15x128xf32>
    %302 = vector.broadcast %290 : vector<1x128xf32> to vector<15x128xf32>
    %303 = arith.addf %301, %302 : vector<15x128xf32>
    %c0_319 = arith.constant 0 : index
    %c0_320 = arith.constant 0 : index
    %304 = vector.load %arg14[%c0_319, %c0_320] : memref<8x15xf32, #tpu.memory_space<vmem>>, vector<8x15xf32>
    %cst_321 = arith.constant dense<0.000000e+00> : vector<8x128xf32>
    %305 = tpu.matmul %304, %303, %cst_321 {dimension_numbers = #tpu.dot_dimension_numbers<[1], [0], [0], [1], [0, 0, 1, 1], [], []>} : vector<8x15xf32>, vector<15x128xf32>, vector<8x128xf32> -> vector<8x128xf32>
    %cst_322 = arith.constant 0.000000e+00 : f32
    %306 = vector.broadcast %cst_322 : f32 to vector<8x128xf32>
    %307 = arith.maximumf %305, %306 : vector<8x128xf32>
    %cst_323 = arith.constant 0.000000e+00 : f32
    %308 = vector.broadcast %cst_323 : f32 to vector<96x128xf32>
    %c0_324 = arith.constant 0 : index
    %c0_325 = arith.constant 0 : index
    %309 = vector.load %arg16[%c0_324, %c0_325] : memref<96x128xf32, #tpu.memory_space<vmem>>, vector<96x128xf32>
    tpu.vector_store %arg16[%c0_324, %c0_325], %308 {strides = array<i32>} : memref<96x128xf32, #tpu.memory_space<vmem>>, vector<96x128xf32>,
    %c16_326 = arith.constant 16 : index
    %c0_327 = arith.constant 0 : index
    %310 = vector.load %arg16[%c16_326, %c0_327] : memref<96x128xf32, #tpu.memory_space<vmem>>, vector<8x128xf32>
    tpu.vector_store %arg16[%c16_326, %c0_327], %307 {strides = array<i32>} : memref<96x128xf32, #tpu.memory_space<vmem>>, vector<8x128xf32>,
    %c18_328 = arith.constant 18 : index
    %c0_329 = arith.constant 0 : index
    %c0_330 = arith.constant 0 : index
    %311 = vector.load %arg6[%c18_328, %c0_329, %c0_330] : memref<27x128x128xf32, #tpu.memory_space<vmem>>, vector<1x128x128xf32>
    %312 = vector.shape_cast %311 : vector<1x128x128xf32> to vector<128x128xf32>
    %c19_331 = arith.constant 19 : index
    %c0_332 = arith.constant 0 : index
    %c0_333 = arith.constant 0 : index
    %313 = vector.load %arg6[%c19_331, %c0_332, %c0_333] : memref<27x128x128xf32, #tpu.memory_space<vmem>>, vector<1x128x128xf32>
    %314 = vector.shape_cast %313 : vector<1x128x128xf32> to vector<128x128xf32>
    %c20 = arith.constant 20 : index
    %c0_334 = arith.constant 0 : index
    %c0_335 = arith.constant 0 : index
    %315 = vector.load %arg6[%c20, %c0_334, %c0_335] : memref<27x128x128xf32, #tpu.memory_space<vmem>>, vector<1x128x128xf32>
    %316 = vector.shape_cast %315 : vector<1x128x128xf32> to vector<128x128xf32>
    %c6_336 = arith.constant 6 : index
    %c0_337 = arith.constant 0 : index
    %c0_338 = arith.constant 0 : index
    %317 = vector.load %arg7[%c6_336, %c0_337, %c0_338] : memref<9x1x128xf32, #tpu.memory_space<vmem>>, vector<1x1x128xf32>
    %318 = vector.shape_cast %317 : vector<1x1x128xf32> to vector<1x128xf32>
    %c7_339 = arith.constant 7 : index
    %c0_340 = arith.constant 0 : index
    %319 = vector.load %arg16[%c7_339, %c0_340] : memref<96x128xf32, #tpu.memory_space<vmem>>, vector<8x128xf32>
    %cst_341 = arith.constant dense<0.000000e+00> : vector<8x128xf32>
    %320 = tpu.matmul %319, %312, %cst_341 {dimension_numbers = #tpu.dot_dimension_numbers<[1], [0], [0], [1], [0, 0, 1, 1], [], []>} : vector<8x128xf32>, vector<128x128xf32>, vector<8x128xf32> -> vector<8x128xf32>
    %c16_342 = arith.constant 16 : index
    %c0_343 = arith.constant 0 : index
    %321 = vector.load %arg16[%c16_342, %c0_343] : memref<96x128xf32, #tpu.memory_space<vmem>>, vector<8x128xf32>
    %cst_344 = arith.constant dense<0.000000e+00> : vector<8x128xf32>
    %322 = tpu.matmul %321, %314, %cst_344 {dimension_numbers = #tpu.dot_dimension_numbers<[1], [0], [0], [1], [0, 0, 1, 1], [], []>} : vector<8x128xf32>, vector<128x128xf32>, vector<8x128xf32> -> vector<8x128xf32>
    %323 = arith.addf %320, %322 : vector<8x128xf32>
    %c25_345 = arith.constant 25 : index
    %c0_346 = arith.constant 0 : index
    %324 = vector.load %arg16[%c25_345, %c0_346] : memref<96x128xf32, #tpu.memory_space<vmem>>, vector<8x128xf32>
    %cst_347 = arith.constant dense<0.000000e+00> : vector<8x128xf32>
    %325 = tpu.matmul %324, %316, %cst_347 {dimension_numbers = #tpu.dot_dimension_numbers<[1], [0], [0], [1], [0, 0, 1, 1], [], []>} : vector<8x128xf32>, vector<128x128xf32>, vector<8x128xf32> -> vector<8x128xf32>
    %326 = arith.addf %323, %325 : vector<8x128xf32>
    %327 = vector.broadcast %318 : vector<1x128xf32> to vector<8x128xf32>
    %328 = arith.addf %326, %327 : vector<8x128xf32>
    %cst_348 = arith.constant 0.000000e+00 : f32
    %329 = vector.broadcast %cst_348 : f32 to vector<8x128xf32>
    %330 = arith.maximumf %328, %329 : vector<8x128xf32>
    %c6_349 = arith.constant 6 : index
    %c0_350 = arith.constant 0 : index
    %c0_351 = arith.constant 0 : index
    %331 = vector.load %arg8[%c6_349, %c0_350, %c0_351] : memref<9x128x128xf32, #tpu.memory_space<vmem>>, vector<1x128x128xf32>
    %332 = vector.shape_cast %331 : vector<1x128x128xf32> to vector<128x128xf32>
    %cst_352 = arith.constant dense<0.000000e+00> : vector<8x128xf32>
    %333 = tpu.matmul %330, %332, %cst_352 {dimension_numbers = #tpu.dot_dimension_numbers<[1], [0], [0], [1], [0, 0, 1, 1], [], []>} : vector<8x128xf32>, vector<128x128xf32>, vector<8x128xf32> -> vector<8x128xf32>
    %c6_353 = arith.constant 6 : index
    %c0_354 = arith.constant 0 : index
    %c0_355 = arith.constant 0 : index
    %334 = vector.load %arg9[%c6_353, %c0_354, %c0_355] : memref<9x1x128xf32, #tpu.memory_space<vmem>>, vector<1x1x128xf32>
    %335 = vector.shape_cast %334 : vector<1x1x128xf32> to vector<1x128xf32>
    %336 = vector.broadcast %335 : vector<1x128xf32> to vector<8x128xf32>
    %337 = arith.addf %333, %336 : vector<8x128xf32>
    %338 = arith.addf %305, %337 : vector<8x128xf32>
    %cst_356 = arith.constant 0.000000e+00 : f32
    %339 = vector.broadcast %cst_356 : f32 to vector<8x128xf32>
    %340 = arith.maximumf %338, %339 : vector<8x128xf32>
    %cst_357 = arith.constant 0.000000e+00 : f32
    %341 = vector.broadcast %cst_357 : f32 to vector<96x128xf32>
    %c0_358 = arith.constant 0 : index
    %c0_359 = arith.constant 0 : index
    %342 = vector.load %arg16[%c0_358, %c0_359] : memref<96x128xf32, #tpu.memory_space<vmem>>, vector<96x128xf32>
    tpu.vector_store %arg16[%c0_358, %c0_359], %341 {strides = array<i32>} : memref<96x128xf32, #tpu.memory_space<vmem>>, vector<96x128xf32>,
    %c16_360 = arith.constant 16 : index
    %c0_361 = arith.constant 0 : index
    %343 = vector.load %arg16[%c16_360, %c0_361] : memref<96x128xf32, #tpu.memory_space<vmem>>, vector<8x128xf32>
    tpu.vector_store %arg16[%c16_360, %c0_361], %340 {strides = array<i32>} : memref<96x128xf32, #tpu.memory_space<vmem>>, vector<8x128xf32>,
    %c21 = arith.constant 21 : index
    %c0_362 = arith.constant 0 : index
    %c0_363 = arith.constant 0 : index
    %344 = vector.load %arg6[%c21, %c0_362, %c0_363] : memref<27x128x128xf32, #tpu.memory_space<vmem>>, vector<1x128x128xf32>
    %345 = vector.shape_cast %344 : vector<1x128x128xf32> to vector<128x128xf32>
    %c22 = arith.constant 22 : index
    %c0_364 = arith.constant 0 : index
    %c0_365 = arith.constant 0 : index
    %346 = vector.load %arg6[%c22, %c0_364, %c0_365] : memref<27x128x128xf32, #tpu.memory_space<vmem>>, vector<1x128x128xf32>
    %347 = vector.shape_cast %346 : vector<1x128x128xf32> to vector<128x128xf32>
    %c23 = arith.constant 23 : index
    %c0_366 = arith.constant 0 : index
    %c0_367 = arith.constant 0 : index
    %348 = vector.load %arg6[%c23, %c0_366, %c0_367] : memref<27x128x128xf32, #tpu.memory_space<vmem>>, vector<1x128x128xf32>
    %349 = vector.shape_cast %348 : vector<1x128x128xf32> to vector<128x128xf32>
    %c7_368 = arith.constant 7 : index
    %c0_369 = arith.constant 0 : index
    %c0_370 = arith.constant 0 : index
    %350 = vector.load %arg7[%c7_368, %c0_369, %c0_370] : memref<9x1x128xf32, #tpu.memory_space<vmem>>, vector<1x1x128xf32>
    %351 = vector.shape_cast %350 : vector<1x1x128xf32> to vector<1x128xf32>
    %c13_371 = arith.constant 13 : index
    %c0_372 = arith.constant 0 : index
    %352 = vector.load %arg16[%c13_371, %c0_372] : memref<96x128xf32, #tpu.memory_space<vmem>>, vector<8x128xf32>
    %cst_373 = arith.constant dense<0.000000e+00> : vector<8x128xf32>
    %353 = tpu.matmul %352, %345, %cst_373 {dimension_numbers = #tpu.dot_dimension_numbers<[1], [0], [0], [1], [0, 0, 1, 1], [], []>} : vector<8x128xf32>, vector<128x128xf32>, vector<8x128xf32> -> vector<8x128xf32>
    %c16_374 = arith.constant 16 : index
    %c0_375 = arith.constant 0 : index
    %354 = vector.load %arg16[%c16_374, %c0_375] : memref<96x128xf32, #tpu.memory_space<vmem>>, vector<8x128xf32>
    %cst_376 = arith.constant dense<0.000000e+00> : vector<8x128xf32>
    %355 = tpu.matmul %354, %347, %cst_376 {dimension_numbers = #tpu.dot_dimension_numbers<[1], [0], [0], [1], [0, 0, 1, 1], [], []>} : vector<8x128xf32>, vector<128x128xf32>, vector<8x128xf32> -> vector<8x128xf32>
    %356 = arith.addf %353, %355 : vector<8x128xf32>
    %c19_377 = arith.constant 19 : index
    %c0_378 = arith.constant 0 : index
    %357 = vector.load %arg16[%c19_377, %c0_378] : memref<96x128xf32, #tpu.memory_space<vmem>>, vector<8x128xf32>
    %cst_379 = arith.constant dense<0.000000e+00> : vector<8x128xf32>
    %358 = tpu.matmul %357, %349, %cst_379 {dimension_numbers = #tpu.dot_dimension_numbers<[1], [0], [0], [1], [0, 0, 1, 1], [], []>} : vector<8x128xf32>, vector<128x128xf32>, vector<8x128xf32> -> vector<8x128xf32>
    %359 = arith.addf %356, %358 : vector<8x128xf32>
    %360 = vector.broadcast %351 : vector<1x128xf32> to vector<8x128xf32>
    %361 = arith.addf %359, %360 : vector<8x128xf32>
    %cst_380 = arith.constant 0.000000e+00 : f32
    %362 = vector.broadcast %cst_380 : f32 to vector<8x128xf32>
    %363 = arith.maximumf %361, %362 : vector<8x128xf32>
    %c7_381 = arith.constant 7 : index
    %c0_382 = arith.constant 0 : index
    %c0_383 = arith.constant 0 : index
    %364 = vector.load %arg8[%c7_381, %c0_382, %c0_383] : memref<9x128x128xf32, #tpu.memory_space<vmem>>, vector<1x128x128xf32>
    %365 = vector.shape_cast %364 : vector<1x128x128xf32> to vector<128x128xf32>
    %cst_384 = arith.constant dense<0.000000e+00> : vector<8x128xf32>
    %366 = tpu.matmul %363, %365, %cst_384 {dimension_numbers = #tpu.dot_dimension_numbers<[1], [0], [0], [1], [0, 0, 1, 1], [], []>} : vector<8x128xf32>, vector<128x128xf32>, vector<8x128xf32> -> vector<8x128xf32>
    %c7_385 = arith.constant 7 : index
    %c0_386 = arith.constant 0 : index
    %c0_387 = arith.constant 0 : index
    %367 = vector.load %arg9[%c7_385, %c0_386, %c0_387] : memref<9x1x128xf32, #tpu.memory_space<vmem>>, vector<1x1x128xf32>
    %368 = vector.shape_cast %367 : vector<1x1x128xf32> to vector<1x128xf32>
    %369 = vector.broadcast %368 : vector<1x128xf32> to vector<8x128xf32>
    %370 = arith.addf %366, %369 : vector<8x128xf32>
    %371 = arith.addf %338, %370 : vector<8x128xf32>
    %cst_388 = arith.constant 0.000000e+00 : f32
    %372 = vector.broadcast %cst_388 : f32 to vector<8x128xf32>
    %373 = arith.maximumf %371, %372 : vector<8x128xf32>
    %cst_389 = arith.constant 0.000000e+00 : f32
    %374 = vector.broadcast %cst_389 : f32 to vector<96x128xf32>
    %c0_390 = arith.constant 0 : index
    %c0_391 = arith.constant 0 : index
    %375 = vector.load %arg16[%c0_390, %c0_391] : memref<96x128xf32, #tpu.memory_space<vmem>>, vector<96x128xf32>
    tpu.vector_store %arg16[%c0_390, %c0_391], %374 {strides = array<i32>} : memref<96x128xf32, #tpu.memory_space<vmem>>, vector<96x128xf32>,
    %c16_392 = arith.constant 16 : index
    %c0_393 = arith.constant 0 : index
    %376 = vector.load %arg16[%c16_392, %c0_393] : memref<96x128xf32, #tpu.memory_space<vmem>>, vector<8x128xf32>
    tpu.vector_store %arg16[%c16_392, %c0_393], %373 {strides = array<i32>} : memref<96x128xf32, #tpu.memory_space<vmem>>, vector<8x128xf32>,
    %c24 = arith.constant 24 : index
    %c0_394 = arith.constant 0 : index
    %c0_395 = arith.constant 0 : index
    %377 = vector.load %arg6[%c24, %c0_394, %c0_395] : memref<27x128x128xf32, #tpu.memory_space<vmem>>, vector<1x128x128xf32>
    %378 = vector.shape_cast %377 : vector<1x128x128xf32> to vector<128x128xf32>
    %c25_396 = arith.constant 25 : index
    %c0_397 = arith.constant 0 : index
    %c0_398 = arith.constant 0 : index
    %379 = vector.load %arg6[%c25_396, %c0_397, %c0_398] : memref<27x128x128xf32, #tpu.memory_space<vmem>>, vector<1x128x128xf32>
    %380 = vector.shape_cast %379 : vector<1x128x128xf32> to vector<128x128xf32>
    %c26 = arith.constant 26 : index
    %c0_399 = arith.constant 0 : index
    %c0_400 = arith.constant 0 : index
    %381 = vector.load %arg6[%c26, %c0_399, %c0_400] : memref<27x128x128xf32, #tpu.memory_space<vmem>>, vector<1x128x128xf32>
    %382 = vector.shape_cast %381 : vector<1x128x128xf32> to vector<128x128xf32>
    %c8_401 = arith.constant 8 : index
    %c0_402 = arith.constant 0 : index
    %c0_403 = arith.constant 0 : index
    %383 = vector.load %arg7[%c8_401, %c0_402, %c0_403] : memref<9x1x128xf32, #tpu.memory_space<vmem>>, vector<1x1x128xf32>
    %384 = vector.shape_cast %383 : vector<1x1x128xf32> to vector<1x128xf32>
    %c15_404 = arith.constant 15 : index
    %c0_405 = arith.constant 0 : index
    %385 = vector.load %arg16[%c15_404, %c0_405] : memref<96x128xf32, #tpu.memory_space<vmem>>, vector<8x128xf32>
    %cst_406 = arith.constant dense<0.000000e+00> : vector<8x128xf32>
    %386 = tpu.matmul %385, %378, %cst_406 {dimension_numbers = #tpu.dot_dimension_numbers<[1], [0], [0], [1], [0, 0, 1, 1], [], []>} : vector<8x128xf32>, vector<128x128xf32>, vector<8x128xf32> -> vector<8x128xf32>
    %c16_407 = arith.constant 16 : index
    %c0_408 = arith.constant 0 : index
    %387 = vector.load %arg16[%c16_407, %c0_408] : memref<96x128xf32, #tpu.memory_space<vmem>>, vector<8x128xf32>
    %cst_409 = arith.constant dense<0.000000e+00> : vector<8x128xf32>
    %388 = tpu.matmul %387, %380, %cst_409 {dimension_numbers = #tpu.dot_dimension_numbers<[1], [0], [0], [1], [0, 0, 1, 1], [], []>} : vector<8x128xf32>, vector<128x128xf32>, vector<8x128xf32> -> vector<8x128xf32>
    %389 = arith.addf %386, %388 : vector<8x128xf32>
    %c17_410 = arith.constant 17 : index
    %c0_411 = arith.constant 0 : index
    %390 = vector.load %arg16[%c17_410, %c0_411] : memref<96x128xf32, #tpu.memory_space<vmem>>, vector<8x128xf32>
    %cst_412 = arith.constant dense<0.000000e+00> : vector<8x128xf32>
    %391 = tpu.matmul %390, %382, %cst_412 {dimension_numbers = #tpu.dot_dimension_numbers<[1], [0], [0], [1], [0, 0, 1, 1], [], []>} : vector<8x128xf32>, vector<128x128xf32>, vector<8x128xf32> -> vector<8x128xf32>
    %392 = arith.addf %389, %391 : vector<8x128xf32>
    %393 = vector.broadcast %384 : vector<1x128xf32> to vector<8x128xf32>
    %394 = arith.addf %392, %393 : vector<8x128xf32>
    %cst_413 = arith.constant 0.000000e+00 : f32
    %395 = vector.broadcast %cst_413 : f32 to vector<8x128xf32>
    %396 = arith.maximumf %394, %395 : vector<8x128xf32>
    %c8_414 = arith.constant 8 : index
    %c0_415 = arith.constant 0 : index
    %c0_416 = arith.constant 0 : index
    %397 = vector.load %arg8[%c8_414, %c0_415, %c0_416] : memref<9x128x128xf32, #tpu.memory_space<vmem>>, vector<1x128x128xf32>
    %398 = vector.shape_cast %397 : vector<1x128x128xf32> to vector<128x128xf32>
    %cst_417 = arith.constant dense<0.000000e+00> : vector<8x128xf32>
    %399 = tpu.matmul %396, %398, %cst_417 {dimension_numbers = #tpu.dot_dimension_numbers<[1], [0], [0], [1], [0, 0, 1, 1], [], []>} : vector<8x128xf32>, vector<128x128xf32>, vector<8x128xf32> -> vector<8x128xf32>
    %c8_418 = arith.constant 8 : index
    %c0_419 = arith.constant 0 : index
    %c0_420 = arith.constant 0 : index
    %400 = vector.load %arg9[%c8_418, %c0_419, %c0_420] : memref<9x1x128xf32, #tpu.memory_space<vmem>>, vector<1x1x128xf32>
    %401 = vector.shape_cast %400 : vector<1x1x128xf32> to vector<1x128xf32>
    %402 = vector.broadcast %401 : vector<1x128xf32> to vector<8x128xf32>
    %403 = arith.addf %399, %402 : vector<8x128xf32>
    %404 = arith.addf %371, %403 : vector<8x128xf32>
    %cst_421 = arith.constant 0.000000e+00 : f32
    %405 = vector.broadcast %cst_421 : f32 to vector<96x128xf32>
    %c0_422 = arith.constant 0 : index
    %c0_423 = arith.constant 0 : index
    %406 = vector.load %arg16[%c0_422, %c0_423] : memref<96x128xf32, #tpu.memory_space<vmem>>, vector<96x128xf32>
    tpu.vector_store %arg16[%c0_422, %c0_423], %405 {strides = array<i32>} : memref<96x128xf32, #tpu.memory_space<vmem>>, vector<96x128xf32>,
    %c16_424 = arith.constant 16 : index
    %c0_425 = arith.constant 0 : index
    %407 = vector.load %arg16[%c16_424, %c0_425] : memref<96x128xf32, #tpu.memory_space<vmem>>, vector<8x128xf32>
    tpu.vector_store %arg16[%c16_424, %c0_425], %404 {strides = array<i32>} : memref<96x128xf32, #tpu.memory_space<vmem>>, vector<8x128xf32>,
    %c0_426 = arith.constant 0 : index
    %c0_427 = arith.constant 0 : index
    %c0_428 = arith.constant 0 : index
    %408 = vector.load %arg10[%c0_426, %c0_427, %c0_428] : memref<3x128x128xf32, #tpu.memory_space<vmem>>, vector<1x128x128xf32>
    %409 = vector.shape_cast %408 : vector<1x128x128xf32> to vector<128x128xf32>
    %c1_429 = arith.constant 1 : index
    %c0_430 = arith.constant 0 : index
    %c0_431 = arith.constant 0 : index
    %410 = vector.load %arg10[%c1_429, %c0_430, %c0_431] : memref<3x128x128xf32, #tpu.memory_space<vmem>>, vector<1x128x128xf32>
    %411 = vector.shape_cast %410 : vector<1x128x128xf32> to vector<128x128xf32>
    %c2_432 = arith.constant 2 : index
    %c0_433 = arith.constant 0 : index
    %c0_434 = arith.constant 0 : index
    %412 = vector.load %arg10[%c2_432, %c0_433, %c0_434] : memref<3x128x128xf32, #tpu.memory_space<vmem>>, vector<1x128x128xf32>
    %413 = vector.shape_cast %412 : vector<1x128x128xf32> to vector<128x128xf32>
    %c0_435 = arith.constant 0 : index
    %c0_436 = arith.constant 0 : index
    %414 = vector.load %arg11[%c0_435, %c0_436] : memref<1x128xf32, #tpu.memory_space<vmem>>, vector<1x128xf32>
    %c15_437 = arith.constant 15 : index
    %c0_438 = arith.constant 0 : index
    %415 = vector.load %arg16[%c15_437, %c0_438] : memref<96x128xf32, #tpu.memory_space<vmem>>, vector<8x128xf32>
    %cst_439 = arith.constant dense<0.000000e+00> : vector<8x128xf32>
    %416 = tpu.matmul %415, %409, %cst_439 {dimension_numbers = #tpu.dot_dimension_numbers<[1], [0], [0], [1], [0, 0, 1, 1], [], []>} : vector<8x128xf32>, vector<128x128xf32>, vector<8x128xf32> -> vector<8x128xf32>
    %c16_440 = arith.constant 16 : index
    %c0_441 = arith.constant 0 : index
    %417 = vector.load %arg16[%c16_440, %c0_441] : memref<96x128xf32, #tpu.memory_space<vmem>>, vector<8x128xf32>
    %cst_442 = arith.constant dense<0.000000e+00> : vector<8x128xf32>
    %418 = tpu.matmul %417, %411, %cst_442 {dimension_numbers = #tpu.dot_dimension_numbers<[1], [0], [0], [1], [0, 0, 1, 1], [], []>} : vector<8x128xf32>, vector<128x128xf32>, vector<8x128xf32> -> vector<8x128xf32>
    %419 = arith.addf %416, %418 : vector<8x128xf32>
    %c17_443 = arith.constant 17 : index
    %c0_444 = arith.constant 0 : index
    %420 = vector.load %arg16[%c17_443, %c0_444] : memref<96x128xf32, #tpu.memory_space<vmem>>, vector<8x128xf32>
    %cst_445 = arith.constant dense<0.000000e+00> : vector<8x128xf32>
    %421 = tpu.matmul %420, %413, %cst_445 {dimension_numbers = #tpu.dot_dimension_numbers<[1], [0], [0], [1], [0, 0, 1, 1], [], []>} : vector<8x128xf32>, vector<128x128xf32>, vector<8x128xf32> -> vector<8x128xf32>
    %422 = arith.addf %419, %421 : vector<8x128xf32>
    %423 = vector.broadcast %414 : vector<1x128xf32> to vector<8x128xf32>
    %424 = arith.addf %422, %423 : vector<8x128xf32>
    %c0_446 = arith.constant 0 : index
    %c0_447 = arith.constant 0 : index
    %c0_448 = arith.constant 0 : index
    %425 = vector.load %arg15[%c0_446, %c0_447, %c0_448] : memref<1x8x128xf32, #tpu.memory_space<vmem>>, vector<1x8x128xf32>
    %426 = vector.shape_cast %425 : vector<1x8x128xf32> to vector<8x128xf32>
    %427 = vector.shape_cast %424 : vector<8x128xf32> to vector<1x8x128xf32>
    tpu.vector_store %arg15[%c0_446, %c0_447, %c0_448], %427 {strides = array<i32>} : memref<1x8x128xf32, #tpu.memory_space<vmem>>, vector<1x8x128xf32>,
    return
  }
  func.func @transform_0(%arg0: i32) -> (i32, i32, i32) {
    %c0_i32 = arith.constant 0 : i32
    %c0_i32_0 = arith.constant 0 : i32
    %c0_i32_1 = arith.constant 0 : i32
    return %arg0, %c0_i32, %c0_i32_0 : i32, i32, i32
  }
  func.func @transform_1(%arg0: i32) -> (i32, i32, i32) {
    %c0_i32 = arith.constant 0 : i32
    %c0_i32_0 = arith.constant 0 : i32
    %c0_i32_1 = arith.constant 0 : i32
    %c0_i32_2 = arith.constant 0 : i32
    return %c0_i32, %c0_i32_0, %c0_i32_1 : i32, i32, i32
  }
  func.func @transform_2(%arg0: i32) -> (i32, i32) {
    %c0_i32 = arith.constant 0 : i32
    %c0_i32_0 = arith.constant 0 : i32
    %c0_i32_1 = arith.constant 0 : i32
    return %c0_i32, %c0_i32_0 : i32, i32
  }
  func.func @transform_3(%arg0: i32) -> (i32, i32, i32) {
    %c0_i32 = arith.constant 0 : i32
    %c0_i32_0 = arith.constant 0 : i32
    %c0_i32_1 = arith.constant 0 : i32
    %c0_i32_2 = arith.constant 0 : i32
    return %c0_i32, %c0_i32_0, %c0_i32_1 : i32, i32, i32
  }
  func.func @transform_4(%arg0: i32) -> (i32, i32, i32) {
    %c0_i32 = arith.constant 0 : i32
    %c0_i32_0 = arith.constant 0 : i32
    %c0_i32_1 = arith.constant 0 : i32
    %c0_i32_2 = arith.constant 0 : i32
    return %c0_i32, %c0_i32_0, %c0_i32_1 : i32, i32, i32
  }
  func.func @transform_5(%arg0: i32) -> (i32, i32, i32) {
    %c0_i32 = arith.constant 0 : i32
    %c0_i32_0 = arith.constant 0 : i32
    %c0_i32_1 = arith.constant 0 : i32
    %c0_i32_2 = arith.constant 0 : i32
    return %c0_i32, %c0_i32_0, %c0_i32_1 : i32, i32, i32
  }
  func.func @transform_6(%arg0: i32) -> (i32, i32, i32) {
    %c0_i32 = arith.constant 0 : i32
    %c0_i32_0 = arith.constant 0 : i32
    %c0_i32_1 = arith.constant 0 : i32
    %c0_i32_2 = arith.constant 0 : i32
    return %c0_i32, %c0_i32_0, %c0_i32_1 : i32, i32, i32
  }
  func.func @transform_7(%arg0: i32) -> (i32, i32, i32) {
    %c0_i32 = arith.constant 0 : i32
    %c0_i32_0 = arith.constant 0 : i32
    %c0_i32_1 = arith.constant 0 : i32
    %c0_i32_2 = arith.constant 0 : i32
    return %c0_i32, %c0_i32_0, %c0_i32_1 : i32, i32, i32
  }
  func.func @transform_8(%arg0: i32) -> (i32, i32, i32) {
    %c0_i32 = arith.constant 0 : i32
    %c0_i32_0 = arith.constant 0 : i32
    %c0_i32_1 = arith.constant 0 : i32
    %c0_i32_2 = arith.constant 0 : i32
    return %c0_i32, %c0_i32_0, %c0_i32_1 : i32, i32, i32
  }
  func.func @transform_9(%arg0: i32) -> (i32, i32, i32) {
    %c0_i32 = arith.constant 0 : i32
    %c0_i32_0 = arith.constant 0 : i32
    %c0_i32_1 = arith.constant 0 : i32
    %c0_i32_2 = arith.constant 0 : i32
    return %c0_i32, %c0_i32_0, %c0_i32_1 : i32, i32, i32
  }
  func.func @transform_10(%arg0: i32) -> (i32, i32) {
    %c0_i32 = arith.constant 0 : i32
    %c0_i32_0 = arith.constant 0 : i32
    %c0_i32_1 = arith.constant 0 : i32
    return %c0_i32, %c0_i32_0 : i32, i32
  }
  func.func @transform_11(%arg0: i32) -> (i32, i32) {
    %c0_i32 = arith.constant 0 : i32
    %c0_i32_0 = arith.constant 0 : i32
    %c0_i32_1 = arith.constant 0 : i32
    return %c0_i32, %c0_i32_0 : i32, i32
  }
  func.func @transform_12(%arg0: i32) -> (i32, i32) {
    %c0_i32 = arith.constant 0 : i32
    %c0_i32_0 = arith.constant 0 : i32
    %c0_i32_1 = arith.constant 0 : i32
    return %c0_i32, %c0_i32_0 : i32, i32
  }
  func.func @transform_13(%arg0: i32) -> (i32, i32) {
    %c0_i32 = arith.constant 0 : i32
    %c0_i32_0 = arith.constant 0 : i32
    %c0_i32_1 = arith.constant 0 : i32
    return %c0_i32, %c0_i32_0 : i32, i32
  }
  func.func @transform_14(%arg0: i32) -> (i32, i32, i32) {
    %c0_i32 = arith.constant 0 : i32
    %c0_i32_0 = arith.constant 0 : i32
    %c0_i32_1 = arith.constant 0 : i32
    return %arg0, %c0_i32, %c0_i32_0 : i32, i32, i32
  }
}

</mosaic_0001>

<bundles_post_ra>
// kernel: encoder_forward.1
= control target key start
LH: loop header
LB: loop body
LE: loop exit
PB: predicated region body
PF: predicated region fallthrough
CT: control target
= control target key end

     0   :  { %19 = vsyncpa [#allocation4], 0  ;;  %s4111_s0 = inlined_call_operand.vmem [shape: f32[1,64,128], index: 0, kind: input, shape index: {}]   ;;  %s4112_s1 = inlined_call_operand.hbm [shape: f32[3,128,128], index: 1, kind: input, shape index: {}]   ;;  %s4113_s2 = inlined_call_operand.hbm [shape: f32[1,128], index: 2, kind: input, shape index: {}]   ;;  %s4114_s3 = inlined_call_operand.hbm [shape: f32[12,128,128], index: 3, kind: input, shape index: {}]   ;;  %s4115_s4 = inlined_call_operand.hbm [shape: f32[3,1,128], index: 4, kind: input, shape index: {}]   ;;  %s4116_s5 = inlined_call_operand.hbm [shape: f32[27,128,128], index: 5, kind: input, shape index: {}]   ;;  %s4117_s6 = inlined_call_operand.hbm [shape: f32[9,1,128], index: 6, kind: input, shape index: {}]   ;;  %s4118_s7 = inlined_call_operand.hbm [shape: f32[9,128,128], index: 7, kind: input, shape index: {}]   ;;  %s4119_s8 = inlined_call_operand.hbm [shape: f32[9,1,128], index: 8, kind: input, shape index: {}]   ;;  %s4120_s9 = inlined_call_operand.hbm [shape: f32[3,128,128], index: 9, kind: input, shape index: {}]   ;;  %s4121_s10 = inlined_call_operand.hbm [shape: f32[1,128], index: 10, kind: input, shape index: {}]   ;;  %s4122_s11 = inlined_call_operand.hbm [shape: f32[32,63], index: 11, kind: input, shape index: {}]   ;;  %s4123_s12 = inlined_call_operand.hbm [shape: f32[16,31], index: 12, kind: input, shape index: {}]   ;;  %s4124_s13 = inlined_call_operand.hbm [shape: f32[8,15], index: 13, kind: input, shape index: {}]   ;;  %s4125_s14 = inlined_call_operand.vmem [shape: f32[1,8,128], index: 14, kind: output, shape index: {}]  }
   0x1   :  { %20 = vsyncpa [#allocation6], 0 }
   0x2   :  { %21 = vsyncpa [#allocation9], 0 }
   0x3   :  { %22 = vsyncpa [#allocation12], 0 }
   0x4   :  { %23 = vsyncpa [#allocation15], 0 }
   0x5   :  { %24 = vsyncpa [#allocation18], 0  ;;  %s46_s15 = sshll.u32 %s4113_s2, 4  ;;  %s47_s15 = int_to_ptr.hbm [resolvable:$true] %s46_s15 }
   0x6   :  { %25 = vsyncpa [#allocation21], 0  ;;  %s3730_s16 = smov [#allocation5]   ;;  %s69_s20 = sshll.u32 %s4115_s4, 4  ;;  %s70_s20 = int_to_ptr.hbm [resolvable:$true] %s69_s20 }
   0x7   :  { %s48_s17 = sshll.u32 %s3730_s16, 4  ;;  %s3731_s21 = smov [#allocation8]   ;;  %s49_s17 = int_to_ptr.vmem [resolvable:$true] %s48_s17 }
   0x8   :  { %51 = dma.hbm_to_vmem [thread:$0]  %s47_s15, 16, %s49_s17, [#allocation6]  }
   0x9   :  { %s71_s22 = sshll.u32 %s3731_s21, 4  ;;  %s3732_s23 = smov 16   ;;  %s72_s22 = int_to_ptr.vmem [resolvable:$true] %s71_s22 }
   0xa   :  { %s3733_s24 = smov 1   ;;  %s95_s2 = sshll.u32 %s4117_s6, 4  ;;  %s96_s2 = int_to_ptr.hbm [resolvable:$true] %s95_s2 }
   0xb   :  { %77 = dma.hbm_to_vmem [thread:$0]  %s70_s20, 48, %s72_s22, [#allocation9], %s3732_s23, %s3732_s23, %s3733_s24  }
   0xc   :  { %s3734_s27 = smov [#allocation11]   ;;  %s121_s4 = sshll.u32 %s4119_s8, 4  ;;  %s122_s4 = int_to_ptr.hbm [resolvable:$true] %s121_s4 }
   0xd   :  { %s97_s28 = sshll.u32 %s3734_s27, 4  ;;  %s3735_s15 = smov [#allocation14]   ;;  %s98_s28 = int_to_ptr.vmem [resolvable:$true] %s97_s28 }
   0xe   :  { %103 = dma.hbm_to_vmem [thread:$0]  %s96_s2, 144, %s98_s28, [#allocation12], %s3732_s23, %s3732_s23, %s3733_s24  }
   0xf   :  { %s123_s16 = sshll.u32 %s3735_s15, 4  ;;  %s148_s19 = sshll.u32 %s4121_s10, 4  ;;  %s124_s16 = int_to_ptr.vmem [resolvable:$true] %s123_s16  ;;  %s149_s19 = int_to_ptr.hbm [resolvable:$true] %s148_s19 }
  0x10   :  { %129 = dma.hbm_to_vmem [thread:$0]  %s122_s4, 144, %s124_s16, [#allocation15], %s3732_s23, %s3732_s23, %s3733_s24  }
  0x11   :  { %s3736_s6 = smov [#allocation17]   ;;  %s171_s25 = sshll.u32 %s4123_s12, 4  ;;  %s172_s25 = int_to_ptr.hbm [resolvable:$true] %s171_s25 }
  0x12   :  { %s150_s20 = sshll.u32 %s3736_s6, 4  ;;  %s3737_s8 = smov [#allocation20]   ;;  %s151_s20 = int_to_ptr.vmem [resolvable:$true] %s150_s20 }
  0x13   :  { %153 = dma.hbm_to_vmem [thread:$0]  %s149_s19, 16, %s151_s20, [#allocation18]  }
  0x14   :  { %s173_s26 = sshll.u32 %s3737_s8, 4  ;;  %s32_s28 = sshll.u32 %s4112_s1, 4  ;;  %s174_s26 = int_to_ptr.vmem [resolvable:$true] %s173_s26  ;;  %s33_s28 = int_to_ptr.hbm [resolvable:$true] %s32_s28 }
  0x15   :  { %s3738_s10 = smov 128   ;;  %s3739_s29 = smov 8  }
  0x16   :  { %179 = dma.hbm_to_vmem [thread:$0]  %s172_s25, 256, %s174_s26, [#allocation21], %s3738_s10, %s3738_s10, %s3739_s29  }
  0x17   :  { %s56_s12 = sshll.u32 %s4114_s3, 4  ;;  %s3740_s30 = smov [#allocation3]   ;;  %s57_s12 = int_to_ptr.hbm [resolvable:$true] %s56_s12 }
  0x18   :  { %s34_s4 = sshll.u32 %s3740_s30, 4  ;;  %s3741_s1 = smov [#allocation7]   ;;  %s35_s4 = int_to_ptr.vmem [resolvable:$true] %s34_s4 }
  0x19   :  { %40 = dma.hbm_to_vmem [thread:$0]  %s33_s28, 6144, %s35_s4, [#allocation4], %s3738_s10, %s3738_s10, %s3739_s29  }
  0x1a   :  { %s58_s15 = sshll.u32 %s3741_s1, 4  ;;  %s82_s18 = sshll.u32 %s4116_s5, 4  ;;  %s59_s15 = int_to_ptr.vmem [resolvable:$true] %s58_s15  ;;  %s83_s18 = int_to_ptr.hbm [resolvable:$true] %s82_s18 }
  0x1b   :  { %64 = dma.hbm_to_vmem [thread:$0]  %s57_s12, 24576, %s59_s15, [#allocation6], %s3738_s10, %s3738_s10, %s3739_s29  }
  0x1c   :  { %s108_s6 = sshll.u32 %s4118_s7, 4  ;;  %s3742_s20 = smov [#allocation10]   ;;  %s109_s6 = int_to_ptr.hbm [resolvable:$true] %s108_s6 }
  0x1d   :  { %s84_s21 = sshll.u32 %s3742_s20, 4  ;;  %s3743_s22 = smov [#allocation13]   ;;  %s85_s21 = int_to_ptr.vmem [resolvable:$true] %s84_s21 }
  0x1e   :  { %90 = dma.hbm_to_vmem [thread:$0]  %s83_s18, 55296, %s85_s21, [#allocation9], %s3738_s10, %s3738_s10, %s3739_s29  }
  0x1f   :  { %s110_s5 = sshll.u32 %s3743_s22, 4  ;;  %s134_s26 = sshll.u32 %s4120_s9, 4  ;;  %s111_s5 = int_to_ptr.vmem [resolvable:$true] %s110_s5  ;;  %s135_s26 = int_to_ptr.hbm [resolvable:$true] %s134_s26 }
  0x20   :  { %116 = dma.hbm_to_vmem [thread:$0]  %s109_s6, 18432, %s111_s5, [#allocation12], %s3738_s10, %s3738_s10, %s3739_s29  }
  0x21   :  { %s158_s27 = sshll.u32 %s4122_s11, 4  ;;  %s3744_s28 = smov [#allocation16]   ;;  %s159_s27 = int_to_ptr.hbm [resolvable:$true] %s158_s27 }
  0x22   :  { %s136_s23 = sshll.u32 %s3744_s28, 4  ;;  %s3745_s24 = smov [#allocation19]   ;;  %s137_s23 = int_to_ptr.vmem [resolvable:$true] %s136_s23 }
  0x23   :  { %142 = dma.hbm_to_vmem [thread:$0]  %s135_s26, 6144, %s137_s23, [#allocation15], %s3738_s10, %s3738_s10, %s3739_s29  }
  0x24   :  { %s160_s9 = sshll.u32 %s3745_s24, 4  ;;  %s185_s4 = sshll.u32 %s4124_s13, 4  ;;  %s161_s9 = int_to_ptr.vmem [resolvable:$true] %s160_s9  ;;  %s186_s4 = int_to_ptr.hbm [resolvable:$true] %s185_s4 }
  0x25   :  { %166 = dma.hbm_to_vmem [thread:$0]  %s159_s27, 512, %s161_s9, [#allocation18], %s3738_s10, %s3738_s10, %s3739_s29  }
  0x26   :  { %s3746_s11 = smov [#allocation22]  }
  0x27   :  { %s187_s1 = sshll.u32 %s3746_s11, 4  ;;  %s188_s1 = int_to_ptr.vmem [resolvable:$true] %s187_s1 }
  0x28   :  { %190 = dma.hbm_to_vmem [thread:$0]  %s186_s4, 128, %s188_s1, [#allocation21]  }
  0x29   :  { %3716 = dma.done.wait [#allocation4], 6144  }
  0x2a   :  { %3717 = vsyncadd [#allocation4], 4294961152 }
  0x2b   :  { %3718 = dma.done.wait [#allocation6], 24592  }
  0x2c   :  { %3719 = vsyncadd [#allocation6], 4294942704 }
  0x2d   :  { %3720 = dma.done.wait [#allocation9], 55344  }
  0x2e   :  { %3721 = vsyncadd [#allocation9], 4294911952 }
  0x2f   :  { %3722 = dma.done.wait [#allocation12], 18576  }
  0x30   :  { %3723 = vsyncadd [#allocation12], 4294948720 }
  0x31   :  { %3724 = dma.done.wait [#allocation15], 6288  }
  0x32   :  { %3725 = vsyncadd [#allocation15], 4294961008 }
  0x33   :  { %3726 = dma.done.wait [#allocation18], 528  }
  0x34   :  { %3727 = vsyncadd [#allocation18], 4294966768 }
  0x35   :  { %3728 = dma.done.wait [#allocation21], 384  }
  0x36   :  { %3729 = vsyncadd [#allocation21], 4294966912  ;;  %v3747_v0 = vmov 0.0   ;;  %v320_v1 = vld [vmem:[#allocation3 + $0x178] sm:$0xff]  ;;  %v319_v2 = vld [vmem:[#allocation3 + $0x170] sm:$0xff]  ;;  %vm824_vm0 = vcmask 1046528  }
  0x37   :  { %3216 = vst [vmem:[#allocation2 + $0x58] sm:$0xff] %v3747_v0  ;;  %v303_v3 = vld [vmem:[#allocation3 + $0xf8] sm:$0xff]  ;;  %428 = vmatpush.msra.mxu2 %v320_v1  ;;  %v302_v5 = vld [vmem:[#allocation3 + $0xf0] sm:$0xff]  ;;  %v318_v6 = vld [vmem:[#allocation3 + $0x168] sm:$0xff]  ;;  %vm811_vm1 = vcmask 515072   ;;  %vm1814_vm2 = vcmask 252928  }
  0x38   :  { %252 = vst [vmem:[#allocation2 + $0x8] sm:$0xff] %v3747_v0  ;;  %338 = vmatpush.msra.mxu0 %v303_v3  ;;  %v286_v4 = vld [vmem:[#allocation3 + $0x78] sm:$0xff]  ;;  %v285_v7 = vld [vmem:[#allocation3 + $0x70] sm:$0xff]  ;;  %v301_v8 = vld [vmem:[#allocation3 + $0xe8] sm:$0xff]  ;;  %vm2641_vm3 = vcmask 121856  }
  0x39   :  { %261 = vst [vmem:[#allocation2 + $0x50] sm:$0xff] %v3747_v0  ;;  %379 = vmatpush.msra.mxu1 %v286_v4  ;;  %429 = vmatpush.msra.mxu2 %v319_v2  ;;  %v284_v9 = vld [vmem:[#allocation3 + $0x68] sm:$0xff]  ;;  %v317_v10 = vld [vmem:[#allocation3 + $0x160] sm:$0xff]  ;;  %v316_v13 = vld [vmem:[#allocation3 + $0x158] sm:$0xff] }
  0x3a   :  { %861 = vst [vmem:[#allocation2] sm:$0xff] %v3747_v0  ;;  %339 = vmatpush.msra.mxu0 %v302_v5  ;;  %v300_v11 = vld [vmem:[#allocation3 + $0xe0] sm:$0xff]  ;;  %v299_v14 = vld [vmem:[#allocation3 + $0xd8] sm:$0xff]  ;;  %v315_v16 = vld [vmem:[#allocation3 + $0x150] sm:$0xff] }
  0x3b   :  { %380 = vmatpush.msra.mxu1 %v285_v7  ;;  %430 = vmatpush.msra.mxu2 %v318_v6  ;;  %v283_v12 = vld [vmem:[#allocation3 + $0x60] sm:$0xff]  ;;  %v282_v15 = vld [vmem:[#allocation3 + $0x58] sm:$0xff]  ;;  %v298_v17 = vld [vmem:[#allocation3 + $0xd0] sm:$0xff] }
  0x3c   :  { %340 = vmatpush.msra.mxu0 %v301_v8  ;;  %v281_v18 = vld [vmem:[#allocation3 + $0x50] sm:$0xff]  ;;  %v314_v19 = vld [vmem:[#allocation3 + $0x148] sm:$0xff]  ;;  %v313_v22 = vld [vmem:[#allocation3 + $0x140] sm:$0xff] }
  0x3d   :  { %381 = vmatpush.msra.mxu1 %v284_v9  ;;  %431 = vmatpush.msra.mxu2 %v317_v10  ;;  %v297_v20 = vld [vmem:[#allocation3 + $0xc8] sm:$0xff]  ;;  %v296_v23 = vld [vmem:[#allocation3 + $0xc0] sm:$0xff]  ;;  %v312_v24 = vld [vmem:[#allocation3 + $0x138] sm:$0xff] }
  0x3e   :  { %341 = vmatpush.msra.mxu0 %v300_v11  ;;  %v280_v21 = vld [vmem:[#allocation3 + $0x48] sm:$0xff]  ;;  %v279_v25 = vld [vmem:[#allocation3 + $0x40] sm:$0xff]  ;;  %v311_v26 = vld [vmem:[#allocation3 + $0x130] sm:$0xff] }
  0x3f   :  { %382 = vmatpush.msra.mxu1 %v283_v12  ;;  %432 = vmatpush.msra.mxu2 %v316_v13  ;;  %v295_v27 = vld [vmem:[#allocation3 + $0xb8] sm:$0xff]  ;;  %v3890_v28 = vld [vmem:[%s4111_s0] sm:$0xff]  ;;  %v294_v30 = vld [vmem:[#allocation3 + $0xb0] sm:$0xff] }
  0x40   :  { %342 = vmatpush.msra.mxu0 %v299_v14  ;;  %v278_v29 = vld [vmem:[#allocation3 + $0x38] sm:$0xff]  ;;  %v3895_v31 = vld [vmem:[%s4111_s0 + $0x8] sm:$0xff]  ;;  %263 = vst [vmem:[#allocation2 + $0x10] sm:$0xff] %v3890_v28  ;;  %v277_v33 = vld [vmem:[#allocation3 + $0x30] sm:$0xff] }
  0x41   :  { %383 = vmatpush.msra.mxu1 %v282_v15  ;;  %433 = vmatpush.msra.mxu2 %v315_v16  ;;  %v310_v32 = vld [vmem:[#allocation3 + $0x128] sm:$0xff]  ;;  %264 = vst [vmem:[#allocation2 + $0x18] sm:$0xff] %v3895_v31  ;;  %v3902_v35 = vld [vmem:[%s4111_s0 + $0x10] sm:$0xff]  ;;  %v3908_v37 = vld [vmem:[%s4111_s0 + $0x18] sm:$0xff] }
  0x42   :  { %343 = vmatpush.msra.mxu0 %v298_v17  ;;  %v293_v34 = vld [vmem:[#allocation3 + $0xa8] sm:$0xff]  ;;  %265 = vst [vmem:[#allocation2 + $0x20] sm:$0xff] %v3902_v35  ;;  %v3913_v38 = vld [vmem:[%s4111_s0 + $0x20] sm:$0xff]  ;;  %v308_v42 = vld [vmem:[#allocation3 + $0x118] sm:$0xff] }
  0x43   :  { %384 = vmatpush.msra.mxu1 %v281_v18  ;;  %434 = vmatpush.msra.mxu2 %v314_v19  ;;  %v276_v36 = vld [vmem:[#allocation3 + $0x28] sm:$0xff]  ;;  %v309_v39 = vld [vmem:[#allocation3 + $0x120] sm:$0xff]  ;;  %266 = vst [vmem:[#allocation2 + $0x28] sm:$0xff] %v3908_v37  ;;  %v291_v43 = vld [vmem:[#allocation3 + $0x98] sm:$0xff] }
  0x44   :  { %344 = vmatpush.msra.mxu0 %v297_v20  ;;  %v292_v40 = vld [vmem:[#allocation3 + $0xa0] sm:$0xff]  ;;  %267 = vst [vmem:[#allocation2 + $0x30] sm:$0xff] %v3913_v38  ;;  %v307_v45 = vld [vmem:[#allocation3 + $0x110] sm:$0xff]  ;;  %v274_v46 = vld [vmem:[#allocation3 + $0x18] sm:$0xff] }
  0x45   :  { %385 = vmatpush.msra.mxu1 %v280_v21  ;;  %435 = vmatpush.msra.mxu2 %v313_v22  ;;  %v275_v41 = vld [vmem:[#allocation3 + $0x20] sm:$0xff]  ;;  %v3921_v47 = vld [vmem:[%s4111_s0 + $0x28] sm:$0xff]  ;;  %v290_v49 = vld [vmem:[#allocation3 + $0x90] sm:$0xff] }
  0x46   :  { %345 = vmatpush.msra.mxu0 %v296_v23  ;;  %v306_v48 = vld [vmem:[#allocation3 + $0x108] sm:$0xff]  ;;  %268 = vst [vmem:[#allocation2 + $0x38] sm:$0xff] %v3921_v47  ;;  %v273_v50 = vld [vmem:[#allocation3 + $0x10] sm:$0xff]  ;;  %v305_v52 = vld [vmem:[#allocation3 + $0x100] sm:$0xff] }
  0x47   :  { %386 = vmatpush.msra.mxu1 %v279_v25  ;;  %436 = vmatpush.msra.mxu2 %v312_v24  ;;  %v322_v44 = vld [vmem:[#allocation2 + $0xf] sm:$0xff]  ;;  %v288_v54 = vld [vmem:[#allocation3 + $0x80] sm:$0xff]  ;;  %v3934_v60 = vld [vmem:[%s4111_s0 + $0x38] sm:$0xff] }
  0x48   :  { %346 = vmatpush.msra.mxu0 %v295_v27  ;;  %497 = vst [vmem:[#allocation2 + $0x8] sm:$0xff] %v3747_v0  ;;  %v289_v51 = vld [vmem:[#allocation3 + $0x88] sm:$0xff]  ;;  %v420_v55 = vld [vmem:[#allocation2 + $0x11] sm:$0xff]  ;;  %v271_v56 = vld [vmem:[#allocation3] sm:$0xff] }
  0x49   :  { %387 = vmatpush.msra.mxu1 %v278_v29  ;;  %437 = vmatpush.msra.mxu2 %v311_v26  ;;  %v272_v53 = vld [vmem:[#allocation3 + $0x8] sm:$0xff]  ;;  %v3927_v57 = vld [vmem:[%s4111_s0 + $0x30] sm:$0xff]  ;;  %v421_v58 = vld [vmem:[#allocation2 + $0x19] sm:$0xff]  ;;  %270 = vst [vmem:[#allocation2 + $0x48] sm:$0xff] %v3934_v60 }
  0x4a   :  { %347 = vmatpush.msra.mxu0 %v294_v30  ;;  %269 = vst [vmem:[#allocation2 + $0x40] sm:$0xff] %v3927_v57  ;;  %v323_v59 = vld [vmem:[#allocation2 + $0x17] sm:$0xff]  ;;  %v422_v61 = vld [vmem:[#allocation2 + $0x21] sm:$0xff]  ;;  %v546_v7 = vld [vmem:[#allocation7 + $0xe8] sm:$0xff] }
  0x4b   :  { %388 = vmatpush.msra.mxu1 %v277_v33  ;;  %438 = vmatpush.msra.mxu2 %v310_v32  ;;  %v324_v62 = vld [vmem:[#allocation2 + $0x1f] sm:$0xff]  ;;  %v423_v1 = vld [vmem:[#allocation2 + $0x29] sm:$0xff]  ;;  %v547_v5 = vld [vmem:[#allocation7 + $0xf0] sm:$0xff] }
  0x4c   :  { %348 = vmatpush.msra.mxu0 %v293_v34  ;;  %v325_v2 = vld [vmem:[#allocation2 + $0x27] sm:$0xff]  ;;  %v548_v3 = vld [vmem:[#allocation7 + $0xf8] sm:$0xff]  ;;  %v530_v6 = vld [vmem:[#allocation7 + $0x70] sm:$0xff] }
  0x4d   :  { %389 = vmatpush.msra.mxu1 %v276_v36  ;;  %439 = vmatpush.msra.mxu2 %v309_v39  ;;  %v531_v4 = vld [vmem:[#allocation7 + $0x78] sm:$0xff]  ;;  %v529_v8 = vld [vmem:[#allocation7 + $0x68] sm:$0xff]  ;;  %v545_v12 = vld [vmem:[#allocation7 + $0xe0] sm:$0xff] }
  0x4e   :  { %349 = vmatpush.msra.mxu0 %v292_v40  ;;  %600 = vmatpush.msra.mxu3 %v548_v3  ;;  %v565_v9 = vld [vmem:[#allocation7 + $0x178] sm:$0xff]  ;;  %v424_v11 = vld [vmem:[#allocation2 + $0x31] sm:$0xff]  ;;  %v528_v16 = vld [vmem:[#allocation7 + $0x60] sm:$0xff] }
  0x4f   :  { %390 = vmatpush.msra.mxu1 %v275_v41  ;;  %440 = vmatpush.msra.mxu2 %v308_v42  ;;  %v582_v10 = vld [vmem:[#allocation7 + $0x1f8] sm:$0xff]  ;;  %v564_v13 = vld [vmem:[#allocation7 + $0x170] sm:$0xff]  ;;  %v563_v18 = vld [vmem:[#allocation7 + $0x168] sm:$0xff] }
  0x50   :  { %350 = vmatpush.msra.mxu0 %v291_v43  ;;  %v427_v63 = vld [vmem:[#allocation2 + $0x49] sm:$0xff]  ;;  %601 = vmatpush.msra.mxu3 %v547_v5  ;;  %v581_v15 = vld [vmem:[#allocation7 + $0x1f0] sm:$0xff]  ;;  %v544_v17 = vld [vmem:[#allocation7 + $0xd8] sm:$0xff] }
  0x51   :  { %391 = vmatpush.msra.mxu1 %v274_v46  ;;  %441 = vmatpush.msra.mxu2 %v307_v45  ;;  %506 = vst [vmem:[#allocation2 + $0x50] sm:$0xff] %v3747_v0  ;;  %v326_v14 = vld [vmem:[#allocation2 + $0x2f] sm:$0xff]  ;;  %v527_v20 = vld [vmem:[#allocation7 + $0x58] sm:$0xff]  ;;  %v329_v29 = vld [vmem:[#allocation2 + $0x47] sm:$0xff] }
  0x52   :  { %351 = vmatpush.msra.mxu0 %v290_v49  ;;  %602 = vmatpush.msra.mxu3 %v546_v7  ;;  %v580_v19 = vld [vmem:[#allocation7 + $0x1e8] sm:$0xff]  ;;  %v543_v21 = vld [vmem:[#allocation7 + $0xd0] sm:$0xff]  ;;  %v426_v27 = vld [vmem:[#allocation2 + $0x41] sm:$0xff] }
  0x53   :  { %392 = vmatpush.msra.mxu1 %v273_v50  ;;  %442 = vmatpush.msra.mxu2 %v306_v48  ;;  %v526_v22 = vld [vmem:[#allocation7 + $0x50] sm:$0xff]  ;;  %v542_v23 = vld [vmem:[#allocation7 + $0xc8] sm:$0xff]  ;;  %v541_v30 = vld [vmem:[#allocation7 + $0xc0] sm:$0xff] }
  0x54   :  { %352 = vmatpush.msra.mxu0 %v289_v51  ;;  %603 = vmatpush.msra.mxu3 %v545_v12  ;;  %v425_v24 = vld [vmem:[#allocation2 + $0x39] sm:$0xff]  ;;  %v525_v25 = vld [vmem:[#allocation7 + $0x48] sm:$0xff]  ;;  %v524_v34 = vld [vmem:[#allocation7 + $0x40] sm:$0xff] }
  0x55   :  { %393 = vmatpush.msra.mxu1 %v272_v53  ;;  %443 = vmatpush.msra.mxu2 %v305_v52  ;;  %v327_v26 = vld [vmem:[#allocation2 + $0x37] sm:$0xff]  ;;  %v538_v33 = vld [vmem:[#allocation7 + $0xa8] sm:$0xff]  ;;  %v579_v36 = vld [vmem:[#allocation7 + $0x1e0] sm:$0xff] }
  0x56   :  { %353 = vmatpush.msra.mxu0 %v288_v54  ;;  %444 = vmatmul.f32.vlgmr.msra.gmra.mxu2 %v420_v55  ;;  %v539_v32 = vld [vmem:[#allocation7 + $0xb0] sm:$0xff]  ;;  %v561_v39 = vld [vmem:[#allocation7 + $0x158] sm:$0xff]  ;;  %v521_v46 = vld [vmem:[#allocation7 + $0x28] sm:$0xff] }
  0x57   :  { %394 = vmatpush.msra.mxu1 %v271_v56  ;;  %354 = vmatmul.f32.vlgmr.msra.gmra.mxu0 %v3890_v28  ;;  %v328_v28 = vld [vmem:[#allocation2 + $0x3f] sm:$0xff]  ;;  %v522_v42 = vld [vmem:[#allocation7 + $0x30] sm:$0xff]  ;;  %v576_v48 = vld [vmem:[#allocation7 + $0x1c8] sm:$0xff] }
  0x58   :  { %395 = vmatmul.f32.vlgmr.msra.gmra.mxu1 %v322_v44  ;;  %641 = vmatpush.msrb.mxu0 %v531_v4  ;;  %v578_v40 = vld [vmem:[#allocation7 + $0x1d8] sm:$0xff]  ;;  %v560_v43 = vld [vmem:[#allocation7 + $0x150] sm:$0xff]  ;;  %v534_v49 = vld [vmem:[#allocation7 + $0x88] sm:$0xff] }
  0x59   :  { %690 = vmatpush.msrb.mxu1 %v565_v9  ;;  %747 = vmatpush.msrb.mxu2 %v582_v10  ;;  %v536_v41 = vld [vmem:[#allocation7 + $0x98] sm:$0xff]  ;;  %v577_v44 = vld [vmem:[#allocation7 + $0x1d0] sm:$0xff]  ;;  %v520_v50 = vld [vmem:[#allocation7 + $0x20] sm:$0xff] }
  0x5a   :  { %642 = vmatpush.msrb.mxu0 %v530_v6  ;;  %604 = vmatpush.msra.mxu3 %v544_v17  ;;  %v535_v45 = vld [vmem:[#allocation7 + $0x90] sm:$0xff]  ;;  %v558_v51 = vld [vmem:[#allocation7 + $0x140] sm:$0xff]  ;;  %v519_v54 = vld [vmem:[#allocation7 + $0x18] sm:$0xff] }
  0x5b   :  { %691 = vmatpush.msrb.mxu1 %v564_v13  ;;  %748 = vmatpush.msrb.mxu2 %v581_v15  ;;  %v575_v52 = vld [vmem:[#allocation7 + $0x1c0] sm:$0xff]  ;;  %v557_v55 = vld [vmem:[#allocation7 + $0x138] sm:$0xff]  ;;  %v552_v5 = vld [vmem:[#allocation7 + $0x110] sm:$0xff] }
  0x5c   :  { %643 = vmatpush.msrb.mxu0 %v529_v8  ;;  %605 = vmatpush.msra.mxu3 %v543_v21  ;;  %v533_v53 = vld [vmem:[#allocation7 + $0x80] sm:$0xff]  ;;  %v574_v56 = vld [vmem:[#allocation7 + $0x1b8] sm:$0xff]  ;;  %v569_v6 = vld [vmem:[#allocation7 + $0x190] sm:$0xff] }
  0x5d   :  { %692 = vmatpush.msrb.mxu1 %v563_v18  ;;  %749 = vmatpush.msrb.mxu2 %v580_v19  ;;  %v553_v3 = vld [vmem:[#allocation7 + $0x118] sm:$0xff]  ;;  %v551_v7 = vld [vmem:[#allocation7 + $0x108] sm:$0xff]  ;;  %v550_v9 = vld [vmem:[#allocation7 + $0x100] sm:$0xff] }
  0x5e   :  { %447 = vmatmul.f32.gmra.mxu2 %v421_v58  ;;  %644 = vmatpush.msrb.mxu0 %v528_v16  ;;  %v556_v58 = vld [vmem:[#allocation7 + $0x130] sm:$0xff]  ;;  %v570_v4 = vld [vmem:[#allocation7 + $0x198] sm:$0xff]  ;;  %v568_v8 = vld [vmem:[#allocation7 + $0x188] sm:$0xff] }
  0x5f   :  { %357 = vmatmul.f32.gmra.mxu0 %v3895_v31  ;;  %606 = vmatpush.msra.mxu3 %v542_v23  ;;  %v540_v31 = vld [vmem:[#allocation7 + $0xb8] sm:$0xff]  ;;  %v567_v10 = vld [vmem:[#allocation7 + $0x180] sm:$0xff] }
  0x60   :  { %398 = vmatmul.f32.gmra.mxu1 %v323_v59  ;;  %645 = vmatpush.msrb.mxu0 %v527_v20  ;;  %v573_v59 = vld [vmem:[#allocation7 + $0x1b0] sm:$0xff] }
  0x61   :  { %607 = vmatpush.msra.mxu3 %v541_v30  ;;  %750 = vmatpush.msrb.mxu2 %v579_v36 }
  0x62   :  { %646 = vmatpush.msrb.mxu0 %v526_v22 }
  0x63   :  { %608 = vmatpush.msra.mxu3 %v540_v31  ;;  %751 = vmatpush.msrb.mxu2 %v578_v40 }
  0x64   :  { %647 = vmatpush.msrb.mxu0 %v525_v25 }
  0x65   :  { %609 = vmatpush.msra.mxu3 %v539_v32  ;;  %752 = vmatpush.msrb.mxu2 %v577_v44 }
  0x66   :  { %450 = vmatmul.f32.gmra.mxu2 %v422_v61  ;;  %648 = vmatpush.msrb.mxu0 %v524_v34  ;;  %v555_v61 = vld [vmem:[#allocation7 + $0x128] sm:$0xff] }
  0x67   :  { %360 = vmatmul.f32.gmra.mxu0 %v3902_v35  ;;  %v562_v35 = vld [vmem:[#allocation7 + $0x160] sm:$0xff]  ;;  %610 = vmatpush.msra.mxu3 %v538_v33 }
  0x68   :  { %401 = vmatmul.f32.gmra.mxu1 %v324_v62  ;;  %753 = vmatpush.msrb.mxu2 %v576_v48  ;;  %v572_v62 = vld [vmem:[#allocation7 + $0x1a8] sm:$0xff] }
  0x69   :  { %693 = vmatpush.msrb.mxu1 %v562_v35 }
  0x6a   :  { %754 = vmatpush.msrb.mxu2 %v575_v52 }
  0x6b   :  { %694 = vmatpush.msrb.mxu1 %v561_v39 }
  0x6c   :  { %755 = vmatpush.msrb.mxu2 %v574_v56 }
  0x6d   :  { %695 = vmatpush.msrb.mxu1 %v560_v43 }
  0x6e   :  { %453 = vmatmul.f32.gmra.mxu2 %v423_v1  ;;  %v554_v1 = vld [vmem:[#allocation7 + $0x120] sm:$0xff] }
  0x6f   :  { %363 = vmatmul.f32.gmra.mxu0 %v3908_v37  ;;  %v537_v37 = vld [vmem:[#allocation7 + $0xa0] sm:$0xff]  ;;  %756 = vmatpush.msrb.mxu2 %v573_v59 }
  0x70   :  { %404 = vmatmul.f32.gmra.mxu1 %v325_v2  ;;  %611 = vmatpush.msra.mxu3 %v537_v37  ;;  %v571_v2 = vld [vmem:[#allocation7 + $0x1a0] sm:$0xff] }
  0x71   :  { %757 = vmatpush.msrb.mxu2 %v572_v62 }
  0x72   :  { %612 = vmatpush.msra.mxu3 %v536_v41 }
  0x73   :  { %758 = vmatpush.msrb.mxu2 %v571_v2 }
  0x74   :  { %613 = vmatpush.msra.mxu3 %v535_v45 }
  0x75   :  { %759 = vmatpush.msrb.mxu2 %v570_v4 }
  0x76   :  { %456 = vmatmul.f32.gmra.mxu2 %v424_v11  ;;  %614 = vmatpush.msra.mxu3 %v534_v49 }
  0x77   :  { %366 = vmatmul.f32.gmra.mxu0 %v3913_v38  ;;  %v523_v38 = vld [vmem:[#allocation7 + $0x38] sm:$0xff]  ;;  %760 = vmatpush.msrb.mxu2 %v569_v6 }
  0x78   :  { %407 = vmatmul.f32.gmra.mxu1 %v326_v14  ;;  %649 = vmatpush.msrb.mxu0 %v523_v38  ;;  %v3945_v14 = vld [vmem:[#allocation5] ss:$0 sm:$0xff] }
  0x79   :  { %615 = vmatpush.msra.mxu3 %v533_v53  ;;  %761 = vmatpush.msrb.mxu2 %v568_v8 }
  0x7a   :  { %650 = vmatpush.msrb.mxu0 %v522_v42 }
  0x7b   :  { %762 = vmatpush.msrb.mxu2 %v567_v10 }
  0x7c   :  { %651 = vmatpush.msrb.mxu0 %v521_v46 }
  0x7e   :  { %459 = vmatmul.f32.gmra.mxu2 %v425_v24  ;;  %652 = vmatpush.msrb.mxu0 %v520_v50 }
  0x7f   :  { %369 = vmatmul.f32.gmra.mxu0 %v3921_v47  ;;  %v559_v47 = vld [vmem:[#allocation7 + $0x148] sm:$0xff] }
  0x80   :  { %410 = vmatmul.f32.gmra.mxu1 %v327_v26  ;;  %653 = vmatpush.msrb.mxu0 %v519_v54 }
  0x81   :  { %696 = vmatpush.msrb.mxu1 %v559_v47 }
  0x83   :  { %697 = vmatpush.msrb.mxu1 %v558_v51 }
  0x85   :  { %698 = vmatpush.msrb.mxu1 %v557_v55 }
  0x86   :  { %462 = vmatmul.f32.gmra.mxu2 %v426_v27 }
  0x87   :  { %372 = vmatmul.f32.gmra.mxu0 %v3927_v57  ;;  %v518_v57 = vld [vmem:[#allocation7 + $0x10] sm:$0xff]  ;;  %699 = vmatpush.msrb.mxu1 %v556_v58 }
  0x88   :  { %413 = vmatmul.f32.gmra.mxu1 %v328_v28  ;;  %654 = vmatpush.msrb.mxu0 %v518_v57 }
  0x89   :  { %700 = vmatpush.msrb.mxu1 %v555_v61 }
  0x8b   :  { %701 = vmatpush.msrb.mxu1 %v554_v1 }
  0x8d   :  { %702 = vmatpush.msrb.mxu1 %v553_v3 }
  0x8e   :  { %465 = vmatmul.f32.gmra.mxu2 %v427_v63  ;;  %v516_v63 = vld [vmem:[#allocation7] sm:$0xff] }
  0x8f   :  { %375 = vmatmul.f32.gmra.mxu0 %v3934_v60  ;;  %v517_v60 = vld [vmem:[#allocation7 + $0x8] sm:$0xff]  ;;  %703 = vmatpush.msrb.mxu1 %v552_v5 }
  0x90   :  { %416 = vmatmul.f32.gmra.mxu1 %v329_v29  ;;  %655 = vmatpush.msrb.mxu0 %v517_v60 }
  0x91   :  { %704 = vmatpush.msrb.mxu1 %v551_v7 }
  0x92   :  { %656 = vmatpush.msrb.mxu0 %v516_v63 }
  0x93   :  { %705 = vmatpush.msrb.mxu1 %v550_v9 }
  0xd4   :  { %v355_v11 = vpop.f32.mrf.mxu0 }
  0xd5   :  { %v396_v12 = vpop.f32.mrf.mxu1 }
  0xd6   :  { %v397_v13 = vadd.f32 %v396_v12, %v355_v11 }
  0xd9   :  { %v445_v15 = vpop.f32.mrf.mxu2 }
  0xda   :  { %v469_v16 = vadd.f32 %v445_v15, %v397_v13 }
  0xdc   :  { %v480_v17 = vadd.f32 %v3945_v14, %v469_v16  ;;  %v358_v18 = vpop.f32.mrf.mxu0 }
  0xdd   :  { %v399_v19 = vpop.f32.mrf.mxu1 }
  0xde   :  { %v488_v20 = vmax.f32 %v480_v17, 0.0  ;;  %v400_v21 = vadd.f32 %v399_v19, %v358_v18 }
  0xe0   :  { %508 = vst [vmem:[#allocation2 + $0x10] sm:$0xff] %v488_v20  ;;  %616 = vmatmul.f32.vlgmr.msra.gmra.mxu3 %v488_v20 }
  0xe1   :  { %v448_v22 = vpop.f32.mrf.mxu2 }
  0xe2   :  { %v470_v23 = vadd.f32 %v448_v22, %v400_v21 }
  0xe4   :  { %v481_v24 = vadd.f32 %v3945_v14, %v470_v23  ;;  %v361_v25 = vpop.f32.mrf.mxu0 }
  0xe5   :  { %v402_v26 = vpop.f32.mrf.mxu1 }
  0xe6   :  { %v489_v27 = vmax.f32 %v481_v24, 0.0  ;;  %v403_v28 = vadd.f32 %v402_v26, %v361_v25 }
  0xe7   :  { %v584_v29 = vld [vmem:[#allocation2 + $0xf] sm:$0xff] }
  0xe8   :  { %862 = vst [vmem:[#allocation2 + $0x8] sm:$0xff] %v3747_v0  ;;  %657 = vmatmul.f32.vlgmr.msrb.gmra.mxu0 %v584_v29  ;;  %619 = vmatmul.f32.gmra.mxu3 %v489_v27 }
  0xe9   :  { %509 = vst [vmem:[#allocation2 + $0x18] sm:$0xff] %v489_v27  ;;  %v451_v30 = vpop.f32.mrf.mxu2 }
  0xea   :  { %v471_v31 = vadd.f32 %v451_v30, %v403_v28 }
  0xec   :  { %v482_v32 = vadd.f32 %v3945_v14, %v471_v31  ;;  %v364_v33 = vpop.f32.mrf.mxu0 }
  0xed   :  { %v405_v34 = vpop.f32.mrf.mxu1 }
  0xee   :  { %v490_v35 = vmax.f32 %v482_v32, 0.0  ;;  %v406_v36 = vadd.f32 %v405_v34, %v364_v33 }
  0xf0   :  { %v585_v37 = vld [vmem:[#allocation2 + $0x17] sm:$0xff]  ;;  %510 = vst [vmem:[#allocation2 + $0x20] sm:$0xff] %v490_v35  ;;  %622 = vmatmul.f32.gmra.mxu3 %v490_v35 }
  0xf1   :  { %v682_v38 = vld [vmem:[#allocation2 + $0x11] sm:$0xff]  ;;  %660 = vmatmul.f32.gmra.mxu0 %v585_v37  ;;  %v454_v40 = vpop.f32.mrf.mxu2 }
  0xf2   :  { %v739_v39 = vld [vmem:[#allocation2 + $0x12] sm:$0xff]  ;;  %706 = vmatmul.f32.vlgmr.msrb.gmra.mxu1 %v682_v38  ;;  %v472_v41 = vadd.f32 %v454_v40, %v406_v36 }
  0xf3   :  { %763 = vmatmul.f32.vlgmr.msrb.gmra.mxu2 %v739_v39 }
  0xf4   :  { %v483_v42 = vadd.f32 %v3945_v14, %v472_v41  ;;  %v367_v43 = vpop.f32.mrf.mxu0 }
  0xf5   :  { %v408_v44 = vpop.f32.mrf.mxu1 }
  0xf6   :  { %v491_v45 = vmax.f32 %v483_v42, 0.0  ;;  %v409_v46 = vadd.f32 %v408_v44, %v367_v43 }
  0xf7   :  { %v586_v47 = vld [vmem:[#allocation2 + $0x1f] sm:$0xff] }
  0xf8   :  { %v683_v48 = vld [vmem:[#allocation2 + $0x19] sm:$0xff]  ;;  %511 = vst [vmem:[#allocation2 + $0x28] sm:$0xff] %v491_v45  ;;  %625 = vmatmul.f32.gmra.mxu3 %v491_v45 }
  0xf9   :  { %v740_v49 = vld [vmem:[#allocation2 + $0x1a] sm:$0xff]  ;;  %663 = vmatmul.f32.gmra.mxu0 %v586_v47  ;;  %v457_v50 = vpop.f32.mrf.mxu2 }
  0xfa   :  { %709 = vmatmul.f32.gmra.mxu1 %v683_v48  ;;  %v473_v51 = vadd.f32 %v457_v50, %v409_v46 }
  0xfb   :  { %766 = vmatmul.f32.gmra.mxu2 %v740_v49 }
  0xfc   :  { %v484_v52 = vadd.f32 %v3945_v14, %v473_v51  ;;  %v370_v53 = vpop.f32.mrf.mxu0 }
  0xfd   :  { %v411_v54 = vpop.f32.mrf.mxu1 }
  0xfe   :  { %v492_v55 = vmax.f32 %v484_v52, 0.0  ;;  %v412_v56 = vadd.f32 %v411_v54, %v370_v53 }
  0xff   :  { %v587_v57 = vld [vmem:[#allocation2 + $0x27] sm:$0xff] }
 0x100   :  { %v684_v58 = vld [vmem:[#allocation2 + $0x21] sm:$0xff]  ;;  %512 = vst [vmem:[#allocation2 + $0x30] sm:$0xff] %v492_v55  ;;  %628 = vmatmul.f32.gmra.mxu3 %v492_v55 }
 0x101   :  { %v741_v59 = vld [vmem:[#allocation2 + $0x22] sm:$0xff]  ;;  %666 = vmatmul.f32.gmra.mxu0 %v587_v57  ;;  %v460_v60 = vpop.f32.mrf.mxu2 }
 0x102   :  { %712 = vmatmul.f32.gmra.mxu1 %v684_v58  ;;  %v474_v61 = vadd.f32 %v460_v60, %v412_v56 }
 0x103   :  { %769 = vmatmul.f32.gmra.mxu2 %v741_v59 }
 0x104   :  { %v485_v62 = vadd.f32 %v3945_v14, %v474_v61  ;;  %v373_v63 = vpop.f32.mrf.mxu0 }
 0x105   :  { %v414_v1 = vpop.f32.mrf.mxu1 }
 0x106   :  { %v493_v2 = vmax.f32 %v485_v62, 0.0  ;;  %v415_v3 = vadd.f32 %v414_v1, %v373_v63 }
 0x107   :  { %v588_v4 = vld [vmem:[#allocation2 + $0x2f] sm:$0xff] }
 0x108   :  { %v685_v5 = vld [vmem:[#allocation2 + $0x29] sm:$0xff]  ;;  %513 = vst [vmem:[#allocation2 + $0x38] sm:$0xff] %v493_v2  ;;  %631 = vmatmul.f32.gmra.mxu3 %v493_v2 }
 0x109   :  { %v742_v6 = vld [vmem:[#allocation2 + $0x2a] sm:$0xff]  ;;  %669 = vmatmul.f32.gmra.mxu0 %v588_v4  ;;  %v463_v7 = vpop.f32.mrf.mxu2 }
 0x10a   :  { %715 = vmatmul.f32.gmra.mxu1 %v685_v5  ;;  %v475_v8 = vadd.f32 %v463_v7, %v415_v3 }
 0x10b   :  { %772 = vmatmul.f32.gmra.mxu2 %v742_v6 }
 0x10c   :  { %v486_v9 = vadd.f32 %v3945_v14, %v475_v8  ;;  %v376_v10 = vpop.f32.mrf.mxu0  ;;  %v3378_v8 = vld [vmem:[#allocation8] ss:$0 sm:$0xff] }
 0x10d   :  { %v417_v11 = vpop.f32.mrf.mxu1 }
 0x10e   :  { %v494_v12 = vmax.f32 %v486_v9, 0.0  ;;  %v418_v13 = vadd.f32 %v417_v11, %v376_v10 }
 0x10f   :  { %v589_v15 = vld [vmem:[#allocation2 + $0x37] sm:$0xff] }
 0x110   :  { %v686_v16 = vld [vmem:[#allocation2 + $0x31] sm:$0xff]  ;;  %634 = vmatmul.f32.gmra.mxu3 %v494_v12  ;;  %514 = vst [vmem:[#allocation2 + $0x40] sm:$0xff] %v494_v12 }
 0x111   :  { %v743_v17 = vld [vmem:[#allocation2 + $0x32] sm:$0xff]  ;;  %672 = vmatmul.f32.gmra.mxu0 %v589_v15  ;;  %v466_v18 = vpop.f32.mrf.mxu2 }
 0x112   :  { %867 = vst [vmem:[#allocation2 + $0x30] sm:$0xff] %v3747_v0  ;;  %718 = vmatmul.f32.gmra.mxu1 %v686_v16  ;;  %v476_v19 = vadd.f32 %v466_v18, %v418_v13 }
 0x113   :  { %775 = vmatmul.f32.gmra.mxu2 %v743_v17 }
 0x114   :  { %v487_v20 = vadd.f32 %v3945_v14, %v476_v19 }
 0x116   :  { %v495_v21 = vmax.f32 %v487_v20, 0.0 }
 0x117   :  { %v590_v22 = vld [vmem:[#allocation2 + $0x3f] sm:$0xff] }
 0x118   :  { %v687_v23 = vld [vmem:[#allocation2 + $0x39] sm:$0xff]  ;;  %515 = vst [vmem:[#allocation2 + $0x48] sm:$0xff] %v495_v21 }
 0x119   :  { %v744_v24 = vld [vmem:[#allocation2 + $0x3a] sm:$0xff]  ;;  %675 = vmatmul.f32.gmra.mxu0 %v590_v22 }
 0x11a   :  { %868 = vst [vmem:[#allocation2 + $0x38] sm:$0xff] %v3747_v0  ;;  %721 = vmatmul.f32.gmra.mxu1 %v687_v23 }
 0x11b   :  { %778 = vmatmul.f32.gmra.mxu2 %v744_v24 }
 0x11f   :  { %v591_v25 = vld [vmem:[#allocation2 + $0x47] sm:$0x7f] }
 0x120   :  { %v688_v26 = vld [vmem:[#allocation2 + $0x41] sm:$0xff]  ;;  %v746_v29 = vld [vmem:[#allocation2 + $0x4a] sm:$0x7f] }
 0x121   :  { %v3958_v27 = vld [vmem:[#allocation2 + $0x31] sm:$0xff]  ;;  %v745_v28 = vld [vmem:[#allocation2 + $0x42] sm:$0xff]  ;;  %678 = vmatmul.f32.gmra.mxu0 %v591_v25  ;;  %3215 = vst [vmem:[#allocation2 + $0x50] sm:$0xff] %v3747_v0 }
 0x122   :  { %3212 = vst [vmem:[#allocation2 + $0x38] sm:$0xff] %v3747_v0  ;;  %v599_v30 = vld [vmem:[#allocation2 + $0x48] sm:$0x7f]  ;;  %724 = vmatmul.f32.gmra.mxu1 %v688_v26 }
 0x123   :  { %637 = vmatmul.f32.gmra.mxu3 %v599_v30  ;;  %781 = vmatmul.f32.gmra.mxu2 %v745_v28  ;;  %v689_v14 = vld [vmem:[#allocation2 + $0x49] sm:$0x7f]  ;;  %3213 = vst [vmem:[#allocation2 + $0x40] sm:$0xff] %v3747_v0 }
 0x124   :  { %3214 = vst [vmem:[#allocation2 + $0x48] sm:$0xff] %v3747_v0 }
 0x12a   :  { %727 = vmatmul.f32.gmra.mxu1 %v689_v14 }
 0x12b   :  { %784 = vmatmul.f32.gmra.mxu2 %v746_v29 }
 0x163   :  { %v617_v31 = vpop.f32.mrf.mxu3 }
 0x165   :  { %v658_v32 = vpop.f32.mrf.mxu0 }
 0x166   :  { %v659_v22 = vadd.f32 %v658_v32, %v617_v31  ;;  %v807_v32 = vld [vmem:[#allocation19] sm:$0xff] }
 0x16b   :  { %v620_v33 = vpop.f32.mrf.mxu3 }
 0x16e   :  { %v661_v34 = vpop.f32.mrf.mxu0 }
 0x16f   :  { %v707_v35 = vpop.f32.mrf.mxu1  ;;  %v662_v18 = vadd.f32 %v661_v34, %v620_v33  ;;  %v890_v34 = vld [vmem:[#allocation10 + $0x68] sm:$0xff] }
 0x170   :  { %v731_v26 = vadd.f32 %v707_v35, %v659_v22  ;;  %v925_v35 = vld [vmem:[#allocation10 + $0x170] sm:$0xff]  ;;  %v912_v22 = vld [vmem:[#allocation10 + $0x108] sm:$0xff] }
 0x173   :  { %v623_v36 = vpop.f32.mrf.mxu3 }
 0x176   :  { %v764_v37 = vpop.f32.mrf.mxu2  ;;  %v664_v38 = vpop.f32.mrf.mxu0 }
 0x177   :  { %v710_v39 = vpop.f32.mrf.mxu1  ;;  %v665_v13 = vadd.f32 %v664_v38, %v623_v36  ;;  %v788_v30 = vadd.f32 %v764_v37, %v731_v26  ;;  %v892_v36 = vld [vmem:[#allocation10 + $0x78] sm:$0xff]  ;;  %v891_v38 = vld [vmem:[#allocation10 + $0x70] sm:$0xff] }
 0x178   :  { %v732_v23 = vadd.f32 %v710_v39, %v662_v18  ;;  %965 = vmatpush.msra.mxu0 %v892_v36  ;;  %v889_v39 = vld [vmem:[#allocation10 + $0x60] sm:$0xff]  ;;  %v888_v37 = vld [vmem:[#allocation10 + $0x58] sm:$0xff]  ;;  %v916_v18 = vld [vmem:[#allocation10 + $0x128] sm:$0xff] }
 0x179   :  { %v799_v31 = vadd.f32 %v3378_v8, %v788_v30 }
 0x17a   :  { %966 = vmatpush.msra.mxu0 %v891_v38  ;;  %v1057_v38 = vld [vmem:[#allocation13 + $0x78] sm:$0xff] }
 0x17b   :  { %v626_v42 = vpop.f32.mrf.mxu3  ;;  %1062 = vmatpush.msra.mxu2 %v1057_v38 }
 0x17c   :  { %967 = vmatpush.msra.mxu0 %v890_v34  ;;  %v1055_v34 = vld [vmem:[#allocation13 + $0x68] sm:$0xff] }
 0x17e   :  { %v767_v40 = vpop.f32.mrf.mxu2  ;;  %v667_v43 = vpop.f32.mrf.mxu0  ;;  %968 = vmatpush.msra.mxu0 %v889_v39  ;;  %v1053_v39 = vld [vmem:[#allocation13 + $0x58] sm:$0xff] }
 0x17f   :  { %v713_v41 = vpop.f32.mrf.mxu1  ;;  %v668_v9 = vadd.f32 %v667_v43, %v626_v42  ;;  %v789_v28 = vadd.f32 %v767_v40, %v732_v23  ;;  %v909_v40 = vld [vmem:[#allocation10 + $0xf8] sm:$0xff]  ;;  %v908_v42 = vld [vmem:[#allocation10 + $0xf0] sm:$0xff]  ;;  %v911_v23 = vld [vmem:[#allocation10 + $0x100] sm:$0xff] }
 0x180   :  { %v733_v19 = vadd.f32 %v713_v41, %v665_v13  ;;  %v926_v41 = vld [vmem:[#allocation10 + $0x178] sm:$0xff]  ;;  %v887_v43 = vld [vmem:[#allocation10 + $0x50] sm:$0xff]  ;;  %969 = vmatpush.msra.mxu0 %v888_v37  ;;  %v920_v13 = vld [vmem:[#allocation10 + $0x148] sm:$0xff] }
 0x181   :  { %v800_v33 = vadd.f32 %v3378_v8, %v789_v28  ;;  %998 = vmatpush.msra.mxu1 %v926_v41  ;;  %v1054_v41 = vld [vmem:[#allocation13 + $0x60] sm:$0xff]  ;;  %v1052_v37 = vld [vmem:[#allocation13 + $0x50] sm:$0xff] }
 0x182   :  { %970 = vmatpush.msra.mxu0 %v887_v43  ;;  %v1050_v43 = vld [vmem:[#allocation13 + $0x40] sm:$0xff] }
 0x183   :  { %v629_v46 = vpop.f32.mrf.mxu3  ;;  %999 = vmatpush.msra.mxu1 %v925_v35 }
 0x186   :  { %v770_v44 = vpop.f32.mrf.mxu2  ;;  %v670_v47 = vpop.f32.mrf.mxu0 }
 0x187   :  { %v716_v45 = vpop.f32.mrf.mxu1  ;;  %v671_v4 = vadd.f32 %v670_v47, %v629_v46  ;;  %v790_v24 = vadd.f32 %v770_v44, %v733_v19  ;;  %v907_v44 = vld [vmem:[#allocation10 + $0xe8] sm:$0xff]  ;;  %v808_v46 = vld [vmem:[#allocation19 + $0x8] sm:$0xff] }
 0x188   :  { %v734_v15 = vadd.f32 %v716_v45, %v668_v9  ;;  %v906_v45 = vld [vmem:[#allocation10 + $0xe0] sm:$0xff]  ;;  %v905_v47 = vld [vmem:[#allocation10 + $0xd8] sm:$0xff] }
 0x189   :  { %v801_v14 = vadd.f32 %v3378_v8, %v790_v24  ;;  %v928_v9 = vld [vmem:[#allocation2 + $0x7] sm:$0xff] }
 0x18a   :  { %v915_v19 = vld [vmem:[#allocation10 + $0x120] sm:$0xff] }
 0x18b   :  { %v632_v49 = vpop.f32.mrf.mxu3 }
 0x18e   :  { %v773_v0 = vpop.f32.mrf.mxu2  ;;  %v673_v50 = vpop.f32.mrf.mxu0 }
 0x18f   :  { %v719_v48 = vpop.f32.mrf.mxu1  ;;  %v674_v63 = vadd.f32 %v673_v50, %v632_v49  ;;  %v791_v20 = vadd.f32 %v773_v0, %v734_v15  ;;  %v904_v0 = vld [vmem:[#allocation10 + $0xd0] sm:$0xff]  ;;  %v902_v49 = vld [vmem:[#allocation10 + $0xc0] sm:$0xff] }
 0x190   :  { %v735_v10 = vadd.f32 %v719_v48, %v671_v4  ;;  %v903_v48 = vld [vmem:[#allocation10 + $0xc8] sm:$0xff]  ;;  %v919_v15 = vld [vmem:[#allocation10 + $0x140] sm:$0xff] }
 0x191   :  { %v802_v29 = vadd.f32 %v3378_v8, %v791_v20  ;;  %v809_v50 = vld [vmem:[#allocation19 + $0x10] sm:$0xff]  ;;  %v914_v20 = vld [vmem:[#allocation10 + $0x118] sm:$0xff] }
 0x192   :  { %v895_v4 = vld [vmem:[#allocation10 + $0x88] sm:$0xff] }
 0x193   :  { %v635_v53 = vpop.f32.mrf.mxu3 }
 0x196   :  { %v776_v51 = vpop.f32.mrf.mxu2  ;;  %v676_v54 = vpop.f32.mrf.mxu0 }
 0x197   :  { %v722_v52 = vpop.f32.mrf.mxu1  ;;  %v677_v62 = vadd.f32 %v676_v54, %v635_v53  ;;  %v792_v16 = vadd.f32 %v776_v51, %v735_v10  ;;  %v901_v51 = vld [vmem:[#allocation10 + $0xb8] sm:$0xff]  ;;  %v886_v53 = vld [vmem:[#allocation10 + $0x48] sm:$0xff]  ;;  %v885_v54 = vld [vmem:[#allocation10 + $0x40] sm:$0xff] }
 0x198   :  { %v736_v5 = vadd.f32 %v722_v52, %v674_v63  ;;  %v810_v52 = vld [vmem:[#allocation19 + $0x18] sm:$0xff]  ;;  %971 = vmatpush.msra.mxu0 %v886_v53  ;;  %v880_v63 = vld [vmem:[#allocation10 + $0x18] sm:$0xff] }
 0x199   :  { %v803_v25 = vadd.f32 %v3378_v8, %v792_v16  ;;  %v922_v10 = vld [vmem:[#allocation10 + $0x158] sm:$0xff] }
 0x19a   :  { %972 = vmatpush.msra.mxu0 %v885_v54  ;;  %v918_v16 = vld [vmem:[#allocation10 + $0x138] sm:$0xff] }
 0x19e   :  { %v779_v55 = vpop.f32.mrf.mxu2  ;;  %v679_v59 = vpop.f32.mrf.mxu0 }
 0x19f   :  { %v725_v56 = vpop.f32.mrf.mxu1  ;;  %v793_v11 = vadd.f32 %v779_v55, %v736_v5  ;;  %v884_v55 = vld [vmem:[#allocation10 + $0x38] sm:$0xff]  ;;  %v878_v5 = vld [vmem:[#allocation10 + $0x8] sm:$0xff] }
 0x1a0   :  { %v737_v1 = vadd.f32 %v725_v56, %v677_v62  ;;  %973 = vmatpush.msra.mxu0 %v884_v55  ;;  %v900_v56 = vld [vmem:[#allocation10 + $0xb0] sm:$0xff]  ;;  %v897_v62 = vld [vmem:[#allocation10 + $0x98] sm:$0xff]  ;;  %v3987_v55 = vld [vmem:[#allocation11] ss:$0 sm:$0xff] }
 0x1a1   :  { %v804_v21 = vadd.f32 %v3378_v8, %v793_v11  ;;  %v921_v11 = vld [vmem:[#allocation10 + $0x150] sm:$0xff] }
 0x1a6   :  { %v638_v57 = vpop.f32.mrf.mxu3  ;;  %v782_v58 = vpop.f32.mrf.mxu2 }
 0x1a7   :  { %v680_v60 = vadd.f32 %v679_v59, %v638_v57  ;;  %v728_v61 = vpop.f32.mrf.mxu1  ;;  %v794_v6 = vadd.f32 %v782_v58, %v737_v1  ;;  %v883_v57 = vld [vmem:[#allocation10 + $0x30] sm:$0xff]  ;;  %v899_v58 = vld [vmem:[#allocation10 + $0xa8] sm:$0xff] }
 0x1a8   :  { %974 = vmatpush.msra.mxu0 %v883_v57  ;;  %v882_v59 = vld [vmem:[#allocation10 + $0x28] sm:$0xff]  ;;  %v896_v1 = vld [vmem:[#allocation10 + $0x90] sm:$0xff]  ;;  %v1131_v57 = vld [vmem:[#allocation10 + $0x1f8] sm:$0xff] }
 0x1a9   :  { %v738_v2 = vadd.f32 %v728_v61, %v680_v60  ;;  %v805_v17 = vadd.f32 %v3378_v8, %v794_v6  ;;  %v898_v60 = vld [vmem:[#allocation10 + $0xa0] sm:$0xff] }
 0x1aa   :  { %975 = vmatpush.msra.mxu0 %v882_v59  ;;  %v881_v61 = vld [vmem:[#allocation10 + $0x20] sm:$0xff] }
 0x1ab   :  { %v923_v6 = vld [vmem:[#allocation10 + $0x160] sm:$0xff] }
 0x1ac   :  { %976 = vmatpush.msra.mxu0 %v881_v61  ;;  %v1130_v61 = vld [vmem:[#allocation10 + $0x1f0] sm:$0xff] }
 0x1ae   :  { %v785_v3 = vpop.f32.mrf.mxu2  ;;  %977 = vmatpush.msra.mxu0 %v880_v63  ;;  %v1146_v63 = vld [vmem:[#allocation10 + $0x268] sm:$0xff] }
 0x1af   :  { %v795_v7 = vadd.f32 %v785_v3, %v738_v2  ;;  %v879_v2 = vld [vmem:[#allocation10 + $0x10] sm:$0xff]  ;;  %v924_v3 = vld [vmem:[#allocation10 + $0x168] sm:$0xff] }
 0x1b0   :  { %978 = vmatpush.msra.mxu0 %v879_v2  ;;  %1000 = vmatpush.msra.mxu1 %v924_v3  ;;  %v1165_v3 = vld [vmem:[#allocation10 + $0x2f8] sm:$0xff] }
 0x1b1   :  { %v806_v12 = vadd.f32 %v3378_v8, %v795_v7  ;;  %v894_v7 = vld [vmem:[#allocation10 + $0x80] sm:$0xff] }
 0x1b2   :  { %979 = vmatpush.msra.mxu0 %v878_v5  ;;  %v877_v8 = vld [vmem:[#allocation10] sm:$0xff]  ;;  %1001 = vmatpush.msra.mxu1 %v923_v6 }
 0x1b3   :  { %3349 = vmatpush.msk.msrb.mxu3 %vm824_vm0, %v806_v12  ;;  %v3969_v12 = vld [vmem:[#allocation2 + $0x58] sm:$0xff]  ;;  %v1145_v5 = vld [vmem:[#allocation10 + $0x260] sm:$0xff] }
 0x1b4   :  { %980 = vmatpush.msra.mxu0 %v877_v8  ;;  %1849 = vst [vmem:[#allocation2] sm:$0xff] %v3969_v12  ;;  %1002 = vmatpush.msra.mxu1 %v922_v10  ;;  %v1128_v6 = vld [vmem:[#allocation10 + $0x1e0] sm:$0xff]  ;;  %v1163_v8 = vld [vmem:[#allocation10 + $0x2e8] sm:$0xff]  ;;  %v1144_v10 = vld [vmem:[#allocation10 + $0x258] sm:$0xff] }
 0x1b5   :  { %837 = vmatpush.msrb.mxu3 %v805_v17  ;;  %981 = vmatmul.f32.vlgmr.msra.gmra.mxu0 %v928_v9  ;;  %v917_v17 = vld [vmem:[#allocation10 + $0x130] sm:$0xff] }
 0x1b6   :  { %1003 = vmatpush.msra.mxu1 %v921_v11  ;;  %1205 = vmatpush.msrb.mxu0 %v1131_v57  ;;  %v1127_v11 = vld [vmem:[#allocation10 + $0x1d8] sm:$0xff]  ;;  %v1133_v57 = vld [vmem:[#allocation10 + $0x200] sm:$0xff] }
 0x1b7   :  { %838 = vmatpush.msrb.mxu3 %v804_v21  ;;  %v913_v21 = vld [vmem:[#allocation10 + $0x110] sm:$0xff] }
 0x1b8   :  { %1004 = vmatpush.msra.mxu1 %v920_v13  ;;  %1206 = vmatpush.msrb.mxu0 %v1130_v61  ;;  %v1162_v13 = vld [vmem:[#allocation10 + $0x2e0] sm:$0xff]  ;;  %v1156_v61 = vld [vmem:[#allocation10 + $0x2b0] sm:$0xff] }
 0x1b9   :  { %839 = vmatpush.msrb.mxu3 %v803_v25 }
 0x1ba   :  { %1005 = vmatpush.msra.mxu1 %v919_v15 }
 0x1bb   :  { %840 = vmatpush.msrb.mxu3 %v802_v29 }
 0x1bc   :  { %1006 = vmatpush.msra.mxu1 %v918_v16  ;;  %v1143_v16 = vld [vmem:[#allocation10 + $0x250] sm:$0xff] }
 0x1bd   :  { %841 = vmatpush.msrb.mxu3 %v801_v14 }
 0x1be   :  { %1007 = vmatpush.msra.mxu1 %v917_v17  ;;  %v1126_v17 = vld [vmem:[#allocation10 + $0x1d0] sm:$0xff] }
 0x1bf   :  { %842 = vmatpush.msrb.mxu3 %v800_v33  ;;  %v1056_v33 = vld [vmem:[#allocation13 + $0x70] sm:$0xff] }
 0x1c0   :  { %1008 = vmatpush.msra.mxu1 %v916_v18  ;;  %1063 = vmatpush.msra.mxu2 %v1056_v33 }
 0x1c1   :  { %843 = vmatpush.msrb.mxu3 %v799_v31 }
 0x1c2   :  { %3350 = vmatmul.msk.f32.vlgmr.msrb.gmra.mxu3 %vm811_vm1, %v807_v32  ;;  %1009 = vmatpush.msra.mxu1 %v915_v19 }
 0x1c3   :  { %936 = vmatpush.msra.mxu3 %v909_v40  ;;  %1064 = vmatpush.msra.mxu2 %v1055_v34 }
 0x1c4   :  { %1010 = vmatpush.msra.mxu1 %v914_v20  ;;  %v1142_v20 = vld [vmem:[#allocation10 + $0x248] sm:$0xff] }
 0x1c5   :  { %937 = vmatpush.msra.mxu3 %v908_v42  ;;  %1065 = vmatpush.msra.mxu2 %v1054_v41  ;;  %v1051_v42 = vld [vmem:[#allocation13 + $0x48] sm:$0xff] }
 0x1c6   :  { %1011 = vmatpush.msra.mxu1 %v913_v21  ;;  %v1125_v21 = vld [vmem:[#allocation10 + $0x1c8] sm:$0xff] }
 0x1c7   :  { %938 = vmatpush.msra.mxu3 %v907_v44  ;;  %1066 = vmatpush.msra.mxu2 %v1053_v39 }
 0x1c8   :  { %1012 = vmatpush.msra.mxu1 %v912_v22 }
 0x1c9   :  { %939 = vmatpush.msra.mxu3 %v906_v45  ;;  %1067 = vmatpush.msra.mxu2 %v1052_v37 }
 0x1ca   :  { %3351 = vmatmul.msk.f32.gmra.mxu3 %vm811_vm1, %v808_v46  ;;  %1013 = vmatpush.msra.mxu1 %v911_v23  ;;  %v1049_v46 = vld [vmem:[#allocation13 + $0x38] sm:$0xff] }
 0x1cb   :  { %940 = vmatpush.msra.mxu3 %v905_v47  ;;  %1068 = vmatpush.msra.mxu2 %v1051_v42  ;;  %v1048_v47 = vld [vmem:[#allocation13 + $0x30] sm:$0xff] }
 0x1cc   :  { %1238 = vmatpush.msrb.mxu1 %v1165_v3  ;;  %v1153_v3 = vld [vmem:[#allocation10 + $0x298] sm:$0xff] }
 0x1cd   :  { %941 = vmatpush.msra.mxu3 %v904_v0  ;;  %1069 = vmatpush.msra.mxu2 %v1050_v43  ;;  %v1047_v0 = vld [vmem:[#allocation13 + $0x28] sm:$0xff] }
 0x1cf   :  { %942 = vmatpush.msra.mxu3 %v903_v48  ;;  %1070 = vmatpush.msra.mxu2 %v1049_v46  ;;  %v1046_v48 = vld [vmem:[#allocation13 + $0x20] sm:$0xff] }
 0x1d0   :  { %v1138_v46 = vld [vmem:[#allocation10 + $0x228] sm:$0xff] }
 0x1d1   :  { %943 = vmatpush.msra.mxu3 %v902_v49  ;;  %1071 = vmatpush.msra.mxu2 %v1048_v47  ;;  %v1045_v49 = vld [vmem:[#allocation13 + $0x18] sm:$0xff] }
 0x1d2   :  { %3352 = vmatmul.msk.f32.gmra.mxu3 %vm811_vm1, %v809_v50  ;;  %v1044_v50 = vld [vmem:[#allocation13 + $0x10] sm:$0xff] }
 0x1d3   :  { %944 = vmatpush.msra.mxu3 %v901_v51  ;;  %1072 = vmatpush.msra.mxu2 %v1047_v0  ;;  %v1043_v51 = vld [vmem:[#allocation13 + $0x8] sm:$0xff]  ;;  %v1137_v47 = vld [vmem:[#allocation10 + $0x220] sm:$0xff] }
 0x1d4   :  { %v1123_v0 = vld [vmem:[#allocation10 + $0x1b8] sm:$0xff] }
 0x1d5   :  { %945 = vmatpush.msra.mxu3 %v900_v56  ;;  %1073 = vmatpush.msra.mxu2 %v1046_v48  ;;  %v1148_v56 = vld [vmem:[#allocation10 + $0x278] sm:$0xff] }
 0x1d6   :  { %v1161_v48 = vld [vmem:[#allocation10 + $0x2d8] sm:$0xff] }
 0x1d7   :  { %946 = vmatpush.msra.mxu3 %v899_v58  ;;  %1074 = vmatpush.msra.mxu2 %v1045_v49  ;;  %v1147_v58 = vld [vmem:[#allocation10 + $0x270] sm:$0xff]  ;;  %v1136_v49 = vld [vmem:[#allocation10 + $0x218] sm:$0xff] }
 0x1d9   :  { %947 = vmatpush.msra.mxu3 %v898_v60  ;;  %1075 = vmatpush.msra.mxu2 %v1044_v50  ;;  %v1122_v50 = vld [vmem:[#allocation10 + $0x1b0] sm:$0xff] }
 0x1da   :  { %3353 = vmatmul.msk.f32.gmra.mxu3 %vm811_vm1, %v810_v52  ;;  %v1042_v52 = vld [vmem:[#allocation13] sm:$0xff] }
 0x1db   :  { %948 = vmatpush.msra.mxu3 %v897_v62  ;;  %1076 = vmatpush.msra.mxu2 %v1043_v51  ;;  %v1160_v51 = vld [vmem:[#allocation10 + $0x2d0] sm:$0xff] }
 0x1dd   :  { %949 = vmatpush.msra.mxu3 %v896_v1  ;;  %1077 = vmatpush.msra.mxu2 %v1042_v52  ;;  %v1129_v1 = vld [vmem:[#allocation10 + $0x1e8] sm:$0xff]  ;;  %v1135_v52 = vld [vmem:[#allocation10 + $0x210] sm:$0xff] }
 0x1de   :  { %1207 = vmatpush.msrb.mxu0 %v1129_v1  ;;  %v1116_v1 = vld [vmem:[#allocation10 + $0x180] sm:$0xff] }
 0x1df   :  { %950 = vmatpush.msra.mxu3 %v895_v4 }
 0x1e0   :  { %1208 = vmatpush.msrb.mxu0 %v1128_v6  ;;  %v1150_v6 = vld [vmem:[#allocation10 + $0x280] sm:$0xff] }
 0x1e1   :  { %951 = vmatpush.msra.mxu3 %v894_v7  ;;  %v1164_v7 = vld [vmem:[#allocation10 + $0x2f0] sm:$0xff] }
 0x1e2   :  { %1239 = vmatpush.msrb.mxu1 %v1164_v7  ;;  %1209 = vmatpush.msrb.mxu0 %v1127_v11  ;;  %v3380_v7 = vld [vmem:[#allocation14] ss:$0 sm:$0xff] }
 0x1e3   :  { %1176 = vmatpush.msrb.mxu3 %v1148_v56  ;;  %v1158_v56 = vld [vmem:[#allocation10 + $0x2c0] sm:$0xff] }
 0x1e4   :  { %1240 = vmatpush.msrb.mxu1 %v1163_v8  ;;  %1210 = vmatpush.msrb.mxu0 %v1126_v17 }
 0x1e5   :  { %1177 = vmatpush.msrb.mxu3 %v1147_v58  ;;  %v1119_v58 = vld [vmem:[#allocation10 + $0x198] sm:$0xff] }
 0x1e6   :  { %1241 = vmatpush.msrb.mxu1 %v1162_v13  ;;  %1211 = vmatpush.msrb.mxu0 %v1125_v21 }
 0x1e7   :  { %1178 = vmatpush.msrb.mxu3 %v1146_v63  ;;  %v1155_v63 = vld [vmem:[#allocation10 + $0x2a8] sm:$0xff] }
 0x1e8   :  { %1242 = vmatpush.msrb.mxu1 %v1161_v48  ;;  %v1283_v48 = vld [vmem:[#allocation13 + $0x80] sm:$0xff] }
 0x1e9   :  { %1179 = vmatpush.msrb.mxu3 %v1145_v5  ;;  %v1151_v5 = vld [vmem:[#allocation10 + $0x288] sm:$0xff] }
 0x1ea   :  { %1243 = vmatpush.msrb.mxu1 %v1160_v51  ;;  %v4011_v51 = vld [vmem:[#allocation11 + $0x1] ss:$0 sm:$0xff] }
 0x1eb   :  { %1180 = vmatpush.msrb.mxu3 %v1144_v10 }
 0x1ed   :  { %1181 = vmatpush.msrb.mxu3 %v1143_v16 }
 0x1ef   :  { %1182 = vmatpush.msrb.mxu3 %v1142_v20  ;;  %v1297_v20 = vld [vmem:[#allocation13 + $0xf0] sm:$0xff] }
 0x232   :  { %v982_v54 = vpop.f32.mrf.mxu0 }
 0x245   :  { %v3972_v24 = vpop.f32.mrf.mxu3 }
 0x246   :  { %v857_v25 = vmax.f32 %v3972_v24, 0.0 }
 0x248   :  { %873 = vst [vmem:[#allocation2 + $0x10] sm:$0xff] %v857_v25  ;;  %952 = vmatmul.f32.vlgmr.msra.gmra.mxu3 %v857_v25  ;;  %v1141_v25 = vld [vmem:[#allocation10 + $0x240] sm:$0xff] }
 0x249   :  { %1183 = vmatpush.msrb.mxu3 %v1141_v25 }
 0x24d   :  { %v3975_v26 = vpop.f32.mrf.mxu3 }
 0x24e   :  { %v858_v28 = vmax.f32 %v3975_v26, 0.0 }
 0x24f   :  { %v929_v29 = vld [vmem:[#allocation2 + $0xf] sm:$0xff] }
 0x250   :  { %874 = vst [vmem:[#allocation2 + $0x18] sm:$0xff] %v858_v28  ;;  %955 = vmatmul.f32.gmra.mxu3 %v858_v28  ;;  %984 = vmatmul.f32.gmra.mxu0 %v929_v29  ;;  %v1124_v28 = vld [vmem:[#allocation10 + $0x1c0] sm:$0xff] }
 0x251   :  { %1100 = vst [vmem:[#allocation2 + $0x8] sm:$0xff] %v3969_v12  ;;  %1212 = vmatpush.msrb.mxu0 %v1124_v28  ;;  %v1294_v28 = vld [vmem:[#allocation13 + $0xd8] sm:$0xff] }
 0x253   :  { %1213 = vmatpush.msrb.mxu0 %v1123_v0  ;;  %v1284_v0 = vld [vmem:[#allocation13 + $0x88] sm:$0xff] }
 0x255   :  { %v3979_v30 = vpop.f32.mrf.mxu3  ;;  %1214 = vmatpush.msrb.mxu0 %v1122_v50 }
 0x256   :  { %v859_v14 = vmax.f32 %v3979_v30, 0.0 }
 0x257   :  { %v930_v36 = vld [vmem:[#allocation2 + $0x17] sm:$0xff] }
 0x258   :  { %875 = vst [vmem:[#allocation2 + $0x20] sm:$0xff] %v859_v14  ;;  %958 = vmatmul.f32.gmra.mxu3 %v859_v14  ;;  %987 = vmatmul.f32.gmra.mxu0 %v930_v36 }
 0x25d   :  { %v3982_v31 = vpop.f32.mrf.mxu3 }
 0x25e   :  { %v860_v32 = vmax.f32 %v3982_v31, 0.0 }
 0x25f   :  { %v931_v35 = vld [vmem:[#allocation2 + $0x1f] sm:$0xff] }
 0x260   :  { %v994_v40 = vld [vmem:[#allocation2 + $0x19] sm:$0xff]  ;;  %876 = vst [vmem:[#allocation2 + $0x28] sm:$0xff] %v860_v32  ;;  %961 = vmatmul.f32.gmra.mxu3 %v860_v32  ;;  %990 = vmatmul.f32.gmra.mxu0 %v931_v35 }
 0x261   :  { %1014 = vmatmul.f32.vlgmr.msra.gmra.mxu1 %v994_v40 }
 0x267   :  { %v995_v44 = vld [vmem:[#allocation2 + $0x21] sm:$0xff]  ;;  %v996_v45 = vld [vmem:[#allocation2 + $0x29] sm:$0xff] }
 0x268   :  { %1105 = vst [vmem:[#allocation2 + $0x30] sm:$0xff] %v3969_v12 }
 0x269   :  { %1017 = vmatmul.f32.gmra.mxu1 %v995_v44  ;;  %v1140_v44 = vld [vmem:[#allocation10 + $0x238] sm:$0xff] }
 0x26a   :  { %1184 = vmatpush.msrb.mxu3 %v1140_v44  ;;  %v1288_v44 = vld [vmem:[#allocation13 + $0xa8] sm:$0xff] }
 0x271   :  { %1020 = vmatmul.f32.gmra.mxu1 %v996_v45  ;;  %v1139_v45 = vld [vmem:[#allocation10 + $0x230] sm:$0xff] }
 0x272   :  { %1185 = vmatpush.msrb.mxu3 %v1139_v45  ;;  %v1287_v45 = vld [vmem:[#allocation13 + $0xa0] sm:$0xff] }
 0x274   :  { %1186 = vmatpush.msrb.mxu3 %v1138_v46  ;;  %v1286_v46 = vld [vmem:[#allocation13 + $0x98] sm:$0xff] }
 0x276   :  { %1187 = vmatpush.msrb.mxu3 %v1137_v47  ;;  %v1285_v47 = vld [vmem:[#allocation13 + $0x90] sm:$0xff] }
 0x278   :  { %1188 = vmatpush.msrb.mxu3 %v1136_v49 }
 0x279   :  { %1023 = vmatmul.f32.gmra.mxu1 %v3958_v27 }
 0x27a   :  { %1189 = vmatpush.msrb.mxu3 %v1135_v52 }
 0x2cb   :  { %v953_v53 = vpop.f32.mrf.mxu3 }
 0x2cc   :  { %v983_v27 = vadd.f32 %v982_v54, %v953_v53  ;;  %v1121_v53 = vld [vmem:[#allocation10 + $0x1a8] sm:$0xff] }
 0x2cd   :  { %v985_v2 = vpop.f32.mrf.mxu0  ;;  %v1159_v54 = vld [vmem:[#allocation10 + $0x2c8] sm:$0xff]  ;;  %1215 = vmatpush.msrb.mxu0 %v1121_v53  ;;  %v1390_v53 = vld [vmem:[#allocation10 + $0x3f8] sm:$0xff] }
 0x2ce   :  { %1244 = vmatpush.msrb.mxu1 %v1159_v54  ;;  %v1373_v54 = vld [vmem:[#allocation10 + $0x378] sm:$0xff] }
 0x2d0   :  { %1245 = vmatpush.msrb.mxu1 %v1158_v56 }
 0x2d3   :  { %v956_v59 = vpop.f32.mrf.mxu3 }
 0x2d4   :  { %v986_v15 = vadd.f32 %v985_v2, %v956_v59  ;;  %v1157_v59 = vld [vmem:[#allocation10 + $0x2b8] sm:$0xff]  ;;  %v1154_v2 = vld [vmem:[#allocation10 + $0x2a0] sm:$0xff] }
 0x2d5   :  { %v988_v29 = vpop.f32.mrf.mxu0  ;;  %1246 = vmatpush.msrb.mxu1 %v1157_v59  ;;  %v1388_v59 = vld [vmem:[#allocation10 + $0x3e8] sm:$0xff] }
 0x2d7   :  { %1247 = vmatpush.msrb.mxu1 %v1156_v61 }
 0x2d9   :  { %1248 = vmatpush.msrb.mxu1 %v1155_v63 }
 0x2db   :  { %v959_v22 = vpop.f32.mrf.mxu3  ;;  %1249 = vmatpush.msrb.mxu1 %v1154_v2  ;;  %v1370_v2 = vld [vmem:[#allocation10 + $0x360] sm:$0xff] }
 0x2dc   :  { %v989_v36 = vadd.f32 %v988_v29, %v959_v22  ;;  %v1296_v22 = vld [vmem:[#allocation13 + $0xe8] sm:$0xff] }
 0x2dd   :  { %v991_v39 = vpop.f32.mrf.mxu0  ;;  %1250 = vmatpush.msrb.mxu1 %v1153_v3  ;;  %v1406_v3 = vld [vmem:[#allocation10 + $0x470] sm:$0xff] }
 0x2de   :  { %v1015_v60 = vpop.f32.mrf.mxu1 }
 0x2df   :  { %v1027_v62 = vadd.f32 %v1015_v60, %v983_v27  ;;  %v1120_v27 = vld [vmem:[#allocation10 + $0x1a0] sm:$0xff]  ;;  %v1118_v60 = vld [vmem:[#allocation10 + $0x190] sm:$0xff] }
 0x2e0   :  { %1216 = vmatpush.msrb.mxu0 %v1120_v27 }
 0x2e1   :  { %v1034_v4 = vadd.f32 %v3987_v55, %v1027_v62  ;;  %v1117_v62 = vld [vmem:[#allocation10 + $0x188] sm:$0xff] }
 0x2e2   :  { %1217 = vmatpush.msrb.mxu0 %v1119_v58 }
 0x2e3   :  { %v1038_v9 = vmax.f32 %v1034_v4, 0.0  ;;  %v962_v41 = vpop.f32.mrf.mxu3  ;;  %v1152_v4 = vld [vmem:[#allocation10 + $0x290] sm:$0xff] }
 0x2e4   :  { %v992_v35 = vadd.f32 %v991_v39, %v962_v41  ;;  %1218 = vmatpush.msrb.mxu0 %v1118_v60  ;;  %1251 = vmatpush.msrb.mxu1 %v1152_v4  ;;  %v1291_v41 = vld [vmem:[#allocation13 + $0xc0] sm:$0xff] }
 0x2e5   :  { %1078 = vmatmul.f32.vlgmr.msra.gmra.mxu2 %v1038_v9  ;;  %v1371_v60 = vld [vmem:[#allocation10 + $0x368] sm:$0xff] }
 0x2e6   :  { %v1018_v18 = vpop.f32.mrf.mxu1  ;;  %1219 = vmatpush.msrb.mxu0 %v1117_v62  ;;  %1252 = vmatpush.msrb.mxu1 %v1151_v5  ;;  %v1407_v62 = vld [vmem:[#allocation10 + $0x478] sm:$0xff]  ;;  %v1405_v4 = vld [vmem:[#allocation10 + $0x468] sm:$0xff] }
 0x2e7   :  { %v1028_v19 = vadd.f32 %v1018_v18, %v986_v15 }
 0x2e8   :  { %1220 = vmatpush.msrb.mxu0 %v1116_v1  ;;  %1253 = vmatpush.msrb.mxu1 %v1150_v6  ;;  %v1387_v1 = vld [vmem:[#allocation10 + $0x3e0] sm:$0xff]  ;;  %v1386_v6 = vld [vmem:[#allocation10 + $0x3d8] sm:$0xff] }
 0x2e9   :  { %v1035_v23 = vadd.f32 %v3987_v55, %v1028_v19  ;;  %v1298_v19 = vld [vmem:[#allocation13 + $0xf8] sm:$0xff] }
 0x2ea   :  { %1304 = vmatpush.msrb.mxu2 %v1298_v19  ;;  %1447 = vmatpush.msra.mxu0 %v1373_v54  ;;  %v1367_v19 = vld [vmem:[#allocation10 + $0x348] sm:$0xff]  ;;  %v1375_v54 = vld [vmem:[#allocation10 + $0x380] sm:$0xff] }
 0x2eb   :  { %v1039_v14 = vmax.f32 %v1035_v23, 0.0  ;;  %1480 = vmatpush.msra.mxu1 %v1407_v62  ;;  %v1395_v62 = vld [vmem:[#allocation10 + $0x418] sm:$0xff] }
 0x2ec   :  { %1305 = vmatpush.msrb.mxu2 %v1297_v20 }
 0x2ed   :  { %1081 = vmatmul.f32.gmra.mxu2 %v1039_v14  ;;  %1481 = vmatpush.msra.mxu1 %v1406_v3  ;;  %v3382_v3 = vld [vmem:[#allocation14 + $0x1] ss:$0 sm:$0xff] }
 0x2ee   :  { %v1021_v38 = vpop.f32.mrf.mxu1  ;;  %1306 = vmatpush.msrb.mxu2 %v1296_v22  ;;  %v1366_v22 = vld [vmem:[#allocation10 + $0x340] sm:$0xff] }
 0x2ef   :  { %v1029_v33 = vadd.f32 %v1021_v38, %v989_v36  ;;  %v1293_v36 = vld [vmem:[#allocation13 + $0xd0] sm:$0xff]  ;;  %1482 = vmatpush.msra.mxu1 %v1405_v4 }
 0x2f1   :  { %v1036_v34 = vadd.f32 %v3987_v55, %v1029_v33 }
 0x2f3   :  { %v1040_v32 = vmax.f32 %v1036_v34, 0.0  ;;  %v1292_v34 = vld [vmem:[#allocation13 + $0xc8] sm:$0xff] }
 0x2f5   :  { %1084 = vmatmul.f32.gmra.mxu2 %v1040_v32 }
 0x2f6   :  { %v1024_v40 = vpop.f32.mrf.mxu1 }
 0x2f7   :  { %v1030_v37 = vadd.f32 %v1024_v40, %v992_v35 }
 0x2f9   :  { %v1037_v42 = vadd.f32 %v3987_v55, %v1030_v37  ;;  %v1134_v55 = vld [vmem:[#allocation10 + $0x208] sm:$0xff] }
 0x2fa   :  { %1190 = vmatpush.msrb.mxu3 %v1134_v55  ;;  %v1389_v55 = vld [vmem:[#allocation10 + $0x3f0] sm:$0xff] }
 0x2fb   :  { %v1041_v43 = vmax.f32 %v1037_v42, 0.0 }
 0x2fc   :  { %1191 = vmatpush.msrb.mxu3 %v1133_v57  ;;  %v1372_v57 = vld [vmem:[#allocation10 + $0x370] sm:$0xff] }
 0x2fd   :  { %1087 = vmatmul.f32.gmra.mxu2 %v1041_v43  ;;  %v1289_v43 = vld [vmem:[#allocation13 + $0xb0] sm:$0xff]  ;;  %1448 = vmatpush.msra.mxu0 %v1372_v57  ;;  %v1398_v57 = vld [vmem:[#allocation10 + $0x430] sm:$0xff] }
 0x2fe   :  { %1418 = vmatpush.msra.mxu3 %v1390_v53  ;;  %v1400_v53 = vld [vmem:[#allocation10 + $0x440] sm:$0xff] }
 0x2ff   :  { %1449 = vmatpush.msra.mxu0 %v1371_v60  ;;  %v1358_v60 = vld [vmem:[#allocation10 + $0x300] sm:$0xff] }
 0x300   :  { %1419 = vmatpush.msra.mxu3 %v1389_v55  ;;  %v1361_v55 = vld [vmem:[#allocation10 + $0x318] sm:$0xff] }
 0x301   :  { %1450 = vmatpush.msra.mxu0 %v1370_v2  ;;  %v1392_v2 = vld [vmem:[#allocation10 + $0x400] sm:$0xff] }
 0x302   :  { %1420 = vmatpush.msra.mxu3 %v1388_v59  ;;  %v1397_v59 = vld [vmem:[#allocation10 + $0x428] sm:$0xff] }
 0x304   :  { %1421 = vmatpush.msra.mxu3 %v1387_v1  ;;  %v1393_v1 = vld [vmem:[#allocation10 + $0x408] sm:$0xff] }
 0x306   :  { %1422 = vmatpush.msra.mxu3 %v1386_v6 }
 0x368   :  { %v1079_v8 = vpop.f32.mrf.mxu2 }
 0x369   :  { %v1080_v9 = vadd.f32 %v3380_v7, %v1079_v8  ;;  %v1404_v8 = vld [vmem:[#allocation10 + $0x460] sm:$0xff] }
 0x36a   :  { %1483 = vmatpush.msra.mxu1 %v1404_v8 }
 0x36b   :  { %v3994_v10 = vadd.f32 %v1080_v9, %v3972_v24 }
 0x36d   :  { %v1095_v11 = vmax.f32 %v3994_v10, 0.0 }
 0x36f   :  { %1111 = vst [vmem:[#allocation2 + $0x10] sm:$0xff] %v1095_v11  ;;  %1192 = vmatmul.f32.vlgmr.msrb.gmra.mxu3 %v1095_v11  ;;  %v1385_v11 = vld [vmem:[#allocation10 + $0x3d0] sm:$0xff] }
 0x370   :  { %v1082_v13 = vpop.f32.mrf.mxu2  ;;  %1423 = vmatpush.msra.mxu3 %v1385_v11 }
 0x371   :  { %v1083_v15 = vadd.f32 %v3380_v7, %v1082_v13  ;;  %v1368_v13 = vld [vmem:[#allocation10 + $0x350] sm:$0xff] }
 0x373   :  { %v3998_v16 = vadd.f32 %v1083_v15, %v3975_v26  ;;  %v1295_v26 = vld [vmem:[#allocation13 + $0xe0] sm:$0xff] }
 0x374   :  { %1307 = vmatpush.msrb.mxu2 %v1295_v26 }
 0x375   :  { %v1096_v17 = vmax.f32 %v3998_v16, 0.0 }
 0x376   :  { %v1168_v18 = vld [vmem:[#allocation2 + $0xd] sm:$0xff]  ;;  %1308 = vmatpush.msrb.mxu2 %v1294_v28 }
 0x377   :  { %1112 = vst [vmem:[#allocation2 + $0x18] sm:$0xff] %v1096_v17  ;;  %1221 = vmatmul.f32.vlgmr.msrb.gmra.mxu0 %v1168_v18  ;;  %1195 = vmatmul.f32.gmra.mxu3 %v1096_v17  ;;  %v1384_v18 = vld [vmem:[#allocation10 + $0x3c8] sm:$0xff] }
 0x378   :  { %1342 = vst [vmem:[#allocation2 + $0x8] sm:$0xff] %v3969_v12  ;;  %v1085_v24 = vpop.f32.mrf.mxu2  ;;  %1309 = vmatpush.msrb.mxu2 %v1293_v36  ;;  %1424 = vmatpush.msra.mxu3 %v1384_v18  ;;  %v1539_v18 = vld [vmem:[#allocation13 + $0x170] sm:$0xff] }
 0x379   :  { %v1086_v21 = vadd.f32 %v3380_v7, %v1085_v24 }
 0x37a   :  { %1310 = vmatpush.msrb.mxu2 %v1292_v34 }
 0x37b   :  { %v4003_v23 = vadd.f32 %v1086_v21, %v3979_v30  ;;  %v1383_v21 = vld [vmem:[#allocation10 + $0x3c0] sm:$0xff] }
 0x37c   :  { %1311 = vmatpush.msrb.mxu2 %v1291_v41  ;;  %1425 = vmatpush.msra.mxu3 %v1383_v21 }
 0x37d   :  { %v1097_v25 = vmax.f32 %v4003_v23, 0.0 }
 0x37e   :  { %v1169_v29 = vld [vmem:[#allocation2 + $0x15] sm:$0xff] }
 0x37f   :  { %v1234_v14 = vld [vmem:[#allocation2 + $0x13] sm:$0xff]  ;;  %1113 = vst [vmem:[#allocation2 + $0x20] sm:$0xff] %v1097_v25  ;;  %1224 = vmatmul.f32.gmra.mxu0 %v1169_v29  ;;  %1198 = vmatmul.f32.gmra.mxu3 %v1097_v25 }
 0x380   :  { %1254 = vmatmul.f32.vlgmr.msrb.gmra.mxu1 %v1234_v14  ;;  %v1088_v38 = vpop.f32.mrf.mxu2 }
 0x381   :  { %v1089_v33 = vadd.f32 %v3380_v7, %v1088_v38  ;;  %v1369_v7 = vld [vmem:[#allocation10 + $0x358] sm:$0xff] }
 0x382   :  { %1451 = vmatpush.msra.mxu0 %v1369_v7 }
 0x383   :  { %v4007_v30 = vadd.f32 %v1089_v33, %v3982_v31  ;;  %v1290_v31 = vld [vmem:[#allocation13 + $0xb8] sm:$0xff] }
 0x384   :  { %1312 = vmatpush.msrb.mxu2 %v1290_v31  ;;  %1452 = vmatpush.msra.mxu0 %v1368_v13  ;;  %v1380_v31 = vld [vmem:[#allocation10 + $0x3a8] sm:$0xff] }
 0x385   :  { %v1098_v32 = vmax.f32 %v4007_v30, 0.0 }
 0x386   :  { %v1170_v39 = vld [vmem:[#allocation2 + $0x1d] sm:$0xff]  ;;  %1313 = vmatpush.msrb.mxu2 %v1289_v43  ;;  %1453 = vmatpush.msra.mxu0 %v1367_v19  ;;  %v1379_v43 = vld [vmem:[#allocation10 + $0x3a0] sm:$0xff] }
 0x387   :  { %v1235_v35 = vld [vmem:[#allocation2 + $0x1b] sm:$0xff]  ;;  %1114 = vst [vmem:[#allocation2 + $0x28] sm:$0xff] %v1098_v32  ;;  %1227 = vmatmul.f32.gmra.mxu0 %v1170_v39  ;;  %1201 = vmatmul.f32.gmra.mxu3 %v1098_v32 }
 0x388   :  { %1257 = vmatmul.f32.gmra.mxu1 %v1235_v35  ;;  %1314 = vmatpush.msrb.mxu2 %v1288_v44  ;;  %v1365_v44 = vld [vmem:[#allocation10 + $0x338] sm:$0xff] }
 0x389   :  { %1454 = vmatpush.msra.mxu0 %v1366_v22  ;;  %v1536_v22 = vld [vmem:[#allocation13 + $0x158] sm:$0xff] }
 0x38a   :  { %1315 = vmatpush.msrb.mxu2 %v1287_v45  ;;  %v1403_v45 = vld [vmem:[#allocation10 + $0x458] sm:$0xff] }
 0x38b   :  { %1455 = vmatpush.msra.mxu0 %v1365_v44  ;;  %1484 = vmatpush.msra.mxu1 %v1403_v45  ;;  %v1526_v44 = vld [vmem:[#allocation13 + $0x108] sm:$0xff]  ;;  %v1525_v45 = vld [vmem:[#allocation13 + $0x100] sm:$0xff] }
 0x38c   :  { %1316 = vmatpush.msrb.mxu2 %v1286_v46  ;;  %v1378_v46 = vld [vmem:[#allocation10 + $0x398] sm:$0xff] }
 0x38e   :  { %v1171_v40 = vld [vmem:[#allocation2 + $0x25] sm:$0xff]  ;;  %1317 = vmatpush.msrb.mxu2 %v1285_v47  ;;  %v1364_v47 = vld [vmem:[#allocation10 + $0x330] sm:$0xff] }
 0x38f   :  { %v1236_v37 = vld [vmem:[#allocation2 + $0x23] sm:$0xff]  ;;  %v1237_v42 = vld [vmem:[#allocation2 + $0x2b] sm:$0xff]  ;;  %1230 = vmatmul.f32.gmra.mxu0 %v1171_v40 }
 0x390   :  { %1347 = vst [vmem:[#allocation2 + $0x30] sm:$0xff] %v3969_v12  ;;  %1260 = vmatmul.f32.gmra.mxu1 %v1236_v37  ;;  %1318 = vmatpush.msrb.mxu2 %v1284_v0  ;;  %v1382_v37 = vld [vmem:[#allocation10 + $0x3b8] sm:$0xff]  ;;  %v1402_v0 = vld [vmem:[#allocation10 + $0x450] sm:$0xff] }
 0x391   :  { %1426 = vmatpush.msra.mxu3 %v1382_v37  ;;  %1456 = vmatpush.msra.mxu0 %v1364_v47  ;;  %v1530_v37 = vld [vmem:[#allocation13 + $0x128] sm:$0xff]  ;;  %v4035_v47 = vld [vmem:[#allocation11 + $0x2] ss:$0 sm:$0xff] }
 0x392   :  { %1319 = vmatpush.msrb.mxu2 %v1283_v48  ;;  %v1377_v48 = vld [vmem:[#allocation10 + $0x390] sm:$0xff]  ;;  %1485 = vmatpush.msra.mxu1 %v1402_v0 }
 0x398   :  { %1263 = vmatmul.f32.gmra.mxu1 %v1237_v42  ;;  %v1381_v42 = vld [vmem:[#allocation10 + $0x3b0] sm:$0xff] }
 0x399   :  { %1427 = vmatpush.msra.mxu3 %v1381_v42  ;;  %v1529_v42 = vld [vmem:[#allocation13 + $0x120] sm:$0xff] }
 0x39b   :  { %1428 = vmatpush.msra.mxu3 %v1380_v31  ;;  %v1528_v31 = vld [vmem:[#allocation13 + $0x118] sm:$0xff] }
 0x39d   :  { %1429 = vmatpush.msra.mxu3 %v1379_v43  ;;  %v1527_v43 = vld [vmem:[#allocation13 + $0x110] sm:$0xff] }
 0x39f   :  { %1430 = vmatpush.msra.mxu3 %v1378_v46 }
 0x3a1   :  { %1431 = vmatpush.msra.mxu3 %v1377_v48  ;;  %v1628_v48 = vld [vmem:[#allocation7 + $0x2f8] sm:$0xff] }
 0x3f2   :  { %v1193_v50 = vpop.f32.mrf.mxu3 }
 0x3f4   :  { %v1222_v49 = vpop.f32.mrf.mxu0 }
 0x3f5   :  { %v1223_v52 = vadd.f32 %v1222_v49, %v1193_v50  ;;  %v1363_v49 = vld [vmem:[#allocation10 + $0x328] sm:$0xff] }
 0x3f6   :  { %v1401_v50 = vld [vmem:[#allocation10 + $0x448] sm:$0xff]  ;;  %1457 = vmatpush.msra.mxu0 %v1363_v49  ;;  %v1611_v49 = vld [vmem:[#allocation7 + $0x278] sm:$0xff] }
 0x3f7   :  { %1486 = vmatpush.msra.mxu1 %v1401_v50  ;;  %v1627_v50 = vld [vmem:[#allocation7 + $0x2f0] sm:$0xff] }
 0x3f9   :  { %1487 = vmatpush.msra.mxu1 %v1400_v53  ;;  %v1610_v53 = vld [vmem:[#allocation7 + $0x270] sm:$0xff] }
 0x3fa   :  { %v1196_v61 = vpop.f32.mrf.mxu3 }
 0x3fc   :  { %v1225_v27 = vpop.f32.mrf.mxu0 }
 0x3fd   :  { %v1255_v56 = vpop.f32.mrf.mxu1  ;;  %v1226_v9 = vadd.f32 %v1225_v27, %v1196_v61  ;;  %v1399_v27 = vld [vmem:[#allocation10 + $0x438] sm:$0xff]  ;;  %v1396_v61 = vld [vmem:[#allocation10 + $0x420] sm:$0xff] }
 0x3fe   :  { %v1267_v58 = vadd.f32 %v1255_v56, %v1223_v52  ;;  %v1362_v52 = vld [vmem:[#allocation10 + $0x320] sm:$0xff]  ;;  %1488 = vmatpush.msra.mxu1 %v1399_v27  ;;  %v1360_v56 = vld [vmem:[#allocation10 + $0x310] sm:$0xff] }
 0x3ff   :  { %1458 = vmatpush.msra.mxu0 %v1362_v52  ;;  %v1609_v27 = vld [vmem:[#allocation7 + $0x268] sm:$0xff] }
 0x400   :  { %v1274_v63 = vadd.f32 %v4011_v51, %v1267_v58  ;;  %1489 = vmatpush.msra.mxu1 %v1398_v57  ;;  %v1359_v58 = vld [vmem:[#allocation10 + $0x308] sm:$0xff]  ;;  %v1645_v57 = vld [vmem:[#allocation7 + $0x378] sm:$0xff] }
 0x401   :  { %1459 = vmatpush.msra.mxu0 %v1361_v55  ;;  %v1626_v55 = vld [vmem:[#allocation7 + $0x2e8] sm:$0xff] }
 0x402   :  { %v1278_v5 = vmax.f32 %v1274_v63, 0.0  ;;  %v1199_v26 = vpop.f32.mrf.mxu3  ;;  %1490 = vmatpush.msra.mxu1 %v1397_v59  ;;  %v1394_v63 = vld [vmem:[#allocation10 + $0x410] sm:$0xff] }
 0x403   :  { %1460 = vmatpush.msra.mxu0 %v1360_v56 }
 0x404   :  { %1320 = vmatmul.f32.vlgmr.msrb.gmra.mxu2 %v1278_v5  ;;  %v1228_v20 = vpop.f32.mrf.mxu0  ;;  %1491 = vmatpush.msra.mxu1 %v1396_v61  ;;  %v1608_v61 = vld [vmem:[#allocation7 + $0x260] sm:$0xff] }
 0x405   :  { %v1258_v15 = vpop.f32.mrf.mxu1  ;;  %v1229_v28 = vadd.f32 %v1228_v20, %v1199_v26  ;;  %1461 = vmatpush.msra.mxu0 %v1359_v58  ;;  %v1538_v20 = vld [vmem:[#allocation13 + $0x168] sm:$0xff] }
 0x406   :  { %v1268_v17 = vadd.f32 %v1258_v15, %v1226_v9  ;;  %1492 = vmatpush.msra.mxu1 %v1395_v62  ;;  %v1662_v58 = vld [vmem:[#allocation7 + $0x3f8] sm:$0xff]  ;;  %v1644_v62 = vld [vmem:[#allocation7 + $0x370] sm:$0xff] }
 0x407   :  { %1462 = vmatpush.msra.mxu0 %v1358_v60  ;;  %v1625_v60 = vld [vmem:[#allocation7 + $0x2e0] sm:$0xff] }
 0x408   :  { %v1275_v24 = vadd.f32 %v4011_v51, %v1268_v17  ;;  %1493 = vmatpush.msra.mxu1 %v1394_v63  ;;  %v1540_v17 = vld [vmem:[#allocation13 + $0x178] sm:$0xff]  ;;  %v1661_v63 = vld [vmem:[#allocation7 + $0x3f0] sm:$0xff] }
 0x409   :  { %1546 = vmatpush.msra.mxu2 %v1540_v17  ;;  %1702 = vmatpush.msrb.mxu0 %v1611_v49  ;;  %v1659_v17 = vld [vmem:[#allocation7 + $0x3e0] sm:$0xff]  ;;  %v1615_v49 = vld [vmem:[#allocation7 + $0x290] sm:$0xff] }
 0x40a   :  { %v1279_v25 = vmax.f32 %v1275_v24, 0.0  ;;  %v1202_v34 = vpop.f32.mrf.mxu3  ;;  %1494 = vmatpush.msra.mxu1 %v1393_v1 }
 0x40b   :  { %1547 = vmatpush.msra.mxu2 %v1539_v18  ;;  %1703 = vmatpush.msrb.mxu0 %v1610_v53  ;;  %v1641_v18 = vld [vmem:[#allocation7 + $0x358] sm:$0xff]  ;;  %v1600_v53 = vld [vmem:[#allocation7 + $0x220] sm:$0xff] }
 0x40c   :  { %1323 = vmatmul.f32.gmra.mxu2 %v1279_v25  ;;  %v1231_v38 = vpop.f32.mrf.mxu0  ;;  %1495 = vmatpush.msra.mxu1 %v1392_v2  ;;  %v1624_v2 = vld [vmem:[#allocation7 + $0x2d8] sm:$0xff] }
 0x40d   :  { %v1261_v29 = vpop.f32.mrf.mxu1  ;;  %v1232_v41 = vadd.f32 %v1231_v38, %v1202_v34  ;;  %1548 = vmatpush.msra.mxu2 %v1538_v20  ;;  %v1533_v38 = vld [vmem:[#allocation13 + $0x140] sm:$0xff]  ;;  %1704 = vmatpush.msrb.mxu0 %v1609_v27  ;;  %v1599_v27 = vld [vmem:[#allocation7 + $0x218] sm:$0xff] }
 0x40e   :  { %v1269_v14 = vadd.f32 %v1261_v29, %v1229_v28  ;;  %v1535_v28 = vld [vmem:[#allocation13 + $0x150] sm:$0xff]  ;;  %1735 = vmatpush.msrb.mxu1 %v1645_v57  ;;  %v1605_v20 = vld [vmem:[#allocation7 + $0x248] sm:$0xff] }
 0x40f   :  { %1705 = vmatpush.msrb.mxu0 %v1608_v61  ;;  %v1654_v57 = vld [vmem:[#allocation7 + $0x3b8] sm:$0xff]  ;;  %v1653_v61 = vld [vmem:[#allocation7 + $0x3b0] sm:$0xff] }
 0x410   :  { %v1276_v36 = vadd.f32 %v4011_v51, %v1269_v14  ;;  %1736 = vmatpush.msrb.mxu1 %v1644_v62  ;;  %v1597_v62 = vld [vmem:[#allocation7 + $0x208] sm:$0xff] }
 0x412   :  { %v1280_v33 = vmax.f32 %v1276_v36, 0.0  ;;  %v1534_v36 = vld [vmem:[#allocation13 + $0x148] sm:$0xff] }
 0x414   :  { %1326 = vmatmul.f32.gmra.mxu2 %v1280_v33 }
 0x415   :  { %v1264_v32 = vpop.f32.mrf.mxu1 }
 0x416   :  { %v1270_v39 = vadd.f32 %v1264_v32, %v1232_v41 }
 0x418   :  { %v1277_v35 = vadd.f32 %v4011_v51, %v1270_v39  ;;  %v1376_v51 = vld [vmem:[#allocation10 + $0x388] sm:$0xff] }
 0x419   :  { %1432 = vmatpush.msra.mxu3 %v1376_v51 }
 0x41a   :  { %v1281_v40 = vmax.f32 %v1277_v35, 0.0 }
 0x41b   :  { %1433 = vmatpush.msra.mxu3 %v1375_v54 }
 0x41c   :  { %1329 = vmatmul.f32.gmra.mxu2 %v1281_v40  ;;  %v1531_v40 = vld [vmem:[#allocation13 + $0x130] sm:$0xff] }
 0x41d   :  { %1673 = vmatpush.msrb.mxu3 %v1628_v48  ;;  %v1657_v48 = vld [vmem:[#allocation7 + $0x3d0] sm:$0xff] }
 0x41f   :  { %1674 = vmatpush.msrb.mxu3 %v1627_v50  ;;  %v1601_v50 = vld [vmem:[#allocation7 + $0x228] sm:$0xff] }
 0x421   :  { %1675 = vmatpush.msrb.mxu3 %v1626_v55  ;;  %v1655_v55 = vld [vmem:[#allocation7 + $0x3c0] sm:$0xff] }
 0x423   :  { %1676 = vmatpush.msrb.mxu3 %v1625_v60  ;;  %v1636_v60 = vld [vmem:[#allocation7 + $0x330] sm:$0xff] }
 0x425   :  { %1677 = vmatpush.msrb.mxu3 %v1624_v2  ;;  %v1596_v2 = vld [vmem:[#allocation7 + $0x200] sm:$0xff] }
 0x487   :  { %v1321_v4 = vpop.f32.mrf.mxu2 }
 0x488   :  { %v1322_v5 = vadd.f32 %v3382_v3, %v1321_v4  ;;  %v1643_v4 = vld [vmem:[#allocation7 + $0x368] sm:$0xff] }
 0x489   :  { %1737 = vmatpush.msrb.mxu1 %v1643_v4  ;;  %v1651_v4 = vld [vmem:[#allocation7 + $0x3a0] sm:$0xff] }
 0x48a   :  { %v4018_v6 = vadd.f32 %v1322_v5, %v3994_v10  ;;  %v1660_v5 = vld [vmem:[#allocation7 + $0x3e8] sm:$0xff] }
 0x48c   :  { %v1337_v7 = vmax.f32 %v4018_v6, 0.0 }
 0x48e   :  { %1353 = vst [vmem:[#allocation2 + $0x10] sm:$0xff] %v1337_v7  ;;  %1434 = vmatmul.f32.vlgmr.msra.gmra.mxu3 %v1337_v7  ;;  %v1642_v7 = vld [vmem:[#allocation7 + $0x360] sm:$0xff] }
 0x48f   :  { %v1324_v8 = vpop.f32.mrf.mxu2  ;;  %1738 = vmatpush.msrb.mxu1 %v1642_v7  ;;  %v1650_v7 = vld [vmem:[#allocation7 + $0x398] sm:$0xff] }
 0x490   :  { %v1325_v9 = vadd.f32 %v3382_v3, %v1324_v8 }
 0x491   :  { %1739 = vmatpush.msrb.mxu1 %v1641_v18  ;;  %v1647_v18 = vld [vmem:[#allocation7 + $0x380] sm:$0xff] }
 0x492   :  { %v4022_v11 = vadd.f32 %v1325_v9, %v3998_v16  ;;  %v1537_v16 = vld [vmem:[#allocation13 + $0x160] sm:$0xff] }
 0x493   :  { %1549 = vmatpush.msra.mxu2 %v1537_v16  ;;  %v1623_v9 = vld [vmem:[#allocation7 + $0x2d0] sm:$0xff] }
 0x494   :  { %v1338_v13 = vmax.f32 %v4022_v11, 0.0  ;;  %1678 = vmatpush.msrb.mxu3 %v1623_v9  ;;  %v1649_v9 = vld [vmem:[#allocation7 + $0x390] sm:$0xff] }
 0x495   :  { %v1410_v15 = vld [vmem:[#allocation2 + $0xf] sm:$0xff]  ;;  %1550 = vmatpush.msra.mxu2 %v1536_v22 }
 0x496   :  { %1354 = vst [vmem:[#allocation2 + $0x18] sm:$0xff] %v1338_v13  ;;  %1463 = vmatmul.f32.vlgmr.msra.gmra.mxu0 %v1410_v15  ;;  %1437 = vmatmul.f32.gmra.mxu3 %v1338_v13  ;;  %v1606_v13 = vld [vmem:[#allocation7 + $0x250] sm:$0xff] }
 0x497   :  { %1580 = vst [vmem:[#allocation2 + $0x8] sm:$0xff] %v3969_v12  ;;  %v1327_v10 = vpop.f32.mrf.mxu2  ;;  %1551 = vmatpush.msra.mxu2 %v1535_v28 }
 0x498   :  { %v1328_v19 = vadd.f32 %v3382_v3, %v1327_v10 }
 0x499   :  { %1552 = vmatpush.msra.mxu2 %v1534_v36  ;;  %v1603_v36 = vld [vmem:[#allocation7 + $0x238] sm:$0xff] }
 0x49a   :  { %v4027_v24 = vadd.f32 %v1328_v19, %v4003_v23  ;;  %v1622_v19 = vld [vmem:[#allocation7 + $0x2c8] sm:$0xff] }
 0x49b   :  { %1553 = vmatpush.msra.mxu2 %v1533_v38  ;;  %1679 = vmatpush.msrb.mxu3 %v1622_v19 }
 0x49c   :  { %v1339_v21 = vmax.f32 %v4027_v24, 0.0 }
 0x49d   :  { %v1411_v26 = vld [vmem:[#allocation2 + $0x17] sm:$0xff] }
 0x49e   :  { %v1476_v25 = vld [vmem:[#allocation2 + $0x11] sm:$0xff]  ;;  %1355 = vst [vmem:[#allocation2 + $0x20] sm:$0xff] %v1339_v21  ;;  %1466 = vmatmul.f32.gmra.mxu0 %v1411_v26  ;;  %1440 = vmatmul.f32.gmra.mxu3 %v1339_v21  ;;  %v1658_v21 = vld [vmem:[#allocation7 + $0x3d8] sm:$0xff]  ;;  %v1621_v26 = vld [vmem:[#allocation7 + $0x2c0] sm:$0xff] }
 0x49f   :  { %1496 = vmatmul.f32.vlgmr.msra.gmra.mxu1 %v1476_v25  ;;  %v1330_v29 = vpop.f32.mrf.mxu2  ;;  %v1604_v25 = vld [vmem:[#allocation7 + $0x240] sm:$0xff]  ;;  %1680 = vmatpush.msrb.mxu3 %v1621_v26 }
 0x4a0   :  { %v1331_v14 = vadd.f32 %v3382_v3, %v1330_v29  ;;  %v1607_v3 = vld [vmem:[#allocation7 + $0x258] sm:$0xff] }
 0x4a1   :  { %1706 = vmatpush.msrb.mxu0 %v1607_v3  ;;  %v1634_v3 = vld [vmem:[#allocation7 + $0x320] sm:$0xff] }
 0x4a2   :  { %v4031_v23 = vadd.f32 %v1331_v14, %v4007_v30  ;;  %v1532_v30 = vld [vmem:[#allocation13 + $0x138] sm:$0xff]  ;;  %v1620_v14 = vld [vmem:[#allocation7 + $0x2b8] sm:$0xff] }
 0x4a3   :  { %1554 = vmatpush.msra.mxu2 %v1532_v30  ;;  %1707 = vmatpush.msrb.mxu0 %v1606_v13  ;;  %v1631_v13 = vld [vmem:[#allocation7 + $0x308] sm:$0xff] }
 0x4a4   :  { %v1340_v33 = vmax.f32 %v4031_v23, 0.0  ;;  %1681 = vmatpush.msrb.mxu3 %v1620_v14 }
 0x4a5   :  { %v1412_v34 = vld [vmem:[#allocation2 + $0x1f] sm:$0xff]  ;;  %1555 = vmatpush.msra.mxu2 %v1531_v40  ;;  %1708 = vmatpush.msrb.mxu0 %v1605_v20 }
 0x4a6   :  { %v1477_v41 = vld [vmem:[#allocation2 + $0x19] sm:$0xff]  ;;  %1356 = vst [vmem:[#allocation2 + $0x28] sm:$0xff] %v1340_v33  ;;  %1469 = vmatmul.f32.gmra.mxu0 %v1412_v34  ;;  %1443 = vmatmul.f32.gmra.mxu3 %v1340_v33 }
 0x4a7   :  { %1499 = vmatmul.f32.gmra.mxu1 %v1477_v41  ;;  %1556 = vmatpush.msra.mxu2 %v1530_v37 }
 0x4a8   :  { %1709 = vmatpush.msrb.mxu0 %v1604_v25 }
 0x4a9   :  { %1557 = vmatpush.msra.mxu2 %v1529_v42 }
 0x4aa   :  { %1710 = vmatpush.msrb.mxu0 %v1603_v36 }
 0x4ab   :  { %1558 = vmatpush.msra.mxu2 %v1528_v31 }
 0x4ad   :  { %v1413_v32 = vld [vmem:[#allocation2 + $0x27] sm:$0xff]  ;;  %1559 = vmatpush.msra.mxu2 %v1527_v43  ;;  %v1619_v43 = vld [vmem:[#allocation7 + $0x2b0] sm:$0xff] }
 0x4ae   :  { %v1478_v39 = vld [vmem:[#allocation2 + $0x21] sm:$0xff]  ;;  %v1479_v35 = vld [vmem:[#allocation2 + $0x29] sm:$0xff]  ;;  %1472 = vmatmul.f32.gmra.mxu0 %v1413_v32  ;;  %1682 = vmatpush.msrb.mxu3 %v1619_v43 }
 0x4af   :  { %1585 = vst [vmem:[#allocation2 + $0x30] sm:$0xff] %v3969_v12  ;;  %1502 = vmatmul.f32.gmra.mxu1 %v1478_v39  ;;  %1560 = vmatpush.msra.mxu2 %v1526_v44  ;;  %v1618_v44 = vld [vmem:[#allocation7 + $0x2a8] sm:$0xff] }
 0x4b0   :  { %1683 = vmatpush.msrb.mxu3 %v1618_v44 }
 0x4b1   :  { %1561 = vmatpush.msra.mxu2 %v1525_v45  ;;  %v1617_v45 = vld [vmem:[#allocation7 + $0x2a0] sm:$0xff] }
 0x4b2   :  { %1684 = vmatpush.msrb.mxu3 %v1617_v45 }
 0x4b3   :  { %1772 = vmatpush.msrb.mxu2 %v1662_v58  ;;  %v1613_v58 = vld [vmem:[#allocation7 + $0x280] sm:$0xff] }
 0x4b5   :  { %1773 = vmatpush.msrb.mxu2 %v1661_v63  ;;  %v1635_v63 = vld [vmem:[#allocation7 + $0x328] sm:$0xff] }
 0x4b7   :  { %1505 = vmatmul.f32.gmra.mxu1 %v1479_v35  ;;  %1774 = vmatpush.msrb.mxu2 %v1660_v5  ;;  %v1633_v5 = vld [vmem:[#allocation7 + $0x318] sm:$0xff] }
 0x4b9   :  { %1775 = vmatpush.msrb.mxu2 %v1659_v17  ;;  %v1630_v17 = vld [vmem:[#allocation7 + $0x300] sm:$0xff] }
 0x4bb   :  { %1776 = vmatpush.msrb.mxu2 %v1658_v21 }
 0x4bd   :  { %1777 = vmatpush.msrb.mxu2 %v1657_v48 }
 0x511   :  { %v1435_v46 = vpop.f32.mrf.mxu3 }
 0x513   :  { %v1464_v12 = vpop.f32.mrf.mxu0 }
 0x514   :  { %v1465_v0 = vadd.f32 %v1464_v12, %v1435_v46  ;;  %v1616_v12 = vld [vmem:[#allocation7 + $0x298] sm:$0xff]  ;;  %v1602_v46 = vld [vmem:[#allocation7 + $0x230] sm:$0xff] }
 0x515   :  { %1685 = vmatpush.msrb.mxu3 %v1616_v12  ;;  %1711 = vmatpush.msrb.mxu0 %v1602_v46 }
 0x517   :  { %1686 = vmatpush.msrb.mxu3 %v1615_v49  ;;  %1712 = vmatpush.msrb.mxu0 %v1601_v50 }
 0x519   :  { %v1438_v56 = vpop.f32.mrf.mxu3  ;;  %1713 = vmatpush.msrb.mxu0 %v1600_v53  ;;  %v1896_v53 = vld [vmem:[#allocation10 + $0x578] sm:$0xff] }
 0x51b   :  { %v1467_v51 = vpop.f32.mrf.mxu0  ;;  %1714 = vmatpush.msrb.mxu0 %v1599_v27  ;;  %v1911_v27 = vld [vmem:[#allocation10 + $0x5e8] sm:$0xff] }
 0x51c   :  { %v1497_v52 = vpop.f32.mrf.mxu1  ;;  %v1468_v8 = vadd.f32 %v1467_v51, %v1438_v56  ;;  %v1639_v51 = vld [vmem:[#allocation7 + $0x348] sm:$0xff]  ;;  %v1637_v56 = vld [vmem:[#allocation7 + $0x338] sm:$0xff] }
 0x51d   :  { %v1509_v54 = vadd.f32 %v1497_v52, %v1465_v0  ;;  %v1640_v0 = vld [vmem:[#allocation7 + $0x350] sm:$0xff]  ;;  %v1614_v52 = vld [vmem:[#allocation7 + $0x288] sm:$0xff] }
 0x51e   :  { %1740 = vmatpush.msrb.mxu1 %v1640_v0  ;;  %1687 = vmatpush.msrb.mxu3 %v1614_v52  ;;  %v1912_v52 = vld [vmem:[#allocation10 + $0x5f0] sm:$0xff] }
 0x51f   :  { %v1516_v59 = vadd.f32 %v4035_v47, %v1509_v54  ;;  %v1638_v54 = vld [vmem:[#allocation7 + $0x340] sm:$0xff] }
 0x520   :  { %1741 = vmatpush.msrb.mxu1 %v1639_v51  ;;  %1688 = vmatpush.msrb.mxu3 %v1613_v58  ;;  %v1877_v58 = vld [vmem:[#allocation10 + $0x4e8] sm:$0xff] }
 0x521   :  { %v1520_v1 = vmax.f32 %v1516_v59, 0.0  ;;  %v1441_v28 = vpop.f32.mrf.mxu3  ;;  %v1598_v59 = vld [vmem:[#allocation7 + $0x210] sm:$0xff] }
 0x522   :  { %1742 = vmatpush.msrb.mxu1 %v1638_v54  ;;  %1715 = vmatpush.msrb.mxu0 %v1598_v59  ;;  %v1879_v54 = vld [vmem:[#allocation10 + $0x4f8] sm:$0xff] }
 0x523   :  { %1562 = vmatmul.f32.vlgmr.msra.gmra.mxu2 %v1520_v1  ;;  %v1470_v16 = vpop.f32.mrf.mxu0  ;;  %v1652_v1 = vld [vmem:[#allocation7 + $0x3a8] sm:$0xff] }
 0x524   :  { %v1500_v15 = vpop.f32.mrf.mxu1  ;;  %v1471_v38 = vadd.f32 %v1470_v16, %v1441_v28  ;;  %1743 = vmatpush.msrb.mxu1 %v1637_v56  ;;  %1716 = vmatpush.msrb.mxu0 %v1597_v62  ;;  %v4043_v28 = vld [vmem:[#allocation2 + $0x58] sm:$0xff]  ;;  %v1893_v62 = vld [vmem:[#allocation10 + $0x560] sm:$0xff] }
 0x525   :  { %v1510_v10 = vadd.f32 %v1500_v15, %v1468_v8  ;;  %v1632_v8 = vld [vmem:[#allocation7 + $0x310] sm:$0xff]  ;;  %v1648_v15 = vld [vmem:[#allocation7 + $0x388] sm:$0xff] }
 0x526   :  { %1744 = vmatpush.msrb.mxu1 %v1636_v60  ;;  %1717 = vmatpush.msrb.mxu0 %v1596_v2  ;;  %v1878_v56 = vld [vmem:[#allocation10 + $0x4f0] sm:$0xff]  ;;  %v1909_v2 = vld [vmem:[#allocation10 + $0x5d8] sm:$0xff] }
 0x527   :  { %v1517_v22 = vadd.f32 %v4035_v47, %v1510_v10  ;;  %v3384_v10 = vld [vmem:[#allocation14 + $0x2] ss:$0 sm:$0xff] }
 0x528   :  { %1745 = vmatpush.msrb.mxu1 %v1635_v63  ;;  %1920 = vmatpush.msra.mxu0 %v1896_v53  ;;  %v1876_v63 = vld [vmem:[#allocation10 + $0x4e0] sm:$0xff]  ;;  %v1905_v53 = vld [vmem:[#allocation10 + $0x5b8] sm:$0xff] }
 0x529   :  { %v1521_v29 = vmax.f32 %v1517_v22, 0.0  ;;  %v1444_v35 = vpop.f32.mrf.mxu3 }
 0x52a   :  { %1746 = vmatpush.msrb.mxu1 %v1634_v3 }
 0x52b   :  { %1565 = vmatmul.f32.gmra.mxu2 %v1521_v29  ;;  %v1473_v32 = vpop.f32.mrf.mxu0 }
 0x52c   :  { %v1503_v33 = vpop.f32.mrf.mxu1  ;;  %v1474_v30 = vadd.f32 %v1473_v32, %v1444_v35  ;;  %1747 = vmatpush.msrb.mxu1 %v1633_v5  ;;  %v1908_v5 = vld [vmem:[#allocation10 + $0x5d0] sm:$0xff] }
 0x52d   :  { %v1511_v34 = vadd.f32 %v1503_v33, %v1471_v38 }
 0x52e   :  { %1748 = vmatpush.msrb.mxu1 %v1632_v8 }
 0x52f   :  { %v1518_v41 = vadd.f32 %v4035_v47, %v1511_v34 }
 0x530   :  { %1749 = vmatpush.msrb.mxu1 %v1631_v13 }
 0x531   :  { %v1522_v39 = vmax.f32 %v1518_v41, 0.0 }
 0x532   :  { %1750 = vmatpush.msrb.mxu1 %v1630_v17 }
 0x533   :  { %1568 = vmatmul.f32.gmra.mxu2 %v1522_v39 }
 0x534   :  { %v1506_v40 = vpop.f32.mrf.mxu1  ;;  %1943 = vmatpush.msra.mxu1 %v1879_v54  ;;  %v1904_v54 = vld [vmem:[#allocation10 + $0x5b0] sm:$0xff] }
 0x535   :  { %v1512_v37 = vadd.f32 %v1506_v40, %v1474_v30 }
 0x536   :  { %1944 = vmatpush.msra.mxu1 %v1878_v56  ;;  %v1901_v56 = vld [vmem:[#allocation10 + $0x598] sm:$0xff] }
 0x537   :  { %v1519_v42 = vadd.f32 %v4035_v47, %v1512_v37  ;;  %v1656_v47 = vld [vmem:[#allocation7 + $0x3c8] sm:$0xff] }
 0x538   :  { %1778 = vmatpush.msrb.mxu2 %v1656_v47  ;;  %v1913_v47 = vld [vmem:[#allocation10 + $0x5f8] sm:$0xff]  ;;  %1945 = vmatpush.msra.mxu1 %v1877_v58  ;;  %v1899_v58 = vld [vmem:[#allocation10 + $0x588] sm:$0xff] }
 0x539   :  { %v1523_v31 = vmax.f32 %v1519_v42, 0.0 }
 0x53a   :  { %1779 = vmatpush.msrb.mxu2 %v1655_v55  ;;  %v1895_v55 = vld [vmem:[#allocation10 + $0x570] sm:$0xff]  ;;  %1946 = vmatpush.msra.mxu1 %v1876_v63 }
 0x53b   :  { %1571 = vmatmul.f32.gmra.mxu2 %v1523_v31  ;;  %1921 = vmatpush.msra.mxu0 %v1895_v55  ;;  %v1903_v55 = vld [vmem:[#allocation10 + $0x5a8] sm:$0xff]  ;;  %v2014_v63 = vld [vmem:[#allocation13 + $0x1e8] sm:$0xff] }
 0x53c   :  { %1780 = vmatpush.msrb.mxu2 %v1654_v57  ;;  %v1894_v57 = vld [vmem:[#allocation10 + $0x568] sm:$0xff] }
 0x53d   :  { %1922 = vmatpush.msra.mxu0 %v1894_v57  ;;  %v1900_v57 = vld [vmem:[#allocation10 + $0x590] sm:$0xff] }
 0x53e   :  { %1781 = vmatpush.msrb.mxu2 %v1653_v61  ;;  %v1910_v61 = vld [vmem:[#allocation10 + $0x5e0] sm:$0xff] }
 0x53f   :  { %1923 = vmatpush.msra.mxu0 %v1893_v62  ;;  %v2015_v62 = vld [vmem:[#allocation13 + $0x1f0] sm:$0xff] }
 0x540   :  { %1782 = vmatpush.msrb.mxu2 %v1652_v1 }
 0x542   :  { %1783 = vmatpush.msrb.mxu2 %v1651_v4 }
 0x544   :  { %1784 = vmatpush.msrb.mxu2 %v1650_v7 }
 0x546   :  { %1785 = vmatpush.msrb.mxu2 %v1649_v9 }
 0x548   :  { %1786 = vmatpush.msrb.mxu2 %v1648_v15 }
 0x54a   :  { %1787 = vmatpush.msrb.mxu2 %v1647_v18  ;;  %v3385_v18 = vld [vmem:[#allocation8 + $0x1] ss:$0 sm:$0xff] }
 0x54c   :  { %1968 = vmatpush.msra.mxu2 %v1913_v47  ;;  %v1864_v47 = vld [vmem:[#allocation10 + $0x480] sm:$0xff] }
 0x54e   :  { %1969 = vmatpush.msra.mxu2 %v1912_v52 }
 0x550   :  { %1970 = vmatpush.msra.mxu2 %v1911_v27  ;;  %v1902_v27 = vld [vmem:[#allocation10 + $0x5a0] sm:$0xff] }
 0x552   :  { %1971 = vmatpush.msra.mxu2 %v1910_v61  ;;  %v2016_v61 = vld [vmem:[#allocation13 + $0x1f8] sm:$0xff] }
 0x554   :  { %1972 = vmatpush.msra.mxu2 %v1909_v2 }
 0x556   :  { %1973 = vmatpush.msra.mxu2 %v1908_v5  ;;  %v2011_v5 = vld [vmem:[#allocation13 + $0x1d0] sm:$0xff] }
 0x5a6   :  { %v1563_v19 = vpop.f32.mrf.mxu2 }
 0x5a7   :  { %v1564_v20 = vadd.f32 %v3384_v10, %v1563_v19 }
 0x5a9   :  { %v1575_v16 = vadd.f32 %v1564_v20, %v4018_v6 }
 0x5ab   :  { %1591 = vst [vmem:[#allocation2 + $0x10] sm:$0xff] %v1575_v16  ;;  %1689 = vmatmul.f32.vlgmr.msrb.gmra.mxu3 %v1575_v16 }
 0x5ae   :  { %v1566_v21 = vpop.f32.mrf.mxu2 }
 0x5af   :  { %v1567_v22 = vadd.f32 %v3384_v10, %v1566_v21 }
 0x5b1   :  { %v1576_v26 = vadd.f32 %v1567_v22, %v4022_v11 }
 0x5b2   :  { %v1665_v25 = vld [vmem:[#allocation2 + $0xf] sm:$0xff] }
 0x5b3   :  { %1592 = vst [vmem:[#allocation2 + $0x18] sm:$0xff] %v1576_v26  ;;  %1718 = vmatmul.f32.vlgmr.msrb.gmra.mxu0 %v1665_v25  ;;  %1692 = vmatmul.f32.gmra.mxu3 %v1576_v26 }
 0x5b4   :  { %1850 = vst [vmem:[#allocation2 + $0x8] sm:$0xff] %v4043_v28 }
 0x5b6   :  { %v1569_v29 = vpop.f32.mrf.mxu2 }
 0x5b7   :  { %v1570_v14 = vadd.f32 %v3384_v10, %v1569_v29 }
 0x5b9   :  { %v1577_v36 = vadd.f32 %v1570_v14, %v4027_v24 }
 0x5ba   :  { %v1666_v38 = vld [vmem:[#allocation2 + $0x17] sm:$0xff] }
 0x5bb   :  { %v1731_v6 = vld [vmem:[#allocation2 + $0x11] sm:$0xff]  ;;  %1593 = vst [vmem:[#allocation2 + $0x20] sm:$0xff] %v1577_v36  ;;  %1721 = vmatmul.f32.gmra.mxu0 %v1666_v38  ;;  %1695 = vmatmul.f32.gmra.mxu3 %v1577_v36  ;;  %v1812_v36 = vld [vmem:[#allocation20] sm:$0xff]  ;;  %v1813_v38 = vld [vmem:[#allocation20 + $0x8] sm:$0xff] }
 0x5bc   :  { %v1768_v33 = vld [vmem:[#allocation2 + $0x12] sm:$0xff]  ;;  %1751 = vmatmul.f32.vlgmr.msrb.gmra.mxu1 %v1731_v6  ;;  %v1892_v6 = vld [vmem:[#allocation10 + $0x558] sm:$0xff]  ;;  %v1916_v52 = vld [vmem:[#allocation2 + $0x7] sm:$0xff] }
 0x5bd   :  { %1788 = vmatmul.f32.vlgmr.msrb.gmra.mxu2 %v1768_v33  ;;  %v1875_v33 = vld [vmem:[#allocation10 + $0x4d8] sm:$0xff]  ;;  %1924 = vmatpush.msra.mxu0 %v1892_v6  ;;  %2669 = vst [vmem:[#allocation2] sm:$0xff] %v4043_v28  ;;  %v2077_v6 = vld [vmem:[#allocation10 + $0x668] sm:$0xff] }
 0x5be   :  { %v1572_v11 = vpop.f32.mrf.mxu2  ;;  %1947 = vmatpush.msra.mxu1 %v1875_v33  ;;  %v2113_v33 = vld [vmem:[#allocation10 + $0x778] sm:$0xff] }
 0x5bf   :  { %v1573_v34 = vadd.f32 %v3384_v10, %v1572_v11  ;;  %v1891_v11 = vld [vmem:[#allocation10 + $0x550] sm:$0xff] }
 0x5c0   :  { %1925 = vmatpush.msra.mxu0 %v1891_v11  ;;  %v2093_v11 = vld [vmem:[#allocation10 + $0x6e0] sm:$0xff] }
 0x5c1   :  { %v1578_v41 = vadd.f32 %v1573_v34, %v4031_v23  ;;  %v1874_v34 = vld [vmem:[#allocation10 + $0x4d0] sm:$0xff] }
 0x5c2   :  { %v1667_v32 = vld [vmem:[#allocation2 + $0x1f] sm:$0xff]  ;;  %1948 = vmatpush.msra.mxu1 %v1874_v34 }
 0x5c3   :  { %v1732_v39 = vld [vmem:[#allocation2 + $0x19] sm:$0xff]  ;;  %1594 = vst [vmem:[#allocation2 + $0x28] sm:$0xff] %v1578_v41  ;;  %1724 = vmatmul.f32.gmra.mxu0 %v1667_v32  ;;  %v1890_v41 = vld [vmem:[#allocation10 + $0x548] sm:$0xff]  ;;  %v2076_v34 = vld [vmem:[#allocation10 + $0x660] sm:$0xff] }
 0x5c4   :  { %v1769_v35 = vld [vmem:[#allocation2 + $0x1a] sm:$0xff]  ;;  %1754 = vmatmul.f32.gmra.mxu1 %v1732_v39  ;;  %v1873_v32 = vld [vmem:[#allocation10 + $0x4c8] sm:$0xff]  ;;  %1926 = vmatpush.msra.mxu0 %v1890_v41  ;;  %v1889_v39 = vld [vmem:[#allocation10 + $0x540] sm:$0xff] }
 0x5c5   :  { %1791 = vmatmul.f32.gmra.mxu2 %v1769_v35  ;;  %1949 = vmatpush.msra.mxu1 %v1873_v32  ;;  %v1872_v35 = vld [vmem:[#allocation10 + $0x4c0] sm:$0xff]  ;;  %v2112_v41 = vld [vmem:[#allocation10 + $0x770] sm:$0xff]  ;;  %v2111_v32 = vld [vmem:[#allocation10 + $0x768] sm:$0xff] }
 0x5c6   :  { %1927 = vmatpush.msra.mxu0 %v1889_v39  ;;  %v2092_v39 = vld [vmem:[#allocation10 + $0x6d8] sm:$0xff] }
 0x5c7   :  { %1950 = vmatpush.msra.mxu1 %v1872_v35  ;;  %v2075_v35 = vld [vmem:[#allocation10 + $0x658] sm:$0xff] }
 0x5ca   :  { %v1672_v24 = vld [vmem:[#allocation2 + $0x28] sm:$0x7f] }
 0x5cb   :  { %v1668_v30 = vld [vmem:[#allocation2 + $0x27] sm:$0x7f]  ;;  %1698 = vmatmul.f32.gmra.mxu3 %v1672_v24  ;;  %v1888_v24 = vld [vmem:[#allocation10 + $0x538] sm:$0xff] }
 0x5cc   :  { %v1733_v40 = vld [vmem:[#allocation2 + $0x21] sm:$0xff]  ;;  %1727 = vmatmul.f32.gmra.mxu0 %v1668_v30  ;;  %v1771_v42 = vld [vmem:[#allocation2 + $0x2a] sm:$0x7f] }
 0x5cd   :  { %v1770_v37 = vld [vmem:[#allocation2 + $0x22] sm:$0xff]  ;;  %1757 = vmatmul.f32.gmra.mxu1 %v1733_v40  ;;  %3211 = vst [vmem:[#allocation2 + $0x30] sm:$0xff] %v4043_v28  ;;  %1928 = vmatpush.msra.mxu0 %v1888_v24  ;;  %v1887_v40 = vld [vmem:[#allocation10 + $0x530] sm:$0xff] }
 0x5ce   :  { %1794 = vmatmul.f32.gmra.mxu2 %v1770_v37  ;;  %1853 = vst [vmem:[#allocation2 + $0x20] sm:$0xff] %v4043_v28  ;;  %v1734_v31 = vld [vmem:[#allocation2 + $0x29] sm:$0x7f]  ;;  %v1871_v30 = vld [vmem:[#allocation10 + $0x4b8] sm:$0xff]  ;;  %v1870_v37 = vld [vmem:[#allocation10 + $0x4b0] sm:$0xff] }
 0x5cf   :  { %1854 = vst [vmem:[#allocation2 + $0x28] sm:$0xff] %v4043_v28  ;;  %1951 = vmatpush.msra.mxu1 %v1871_v30  ;;  %1929 = vmatpush.msra.mxu0 %v1887_v40  ;;  %v2110_v24 = vld [vmem:[#allocation10 + $0x760] sm:$0xff]  ;;  %v2091_v30 = vld [vmem:[#allocation10 + $0x6d0] sm:$0xff] }
 0x5d0   :  { %v2074_v40 = vld [vmem:[#allocation10 + $0x650] sm:$0xff] }
 0x5d1   :  { %1952 = vmatpush.msra.mxu1 %v1870_v37  ;;  %v2090_v37 = vld [vmem:[#allocation10 + $0x6c8] sm:$0xff] }
 0x5d5   :  { %1760 = vmatmul.f32.gmra.mxu1 %v1734_v31  ;;  %v1869_v31 = vld [vmem:[#allocation10 + $0x4a8] sm:$0xff] }
 0x5d6   :  { %1797 = vmatmul.f32.gmra.mxu2 %v1771_v42  ;;  %v1886_v42 = vld [vmem:[#allocation10 + $0x528] sm:$0xff]  ;;  %1953 = vmatpush.msra.mxu1 %v1869_v31 }
 0x5d7   :  { %1930 = vmatpush.msra.mxu0 %v1886_v42  ;;  %v2073_v42 = vld [vmem:[#allocation10 + $0x648] sm:$0xff] }
 0x62e   :  { %v1690_v23 = vpop.f32.mrf.mxu3 }
 0x630   :  { %v1719_v43 = vpop.f32.mrf.mxu0 }
 0x631   :  { %v1720_v17 = vadd.f32 %v1719_v43, %v1690_v23  ;;  %v1885_v23 = vld [vmem:[#allocation10 + $0x520] sm:$0xff] }
 0x632   :  { %v1868_v43 = vld [vmem:[#allocation10 + $0x4a0] sm:$0xff]  ;;  %1931 = vmatpush.msra.mxu0 %v1885_v23 }
 0x633   :  { %1954 = vmatpush.msra.mxu1 %v1868_v43  ;;  %v2089_v43 = vld [vmem:[#allocation10 + $0x6c0] sm:$0xff] }
 0x636   :  { %v1693_v45 = vpop.f32.mrf.mxu3 }
 0x638   :  { %v1722_v12 = vpop.f32.mrf.mxu0 }
 0x639   :  { %v1752_v44 = vpop.f32.mrf.mxu1  ;;  %v1723_v8 = vadd.f32 %v1722_v12, %v1693_v45  ;;  %v1867_v45 = vld [vmem:[#allocation10 + $0x498] sm:$0xff]  ;;  %v1883_v12 = vld [vmem:[#allocation10 + $0x510] sm:$0xff] }
 0x63a   :  { %v1764_v16 = vadd.f32 %v1752_v44, %v1720_v17  ;;  %v1884_v44 = vld [vmem:[#allocation10 + $0x518] sm:$0xff]  ;;  %1955 = vmatpush.msra.mxu1 %v1867_v45 }
 0x63b   :  { %1932 = vmatpush.msra.mxu0 %v1884_v44  ;;  %v2072_v44 = vld [vmem:[#allocation10 + $0x640] sm:$0xff] }
 0x63d   :  { %1933 = vmatpush.msra.mxu0 %v1883_v12  ;;  %v3386_v12 = vld [vmem:[#allocation11 + $0x3] ss:$0 sm:$0xff] }
 0x63e   :  { %v1696_v48 = vpop.f32.mrf.mxu3 }
 0x640   :  { %v1789_v46 = vpop.f32.mrf.mxu2  ;;  %v1725_v49 = vpop.f32.mrf.mxu0 }
 0x641   :  { %v1755_v0 = vpop.f32.mrf.mxu1  ;;  %v1726_v7 = vadd.f32 %v1725_v49, %v1696_v48  ;;  %v1801_v26 = vadd.f32 %v1789_v46, %v1764_v16  ;;  %v1866_v46 = vld [vmem:[#allocation10 + $0x490] sm:$0xff]  ;;  %v1882_v48 = vld [vmem:[#allocation10 + $0x508] sm:$0xff] }
 0x642   :  { %v1765_v10 = vadd.f32 %v1755_v0, %v1723_v8  ;;  %1956 = vmatpush.msra.mxu1 %v1866_v46  ;;  %v1907_v0 = vld [vmem:[#allocation10 + $0x5c8] sm:$0xff]  ;;  %1934 = vmatpush.msra.mxu0 %v1882_v48 }
 0x643   :  { %v1808_v14 = vadd.f32 %v3385_v18, %v1801_v26  ;;  %v1865_v49 = vld [vmem:[#allocation10 + $0x488] sm:$0xff]  ;;  %1974 = vmatpush.msra.mxu2 %v1907_v0 }
 0x644   :  { %1957 = vmatpush.msra.mxu1 %v1865_v49  ;;  %v2009_v8 = vld [vmem:[#allocation13 + $0x1c0] sm:$0xff]  ;;  %v2004_v16 = vld [vmem:[#allocation13 + $0x198] sm:$0xff] }
 0x645   :  { %v2001_v26 = vld [vmem:[#allocation13 + $0x180] sm:$0xff] }
 0x646   :  { %1958 = vmatpush.msra.mxu1 %v1864_v47 }
 0x647   :  { %1959 = vmatmul.f32.vlgmr.msra.gmra.mxu1 %v1916_v52 }
 0x648   :  { %v1792_v50 = vpop.f32.mrf.mxu2 }
 0x649   :  { %v1728_v1 = vpop.f32.mrf.mxu0  ;;  %v1802_v21 = vadd.f32 %v1792_v50, %v1765_v10  ;;  %v1906_v50 = vld [vmem:[#allocation10 + $0x5c0] sm:$0xff]  ;;  %v2006_v10 = vld [vmem:[#allocation13 + $0x1a8] sm:$0xff] }
 0x64a   :  { %v1758_v51 = vpop.f32.mrf.mxu1  ;;  %1975 = vmatpush.msra.mxu2 %v1906_v50 }
 0x64b   :  { %v1766_v9 = vadd.f32 %v1758_v51, %v1726_v7  ;;  %v1809_v29 = vadd.f32 %v3385_v18, %v1802_v21  ;;  %v1881_v51 = vld [vmem:[#allocation10 + $0x500] sm:$0xff]  ;;  %v2010_v7 = vld [vmem:[#allocation13 + $0x1c8] sm:$0xff] }
 0x64c   :  { %1935 = vmatpush.msra.mxu0 %v1881_v51  ;;  %1976 = vmatpush.msra.mxu2 %v1905_v53  ;;  %v2003_v21 = vld [vmem:[#allocation13 + $0x190] sm:$0xff] }
 0x64e   :  { %v1699_v59 = vpop.f32.mrf.mxu3  ;;  %1977 = vmatpush.msra.mxu2 %v1904_v54 }
 0x64f   :  { %v1729_v3 = vadd.f32 %v1728_v1, %v1699_v59  ;;  %v1898_v59 = vld [vmem:[#allocation10 + $0x580] sm:$0xff]  ;;  %v2013_v1 = vld [vmem:[#allocation13 + $0x1e0] sm:$0xff] }
 0x650   :  { %1978 = vmatpush.msra.mxu2 %v1903_v55 }
 0x651   :  { %v1795_v60 = vpop.f32.mrf.mxu2 }
 0x652   :  { %v1761_v4 = vpop.f32.mrf.mxu1  ;;  %v1803_v19 = vadd.f32 %v1795_v60, %v1766_v9  ;;  %1979 = vmatpush.msra.mxu2 %v1902_v27  ;;  %v1967_v60 = vld [vmem:[#allocation2 + $0x21] sm:$0xff] }
 0x653   :  { %v1767_v13 = vadd.f32 %v1761_v4, %v1729_v3  ;;  %3210 = vst [vmem:[#allocation2 + $0x28] sm:$0xff] %v4043_v28  ;;  %v2012_v4 = vld [vmem:[#allocation13 + $0x1d8] sm:$0xff]  ;;  %v2088_v27 = vld [vmem:[#allocation10 + $0x6b8] sm:$0xff] }
 0x654   :  { %v1810_v25 = vadd.f32 %v3385_v18, %v1803_v19  ;;  %1980 = vmatpush.msra.mxu2 %v1901_v56  ;;  %v2087_v56 = vld [vmem:[#allocation10 + $0x6b0] sm:$0xff] }
 0x656   :  { %1981 = vmatpush.msra.mxu2 %v1900_v57  ;;  %v2086_v57 = vld [vmem:[#allocation10 + $0x6a8] sm:$0xff] }
 0x658   :  { %1982 = vmatpush.msra.mxu2 %v1899_v58  ;;  %v2085_v58 = vld [vmem:[#allocation10 + $0x6a0] sm:$0xff] }
 0x659   :  { %v1798_v15 = vpop.f32.mrf.mxu2 }
 0x65a   :  { %v1804_v20 = vadd.f32 %v1798_v15, %v1767_v13  ;;  %1983 = vmatpush.msra.mxu2 %v1898_v59  ;;  %v2008_v15 = vld [vmem:[#allocation13 + $0x1b8] sm:$0xff]  ;;  %v2071_v59 = vld [vmem:[#allocation10 + $0x638] sm:$0xff] }
 0x65c   :  { %v1811_v22 = vadd.f32 %v3385_v18, %v1804_v20  ;;  %v2007_v18 = vld [vmem:[#allocation13 + $0x1b0] sm:$0xff]  ;;  %v2005_v20 = vld [vmem:[#allocation13 + $0x1a0] sm:$0xff]  ;;  %2168 = vmatpush.msrb.mxu2 %v2113_v33 }
 0x65e   :  { %3354 = vmatpush.msk.msra.mxu3 %vm824_vm0, %v1811_v22  ;;  %v2002_v22 = vld [vmem:[#allocation13 + $0x188] sm:$0xff]  ;;  %2169 = vmatpush.msrb.mxu2 %v2112_v41  ;;  %v2213_v41 = vld [vmem:[#allocation13 + $0x260] sm:$0xff] }
 0x660   :  { %1837 = vmatpush.msra.mxu3 %v1810_v25  ;;  %v2096_v25 = vld [vmem:[#allocation10 + $0x6f8] sm:$0xff]  ;;  %2170 = vmatpush.msrb.mxu2 %v2111_v32 }
 0x661   :  { %2120 = vmatpush.msrb.mxu0 %v2096_v25  ;;  %v2099_v25 = vld [vmem:[#allocation10 + $0x708] sm:$0xff] }
 0x662   :  { %1838 = vmatpush.msra.mxu3 %v1809_v29  ;;  %v2079_v29 = vld [vmem:[#allocation10 + $0x678] sm:$0xff]  ;;  %2171 = vmatpush.msrb.mxu2 %v2110_v24 }
 0x663   :  { %2143 = vmatpush.msrb.mxu1 %v2079_v29  ;;  %v2098_v29 = vld [vmem:[#allocation10 + $0x700] sm:$0xff] }
 0x664   :  { %1839 = vmatpush.msra.mxu3 %v1808_v14  ;;  %v2095_v14 = vld [vmem:[#allocation10 + $0x6f0] sm:$0xff] }
 0x665   :  { %3355 = vmatmul.msk.f32.vlgmr.msra.gmra.mxu3 %vm1814_vm2, %v1812_v36  ;;  %v2078_v36 = vld [vmem:[#allocation10 + $0x670] sm:$0xff]  ;;  %2121 = vmatpush.msrb.mxu0 %v2095_v14  ;;  %v3387_v14 = vld [vmem:[#allocation14 + $0x3] ss:$0 sm:$0xff] }
 0x666   :  { %2022 = vmatpush.msrb.mxu3 %v2016_v61  ;;  %2144 = vmatpush.msrb.mxu1 %v2078_v36  ;;  %v2084_v61 = vld [vmem:[#allocation10 + $0x698] sm:$0xff]  ;;  %v2216_v36 = vld [vmem:[#allocation13 + $0x278] sm:$0xff] }
 0x668   :  { %2023 = vmatpush.msrb.mxu3 %v2015_v62  ;;  %2145 = vmatpush.msrb.mxu1 %v2077_v6  ;;  %v2070_v62 = vld [vmem:[#allocation10 + $0x630] sm:$0xff] }
 0x66a   :  { %2024 = vmatpush.msrb.mxu3 %v2014_v63  ;;  %2146 = vmatpush.msrb.mxu1 %v2076_v34  ;;  %v2108_v63 = vld [vmem:[#allocation10 + $0x750] sm:$0xff] }
 0x66c   :  { %2025 = vmatpush.msrb.mxu3 %v2013_v1  ;;  %2147 = vmatpush.msrb.mxu1 %v2075_v35  ;;  %v2083_v1 = vld [vmem:[#allocation10 + $0x690] sm:$0xff] }
 0x66d   :  { %3356 = vmatmul.msk.f32.gmra.mxu3 %vm1814_vm2, %v1813_v38  ;;  %v2094_v38 = vld [vmem:[#allocation10 + $0x6e8] sm:$0xff] }
 0x66e   :  { %2026 = vmatpush.msrb.mxu3 %v2012_v4  ;;  %2122 = vmatpush.msrb.mxu0 %v2094_v38  ;;  %v2107_v4 = vld [vmem:[#allocation10 + $0x748] sm:$0xff]  ;;  %v2215_v38 = vld [vmem:[#allocation13 + $0x270] sm:$0xff] }
 0x66f   :  { %2148 = vmatpush.msrb.mxu1 %v2074_v40 }
 0x670   :  { %2027 = vmatpush.msrb.mxu3 %v2011_v5  ;;  %2123 = vmatpush.msrb.mxu0 %v2093_v11  ;;  %v2082_v5 = vld [vmem:[#allocation10 + $0x688] sm:$0xff]  ;;  %v2214_v11 = vld [vmem:[#allocation13 + $0x268] sm:$0xff] }
 0x671   :  { %2149 = vmatpush.msrb.mxu1 %v2073_v42 }
 0x672   :  { %2028 = vmatpush.msrb.mxu3 %v2010_v7  ;;  %2124 = vmatpush.msrb.mxu0 %v2092_v39  ;;  %v2068_v7 = vld [vmem:[#allocation10 + $0x620] sm:$0xff] }
 0x673   :  { %2150 = vmatpush.msrb.mxu1 %v2072_v44  ;;  %v2212_v39 = vld [vmem:[#allocation13 + $0x258] sm:$0xff] }
 0x674   :  { %2029 = vmatpush.msrb.mxu3 %v2009_v8  ;;  %2125 = vmatpush.msrb.mxu0 %v2091_v30  ;;  %v2106_v8 = vld [vmem:[#allocation10 + $0x740] sm:$0xff] }
 0x675   :  { %2151 = vmatpush.msrb.mxu1 %v2071_v59  ;;  %v2208_v44 = vld [vmem:[#allocation13 + $0x238] sm:$0xff]  ;;  %v2292_v59 = vld [vmem:[#allocation10 + $0x858] sm:$0xff] }
 0x676   :  { %2030 = vmatpush.msrb.mxu3 %v2008_v15  ;;  %2126 = vmatpush.msrb.mxu0 %v2090_v37  ;;  %v2067_v15 = vld [vmem:[#allocation10 + $0x618] sm:$0xff] }
 0x677   :  { %2152 = vmatpush.msrb.mxu1 %v2070_v62  ;;  %v2291_v62 = vld [vmem:[#allocation10 + $0x850] sm:$0xff] }
 0x678   :  { %2031 = vmatpush.msrb.mxu3 %v2007_v18  ;;  %2127 = vmatpush.msrb.mxu0 %v2089_v43  ;;  %v2066_v18 = vld [vmem:[#allocation10 + $0x610] sm:$0xff] }
 0x679   :  { %v2209_v43 = vld [vmem:[#allocation13 + $0x240] sm:$0xff] }
 0x67a   :  { %2032 = vmatpush.msrb.mxu3 %v2006_v10  ;;  %2128 = vmatpush.msrb.mxu0 %v2088_v27  ;;  %v2104_v10 = vld [vmem:[#allocation10 + $0x730] sm:$0xff]  ;;  %v2293_v27 = vld [vmem:[#allocation10 + $0x860] sm:$0xff] }
 0x67c   :  { %2033 = vmatpush.msrb.mxu3 %v2005_v20  ;;  %2129 = vmatpush.msrb.mxu0 %v2087_v56  ;;  %v2103_v20 = vld [vmem:[#allocation10 + $0x728] sm:$0xff]  ;;  %v2276_v56 = vld [vmem:[#allocation10 + $0x7e0] sm:$0xff] }
 0x67e   :  { %2034 = vmatpush.msrb.mxu3 %v2004_v16  ;;  %2130 = vmatpush.msrb.mxu0 %v2086_v57  ;;  %v2064_v16 = vld [vmem:[#allocation10 + $0x600] sm:$0xff]  ;;  %v2312_v57 = vld [vmem:[#allocation10 + $0x8f0] sm:$0xff] }
 0x680   :  { %2035 = vmatpush.msrb.mxu3 %v2003_v21  ;;  %2131 = vmatpush.msrb.mxu0 %v2085_v58  ;;  %v2102_v21 = vld [vmem:[#allocation10 + $0x720] sm:$0xff]  ;;  %v2311_v58 = vld [vmem:[#allocation10 + $0x8e8] sm:$0xff] }
 0x682   :  { %2036 = vmatpush.msrb.mxu3 %v2002_v22  ;;  %2132 = vmatpush.msrb.mxu0 %v2084_v61  ;;  %v2101_v22 = vld [vmem:[#allocation10 + $0x718] sm:$0xff]  ;;  %v2310_v61 = vld [vmem:[#allocation10 + $0x8e0] sm:$0xff] }
 0x684   :  { %2037 = vmatpush.msrb.mxu3 %v2001_v26  ;;  %2133 = vmatpush.msrb.mxu0 %v2083_v1  ;;  %v2100_v26 = vld [vmem:[#allocation10 + $0x710] sm:$0xff]  ;;  %v2290_v1 = vld [vmem:[#allocation10 + $0x848] sm:$0xff] }
 0x686   :  { %2134 = vmatpush.msrb.mxu0 %v2082_v5  ;;  %2222 = vmatpush.msra.mxu3 %v2216_v36  ;;  %v2289_v5 = vld [vmem:[#allocation10 + $0x840] sm:$0xff]  ;;  %v2287_v36 = vld [vmem:[#allocation10 + $0x830] sm:$0xff] }
 0x688   :  { %2223 = vmatpush.msra.mxu3 %v2215_v38  ;;  %v2286_v38 = vld [vmem:[#allocation10 + $0x828] sm:$0xff] }
 0x68a   :  { %2224 = vmatpush.msra.mxu3 %v2214_v11  ;;  %v2309_v11 = vld [vmem:[#allocation10 + $0x8d8] sm:$0xff] }
 0x68c   :  { %2225 = vmatpush.msra.mxu3 %v2213_v41  ;;  %v2284_v41 = vld [vmem:[#allocation10 + $0x818] sm:$0xff] }
 0x68e   :  { %2226 = vmatpush.msra.mxu3 %v2212_v39  ;;  %v2308_v39 = vld [vmem:[#allocation10 + $0x8d0] sm:$0xff] }
 0x6c4   :  { %v1960_v23 = vpop.f32.mrf.mxu1 }
 0x6e8   :  { %v4054_v2 = vpop.f32.mrf.mxu3 }
 0x6e9   :  { %v1847_v3 = vmax.f32 %v4054_v2, 0.0 }
 0x6eb   :  { %1861 = vst [vmem:[#allocation2 + $0x10] sm:$0xff] %v1847_v3  ;;  %1936 = vmatmul.f32.vlgmr.msra.gmra.mxu0 %v1847_v3  ;;  %v2069_v3 = vld [vmem:[#allocation10 + $0x628] sm:$0xff] }
 0x6ec   :  { %2153 = vmatpush.msrb.mxu1 %v2069_v3  ;;  %v2273_v3 = vld [vmem:[#allocation10 + $0x7c8] sm:$0xff] }
 0x6ee   :  { %2154 = vmatpush.msrb.mxu1 %v2068_v7  ;;  %v2272_v7 = vld [vmem:[#allocation10 + $0x7c0] sm:$0xff] }
 0x6f0   :  { %v4057_v9 = vpop.f32.mrf.mxu3  ;;  %2155 = vmatpush.msrb.mxu1 %v2067_v15  ;;  %v3388_v15 = vld [vmem:[#allocation11 + $0x4] ss:$0 sm:$0xff] }
 0x6f1   :  { %v1848_v13 = vmax.f32 %v4057_v9, 0.0 }
 0x6f2   :  { %v1917_v17 = vld [vmem:[#allocation2 + $0xf] sm:$0xff]  ;;  %2156 = vmatpush.msrb.mxu1 %v2066_v18 }
 0x6f3   :  { %1862 = vst [vmem:[#allocation2 + $0x18] sm:$0xff] %v1848_v13  ;;  %1939 = vmatmul.f32.gmra.mxu0 %v1848_v13  ;;  %1962 = vmatmul.f32.gmra.mxu1 %v1917_v17  ;;  %v2081_v13 = vld [vmem:[#allocation10 + $0x680] sm:$0xff]  ;;  %v2105_v17 = vld [vmem:[#allocation10 + $0x738] sm:$0xff] }
 0x6f4   :  { %2050 = vst [vmem:[#allocation2 + $0x8] sm:$0xff] %v4043_v28  ;;  %2135 = vmatpush.msrb.mxu0 %v2081_v13 }
 0x6fa   :  { %v1966_v19 = vld [vmem:[#allocation2 + $0x19] sm:$0xff] }
 0x6fb   :  { %1984 = vmatmul.f32.vlgmr.msra.gmra.mxu2 %v1966_v19  ;;  %2053 = vst [vmem:[#allocation2 + $0x20] sm:$0xff] %v4043_v28  ;;  %v2065_v19 = vld [vmem:[#allocation10 + $0x608] sm:$0xff] }
 0x6fc   :  { %2157 = vmatpush.msrb.mxu1 %v2065_v19 }
 0x6fe   :  { %2158 = vmatpush.msrb.mxu1 %v2064_v16 }
 0x703   :  { %1987 = vmatmul.f32.gmra.mxu2 %v1967_v60  ;;  %v2109_v60 = vld [vmem:[#allocation10 + $0x758] sm:$0xff] }
 0x704   :  { %2172 = vmatpush.msrb.mxu2 %v2109_v60  ;;  %v2275_v60 = vld [vmem:[#allocation10 + $0x7d8] sm:$0xff] }
 0x706   :  { %2173 = vmatpush.msrb.mxu2 %v2108_v63  ;;  %v2274_v63 = vld [vmem:[#allocation10 + $0x7d0] sm:$0xff] }
 0x708   :  { %2174 = vmatpush.msrb.mxu2 %v2107_v4 }
 0x70a   :  { %2175 = vmatpush.msrb.mxu2 %v2106_v8 }
 0x70c   :  { %2176 = vmatpush.msrb.mxu2 %v2105_v17 }
 0x70e   :  { %2177 = vmatpush.msrb.mxu2 %v2104_v10 }
 0x710   :  { %2178 = vmatpush.msrb.mxu2 %v2103_v20 }
 0x712   :  { %2179 = vmatpush.msrb.mxu2 %v2102_v21 }
 0x714   :  { %2180 = vmatpush.msrb.mxu2 %v2101_v22 }
 0x716   :  { %2181 = vmatpush.msrb.mxu2 %v2100_v26 }
 0x718   :  { %2182 = vmatpush.msrb.mxu2 %v2099_v25 }
 0x71a   :  { %2183 = vmatpush.msrb.mxu2 %v2098_v29 }
 0x768   :  { %v1937_v31 = vpop.f32.mrf.mxu0 }
 0x769   :  { %v1961_v45 = vadd.f32 %v1960_v23, %v1937_v31  ;;  %v2211_v23 = vld [vmem:[#allocation13 + $0x250] sm:$0xff] }
 0x76a   :  { %2227 = vmatpush.msra.mxu3 %v2211_v23  ;;  %v2267_v23 = vld [vmem:[#allocation10 + $0x798] sm:$0xff] }
 0x770   :  { %v1940_v49 = vpop.f32.mrf.mxu0  ;;  %v1963_v50 = vpop.f32.mrf.mxu1 }
 0x771   :  { %v1964_v47 = vadd.f32 %v1963_v50, %v1940_v49  ;;  %v2201_v49 = vld [vmem:[#allocation13 + $0x200] sm:$0xff]  ;;  %v2296_v50 = vld [vmem:[#allocation10 + $0x878] sm:$0xff] }
 0x772   :  { %2320 = vmatpush.msra.mxu0 %v2296_v50  ;;  %v2298_v50 = vld [vmem:[#allocation10 + $0x880] sm:$0xff] }
 0x77e   :  { %v1985_v46 = vpop.f32.mrf.mxu2 }
 0x77f   :  { %v1991_v0 = vadd.f32 %v1985_v46, %v1961_v45  ;;  %v2207_v45 = vld [vmem:[#allocation13 + $0x230] sm:$0xff]  ;;  %v2205_v46 = vld [vmem:[#allocation13 + $0x220] sm:$0xff] }
 0x781   :  { %v1996_v48 = vadd.f32 %v3386_v12, %v1991_v0  ;;  %v2204_v0 = vld [vmem:[#allocation13 + $0x218] sm:$0xff] }
 0x783   :  { %v1998_v51 = vmax.f32 %v1996_v48, 0.0  ;;  %v2203_v48 = vld [vmem:[#allocation13 + $0x210] sm:$0xff] }
 0x785   :  { %2038 = vmatmul.f32.vlgmr.msrb.gmra.mxu3 %v1998_v51  ;;  %v2279_v51 = vld [vmem:[#allocation10 + $0x7f8] sm:$0xff] }
 0x786   :  { %v1988_v52 = vpop.f32.mrf.mxu2  ;;  %2343 = vmatpush.msra.mxu1 %v2279_v51  ;;  %v3389_v51 = vld [vmem:[#allocation14 + $0x4] ss:$0 sm:$0xff] }
 0x787   :  { %v1992_v53 = vadd.f32 %v1988_v52, %v1964_v47  ;;  %v2295_v47 = vld [vmem:[#allocation10 + $0x870] sm:$0xff] }
 0x788   :  { %v2278_v52 = vld [vmem:[#allocation10 + $0x7f0] sm:$0xff]  ;;  %2321 = vmatpush.msra.mxu0 %v2295_v47  ;;  %v2416_v47 = vld [vmem:[#allocation13 + $0x2f8] sm:$0xff] }
 0x789   :  { %v1997_v54 = vadd.f32 %v3386_v12, %v1992_v53  ;;  %v2206_v12 = vld [vmem:[#allocation13 + $0x228] sm:$0xff]  ;;  %v2294_v53 = vld [vmem:[#allocation10 + $0x868] sm:$0xff]  ;;  %2344 = vmatpush.msra.mxu1 %v2278_v52  ;;  %v2415_v52 = vld [vmem:[#allocation13 + $0x2f0] sm:$0xff] }
 0x78a   :  { %2322 = vmatpush.msra.mxu0 %v2294_v53 }
 0x78b   :  { %v1999_v55 = vmax.f32 %v1997_v54, 0.0  ;;  %v2277_v54 = vld [vmem:[#allocation10 + $0x7e8] sm:$0xff] }
 0x78c   :  { %2345 = vmatpush.msra.mxu1 %v2277_v54  ;;  %2323 = vmatpush.msra.mxu0 %v2293_v27 }
 0x78d   :  { %2041 = vmatmul.f32.gmra.mxu3 %v1999_v55  ;;  %v2313_v55 = vld [vmem:[#allocation10 + $0x8f8] sm:$0xff] }
 0x78e   :  { %2368 = vmatpush.msra.mxu2 %v2313_v55  ;;  %2346 = vmatpush.msra.mxu1 %v2276_v56  ;;  %v2414_v55 = vld [vmem:[#allocation13 + $0x2e8] sm:$0xff]  ;;  %v2413_v56 = vld [vmem:[#allocation13 + $0x2e0] sm:$0xff] }
 0x78f   :  { %2324 = vmatpush.msra.mxu0 %v2292_v59 }
 0x790   :  { %2369 = vmatpush.msra.mxu2 %v2312_v57  ;;  %2347 = vmatpush.msra.mxu1 %v2275_v60 }
 0x791   :  { %2325 = vmatpush.msra.mxu0 %v2291_v62 }
 0x792   :  { %2370 = vmatpush.msra.mxu2 %v2311_v58  ;;  %2348 = vmatpush.msra.mxu1 %v2274_v63  ;;  %v2412_v58 = vld [vmem:[#allocation13 + $0x2d8] sm:$0xff] }
 0x793   :  { %2326 = vmatpush.msra.mxu0 %v2290_v1 }
 0x794   :  { %2371 = vmatpush.msra.mxu2 %v2310_v61  ;;  %2349 = vmatpush.msra.mxu1 %v2273_v3 }
 0x795   :  { %2327 = vmatpush.msra.mxu0 %v2289_v5  ;;  %v2410_v5 = vld [vmem:[#allocation13 + $0x2c8] sm:$0xff] }
 0x796   :  { %2350 = vmatpush.msra.mxu1 %v2272_v7  ;;  %2372 = vmatpush.msra.mxu2 %v2309_v11  ;;  %v2409_v7 = vld [vmem:[#allocation13 + $0x2c0] sm:$0xff]  ;;  %v2490_v11 = vld [vmem:[#allocation7 + $0x4d8] sm:$0xff] }
 0x798   :  { %2373 = vmatpush.msra.mxu2 %v2308_v39  ;;  %v2509_v39 = vld [vmem:[#allocation7 + $0x568] sm:$0xff] }
 0x808   :  { %v2039_v6 = vpop.f32.mrf.mxu3 }
 0x809   :  { %v2040_v33 = vadd.f32 %v3387_v14, %v2039_v6  ;;  %v2285_v6 = vld [vmem:[#allocation10 + $0x820] sm:$0xff] }
 0x80b   :  { %v4063_v34 = vadd.f32 %v2040_v33, %v4054_v2  ;;  %v2271_v33 = vld [vmem:[#allocation10 + $0x7b8] sm:$0xff] }
 0x80c   :  { %2351 = vmatpush.msra.mxu1 %v2271_v33  ;;  %v2510_v33 = vld [vmem:[#allocation7 + $0x570] sm:$0xff] }
 0x80d   :  { %v2047_v32 = vmax.f32 %v4063_v34, 0.0 }
 0x80f   :  { %2061 = vst [vmem:[#allocation2 + $0x10] sm:$0xff] %v2047_v32  ;;  %2136 = vmatmul.f32.vlgmr.msrb.gmra.mxu0 %v2047_v32  ;;  %v2270_v32 = vld [vmem:[#allocation10 + $0x7b0] sm:$0xff] }
 0x810   :  { %v2042_v35 = vpop.f32.mrf.mxu3  ;;  %2352 = vmatpush.msra.mxu1 %v2270_v32  ;;  %v2473_v32 = vld [vmem:[#allocation7 + $0x458] sm:$0xff] }
 0x811   :  { %v2043_v24 = vadd.f32 %v3387_v14, %v2042_v35  ;;  %v2288_v14 = vld [vmem:[#allocation10 + $0x838] sm:$0xff]  ;;  %v2283_v35 = vld [vmem:[#allocation10 + $0x810] sm:$0xff] }
 0x812   :  { %2328 = vmatpush.msra.mxu0 %v2288_v14  ;;  %v2511_v14 = vld [vmem:[#allocation7 + $0x578] sm:$0xff] }
 0x813   :  { %v4067_v30 = vadd.f32 %v2043_v24, %v4057_v9  ;;  %v2210_v9 = vld [vmem:[#allocation13 + $0x248] sm:$0xff]  ;;  %v2269_v24 = vld [vmem:[#allocation10 + $0x7a8] sm:$0xff] }
 0x814   :  { %2228 = vmatpush.msra.mxu3 %v2210_v9  ;;  %2329 = vmatpush.msra.mxu0 %v2287_v36  ;;  %v2305_v9 = vld [vmem:[#allocation10 + $0x8b8] sm:$0xff] }
 0x815   :  { %v2048_v40 = vmax.f32 %v4067_v30, 0.0  ;;  %2353 = vmatpush.msra.mxu1 %v2269_v24  ;;  %v2528_v36 = vld [vmem:[#allocation7 + $0x5f8] sm:$0xff]  ;;  %v2508_v24 = vld [vmem:[#allocation7 + $0x560] sm:$0xff] }
 0x816   :  { %v2116_v37 = vld [vmem:[#allocation2 + $0xd] sm:$0xff]  ;;  %2229 = vmatpush.msra.mxu3 %v2209_v43  ;;  %2330 = vmatpush.msra.mxu0 %v2286_v38  ;;  %v2266_v43 = vld [vmem:[#allocation10 + $0x790] sm:$0xff]  ;;  %v2491_v38 = vld [vmem:[#allocation7 + $0x4e0] sm:$0xff] }
 0x817   :  { %2062 = vst [vmem:[#allocation2 + $0x18] sm:$0xff] %v2048_v40  ;;  %2159 = vmatmul.f32.vlgmr.msrb.gmra.mxu1 %v2116_v37  ;;  %2139 = vmatmul.f32.gmra.mxu0 %v2048_v40  ;;  %v2307_v40 = vld [vmem:[#allocation10 + $0x8c8] sm:$0xff] }
 0x818   :  { %2250 = vst [vmem:[#allocation2 + $0x8] sm:$0xff] %v4043_v28  ;;  %2230 = vmatpush.msra.mxu3 %v2208_v44  ;;  %2331 = vmatpush.msra.mxu0 %v2285_v6  ;;  %v2282_v37 = vld [vmem:[#allocation10 + $0x808] sm:$0xff]  ;;  %v2304_v44 = vld [vmem:[#allocation10 + $0x8b0] sm:$0xff]  ;;  %v2474_v6 = vld [vmem:[#allocation7 + $0x460] sm:$0xff] }
 0x819   :  { %2374 = vmatpush.msra.mxu2 %v2307_v40  ;;  %v2525_v40 = vld [vmem:[#allocation7 + $0x5e0] sm:$0xff] }
 0x81a   :  { %2231 = vmatpush.msra.mxu3 %v2207_v45  ;;  %2332 = vmatpush.msra.mxu0 %v2284_v41  ;;  %v2265_v45 = vld [vmem:[#allocation10 + $0x788] sm:$0xff] }
 0x81b   :  { %v2527_v41 = vld [vmem:[#allocation7 + $0x5f0] sm:$0xff] }
 0x81c   :  { %2232 = vmatpush.msra.mxu3 %v2206_v12  ;;  %2333 = vmatpush.msra.mxu0 %v2283_v35  ;;  %v2303_v12 = vld [vmem:[#allocation10 + $0x8a8] sm:$0xff] }
 0x81d   :  { %v2526_v35 = vld [vmem:[#allocation7 + $0x5e8] sm:$0xff] }
 0x81e   :  { %v2117_v2 = vld [vmem:[#allocation2 + $0x15] sm:$0xff]  ;;  %2233 = vmatpush.msra.mxu3 %v2205_v46  ;;  %2334 = vmatpush.msra.mxu0 %v2282_v37  ;;  %v2264_v46 = vld [vmem:[#allocation10 + $0x780] sm:$0xff] }
 0x81f   :  { %v2166_v42 = vld [vmem:[#allocation2 + $0x13] sm:$0xff]  ;;  %v2167_v31 = vld [vmem:[#allocation2 + $0x1b] sm:$0xff]  ;;  %2162 = vmatmul.f32.gmra.mxu1 %v2117_v2  ;;  %v2268_v2 = vld [vmem:[#allocation10 + $0x7a0] sm:$0xff] }
 0x820   :  { %2184 = vmatmul.f32.vlgmr.msrb.gmra.mxu2 %v2166_v42  ;;  %2253 = vst [vmem:[#allocation2 + $0x20] sm:$0xff] %v4043_v28  ;;  %2234 = vmatpush.msra.mxu3 %v2204_v0  ;;  %v2202_v28 = vld [vmem:[#allocation13 + $0x208] sm:$0xff]  ;;  %v2306_v42 = vld [vmem:[#allocation10 + $0x8c0] sm:$0xff] }
 0x821   :  { %2354 = vmatpush.msra.mxu1 %v2268_v2  ;;  %2375 = vmatpush.msra.mxu2 %v2306_v42  ;;  %v2302_v0 = vld [vmem:[#allocation10 + $0x8a0] sm:$0xff]  ;;  %v2489_v37 = vld [vmem:[#allocation7 + $0x4d0] sm:$0xff]  ;;  %v2507_v42 = vld [vmem:[#allocation7 + $0x558] sm:$0xff] }
 0x822   :  { %2235 = vmatpush.msra.mxu3 %v2203_v48  ;;  %v2301_v48 = vld [vmem:[#allocation10 + $0x898] sm:$0xff]  ;;  %v2472_v2 = vld [vmem:[#allocation7 + $0x450] sm:$0xff] }
 0x823   :  { %2355 = vmatpush.msra.mxu1 %v2267_v23  ;;  %2376 = vmatpush.msra.mxu2 %v2305_v9  ;;  %v2488_v23 = vld [vmem:[#allocation7 + $0x4c8] sm:$0xff] }
 0x824   :  { %2236 = vmatpush.msra.mxu3 %v2202_v28  ;;  %v2300_v28 = vld [vmem:[#allocation10 + $0x890] sm:$0xff]  ;;  %v2471_v9 = vld [vmem:[#allocation7 + $0x448] sm:$0xff] }
 0x825   :  { %2356 = vmatpush.msra.mxu1 %v2266_v43  ;;  %2377 = vmatpush.msra.mxu2 %v2304_v44  ;;  %v2487_v44 = vld [vmem:[#allocation7 + $0x4c0] sm:$0xff] }
 0x826   :  { %2237 = vmatpush.msra.mxu3 %v2201_v49  ;;  %v2299_v49 = vld [vmem:[#allocation10 + $0x888] sm:$0xff] }
 0x827   :  { %2357 = vmatpush.msra.mxu1 %v2265_v45  ;;  %2378 = vmatpush.msra.mxu2 %v2303_v12  ;;  %v2470_v45 = vld [vmem:[#allocation7 + $0x440] sm:$0xff] }
 0x828   :  { %2187 = vmatmul.f32.gmra.mxu2 %v2167_v31  ;;  %v2281_v31 = vld [vmem:[#allocation10 + $0x800] sm:$0xff]  ;;  %2422 = vmatpush.msrb.mxu3 %v2416_v47 }
 0x829   :  { %2335 = vmatpush.msra.mxu0 %v2281_v31  ;;  %2358 = vmatpush.msra.mxu1 %v2264_v46  ;;  %v2524_v31 = vld [vmem:[#allocation7 + $0x5d8] sm:$0xff] }
 0x82a   :  { %2379 = vmatpush.msra.mxu2 %v2302_v0  ;;  %2423 = vmatpush.msrb.mxu3 %v2415_v52  ;;  %v2486_v46 = vld [vmem:[#allocation7 + $0x4b8] sm:$0xff] }
 0x82b   :  { %v2469_v0 = vld [vmem:[#allocation7 + $0x438] sm:$0xff] }
 0x82c   :  { %2380 = vmatpush.msra.mxu2 %v2301_v48  ;;  %2424 = vmatpush.msrb.mxu3 %v2414_v55 }
 0x82e   :  { %2381 = vmatpush.msra.mxu2 %v2300_v28  ;;  %2425 = vmatpush.msrb.mxu3 %v2413_v56  ;;  %v3390_v28 = vld [vmem:[#allocation11 + $0x5] ss:$0 sm:$0xff] }
 0x830   :  { %2382 = vmatpush.msra.mxu2 %v2299_v49  ;;  %2426 = vmatpush.msrb.mxu3 %v2412_v58 }
 0x832   :  { %2383 = vmatpush.msra.mxu2 %v2298_v50 }
 0x834   :  { %2583 = vmatpush.msrb.mxu2 %v2511_v14  ;;  %v2518_v14 = vld [vmem:[#allocation7 + $0x5a8] sm:$0xff] }
 0x836   :  { %2584 = vmatpush.msrb.mxu2 %v2510_v33  ;;  %v2499_v33 = vld [vmem:[#allocation7 + $0x518] sm:$0xff] }
 0x838   :  { %2585 = vmatpush.msrb.mxu2 %v2509_v39  ;;  %v2497_v39 = vld [vmem:[#allocation7 + $0x508] sm:$0xff] }
 0x83a   :  { %2586 = vmatpush.msrb.mxu2 %v2508_v24  ;;  %v2496_v24 = vld [vmem:[#allocation7 + $0x500] sm:$0xff] }
 0x83c   :  { %2587 = vmatpush.msrb.mxu2 %v2507_v42 }
 0x88c   :  { %v2137_v8 = vpop.f32.mrf.mxu0 }
 0x894   :  { %v2160_v4 = vpop.f32.mrf.mxu1  ;;  %v2140_v16 = vpop.f32.mrf.mxu0 }
 0x895   :  { %v2161_v13 = vadd.f32 %v2160_v4, %v2137_v8  ;;  %v2408_v8 = vld [vmem:[#allocation13 + $0x2b8] sm:$0xff] }
 0x89c   :  { %v2163_v19 = vpop.f32.mrf.mxu1 }
 0x89d   :  { %v2164_v21 = vadd.f32 %v2163_v19, %v2140_v16  ;;  %v2402_v19 = vld [vmem:[#allocation13 + $0x288] sm:$0xff] }
 0x89e   :  { %v2494_v16 = vld [vmem:[#allocation7 + $0x4f8] sm:$0xff] }
 0x89f   :  { %2535 = vmatpush.msrb.mxu0 %v2494_v16  ;;  %v2520_v16 = vld [vmem:[#allocation7 + $0x5b8] sm:$0xff] }
 0x8a3   :  { %v2185_v17 = vpop.f32.mrf.mxu2 }
 0x8a4   :  { %v2191_v18 = vadd.f32 %v2185_v17, %v2161_v13  ;;  %v2407_v13 = vld [vmem:[#allocation13 + $0x2b0] sm:$0xff]  ;;  %v2405_v17 = vld [vmem:[#allocation13 + $0x2a0] sm:$0xff] }
 0x8a6   :  { %v2196_v10 = vadd.f32 %v3388_v15, %v2191_v18  ;;  %v2404_v18 = vld [vmem:[#allocation13 + $0x298] sm:$0xff] }
 0x8a8   :  { %v2198_v20 = vmax.f32 %v2196_v10, 0.0  ;;  %v2403_v10 = vld [vmem:[#allocation13 + $0x290] sm:$0xff] }
 0x8aa   :  { %2238 = vmatmul.f32.vlgmr.msra.gmra.mxu3 %v2198_v20  ;;  %v2401_v20 = vld [vmem:[#allocation13 + $0x280] sm:$0xff] }
 0x8ab   :  { %v2188_v22 = vpop.f32.mrf.mxu2 }
 0x8ac   :  { %v2192_v26 = vadd.f32 %v2188_v22, %v2164_v21  ;;  %v2477_v21 = vld [vmem:[#allocation7 + $0x478] sm:$0xff]  ;;  %v2493_v22 = vld [vmem:[#allocation7 + $0x4f0] sm:$0xff] }
 0x8ad   :  { %2558 = vmatpush.msrb.mxu1 %v2477_v21  ;;  %2536 = vmatpush.msrb.mxu0 %v2493_v22  ;;  %v2464_v21 = vld [vmem:[#allocation7 + $0x410] sm:$0xff] }
 0x8ae   :  { %v2197_v25 = vadd.f32 %v3388_v15, %v2192_v26  ;;  %v2406_v15 = vld [vmem:[#allocation13 + $0x2a8] sm:$0xff] }
 0x8af   :  { %v2476_v26 = vld [vmem:[#allocation7 + $0x470] sm:$0xff] }
 0x8b0   :  { %v2199_v29 = vmax.f32 %v2197_v25, 0.0  ;;  %v2492_v25 = vld [vmem:[#allocation7 + $0x4e8] sm:$0xff]  ;;  %2559 = vmatpush.msrb.mxu1 %v2476_v26  ;;  %v2502_v22 = vld [vmem:[#allocation7 + $0x530] sm:$0xff] }
 0x8b1   :  { %2537 = vmatpush.msrb.mxu0 %v2492_v25  ;;  %v2519_v26 = vld [vmem:[#allocation7 + $0x5b0] sm:$0xff]  ;;  %v2463_v25 = vld [vmem:[#allocation7 + $0x408] sm:$0xff] }
 0x8b2   :  { %2241 = vmatmul.f32.gmra.mxu3 %v2199_v29  ;;  %v2475_v29 = vld [vmem:[#allocation7 + $0x468] sm:$0xff] }
 0x8b3   :  { %2560 = vmatpush.msrb.mxu1 %v2475_v29  ;;  %2538 = vmatpush.msrb.mxu0 %v2491_v38  ;;  %v2501_v29 = vld [vmem:[#allocation7 + $0x528] sm:$0xff]  ;;  %v2500_v38 = vld [vmem:[#allocation7 + $0x520] sm:$0xff] }
 0x8b5   :  { %2561 = vmatpush.msrb.mxu1 %v2474_v6  ;;  %2539 = vmatpush.msrb.mxu0 %v2490_v11  ;;  %v2517_v6 = vld [vmem:[#allocation7 + $0x5a0] sm:$0xff]  ;;  %v2516_v11 = vld [vmem:[#allocation7 + $0x598] sm:$0xff] }
 0x8b7   :  { %2562 = vmatpush.msrb.mxu1 %v2473_v32  ;;  %2540 = vmatpush.msrb.mxu0 %v2489_v37  ;;  %v2515_v32 = vld [vmem:[#allocation7 + $0x590] sm:$0xff] }
 0x8b8   :  { %v3391_v37 = vld [vmem:[#allocation14 + $0x5] ss:$0 sm:$0xff] }
 0x8b9   :  { %2563 = vmatpush.msrb.mxu1 %v2472_v2  ;;  %2541 = vmatpush.msrb.mxu0 %v2488_v23 }
 0x8bb   :  { %2564 = vmatpush.msrb.mxu1 %v2471_v9  ;;  %2542 = vmatpush.msrb.mxu0 %v2487_v44 }
 0x8bd   :  { %2565 = vmatpush.msrb.mxu1 %v2470_v45  ;;  %2543 = vmatpush.msrb.mxu0 %v2486_v46 }
 0x8bf   :  { %2566 = vmatpush.msrb.mxu1 %v2469_v0 }
 0x92d   :  { %v2239_v53 = vpop.f32.mrf.mxu3 }
 0x92e   :  { %v2240_v54 = vadd.f32 %v3389_v51, %v2239_v53 }
 0x930   :  { %v4073_v27 = vadd.f32 %v2240_v54, %v4063_v34  ;;  %v4080_v34 = vld [vmem:[#allocation2 + $0x58] sm:$0xff] }
 0x932   :  { %v2247_v57 = vmax.f32 %v4073_v27, 0.0 }
 0x934   :  { %2261 = vst [vmem:[#allocation2 + $0x10] sm:$0xff] %v2247_v57  ;;  %2336 = vmatmul.f32.vlgmr.msra.gmra.mxu0 %v2247_v57 }
 0x935   :  { %v2242_v59 = vpop.f32.mrf.mxu3 }
 0x936   :  { %v2243_v60 = vadd.f32 %v3389_v51, %v2242_v59  ;;  %v2485_v59 = vld [vmem:[#allocation7 + $0x4b0] sm:$0xff] }
 0x937   :  { %2544 = vmatpush.msrb.mxu0 %v2485_v59  ;;  %v2728_v59 = vld [vmem:[#allocation10 + $0xa58] sm:$0xff] }
 0x938   :  { %v4077_v61 = vadd.f32 %v2243_v60, %v4067_v30  ;;  %v2411_v30 = vld [vmem:[#allocation13 + $0x2d0] sm:$0xff]  ;;  %v2484_v60 = vld [vmem:[#allocation7 + $0x4a8] sm:$0xff] }
 0x939   :  { %2427 = vmatpush.msrb.mxu3 %v2411_v30  ;;  %2545 = vmatpush.msrb.mxu0 %v2484_v60  ;;  %v2481_v30 = vld [vmem:[#allocation7 + $0x490] sm:$0xff]  ;;  %v2711_v60 = vld [vmem:[#allocation10 + $0x9d8] sm:$0xff] }
 0x93a   :  { %v2248_v62 = vmax.f32 %v4077_v61, 0.0 }
 0x93b   :  { %v2316_v63 = vld [vmem:[#allocation2 + $0xf] sm:$0xff]  ;;  %2428 = vmatpush.msrb.mxu3 %v2410_v5 }
 0x93c   :  { %2262 = vst [vmem:[#allocation2 + $0x18] sm:$0xff] %v2248_v62  ;;  %2359 = vmatmul.f32.vlgmr.msra.gmra.mxu1 %v2316_v63  ;;  %2339 = vmatmul.f32.gmra.mxu0 %v2248_v62  ;;  %v2483_v62 = vld [vmem:[#allocation7 + $0x4a0] sm:$0xff]  ;;  %v2482_v63 = vld [vmem:[#allocation7 + $0x498] sm:$0xff]  ;;  %v2467_v5 = vld [vmem:[#allocation7 + $0x428] sm:$0xff] }
 0x93d   :  { %2448 = vst [vmem:[#allocation2 + $0x8] sm:$0xff] %v4080_v34  ;;  %2429 = vmatpush.msrb.mxu3 %v2409_v7  ;;  %2546 = vmatpush.msrb.mxu0 %v2483_v62  ;;  %v2505_v7 = vld [vmem:[#allocation7 + $0x548] sm:$0xff] }
 0x93f   :  { %2430 = vmatpush.msrb.mxu3 %v2408_v8  ;;  %2547 = vmatpush.msrb.mxu0 %v2482_v63  ;;  %v2522_v8 = vld [vmem:[#allocation7 + $0x5c8] sm:$0xff]  ;;  %v2693_v63 = vld [vmem:[#allocation10 + $0x950] sm:$0xff] }
 0x941   :  { %2431 = vmatpush.msrb.mxu3 %v2407_v13  ;;  %2548 = vmatpush.msrb.mxu0 %v2481_v30  ;;  %v2480_v13 = vld [vmem:[#allocation7 + $0x488] sm:$0xff] }
 0x942   :  { %v2692_v30 = vld [vmem:[#allocation10 + $0x948] sm:$0xff] }
 0x943   :  { %v2317_v1 = vld [vmem:[#allocation2 + $0x17] sm:$0xff]  ;;  %2432 = vmatpush.msrb.mxu3 %v2406_v15  ;;  %v2466_v15 = vld [vmem:[#allocation7 + $0x420] sm:$0xff]  ;;  %2549 = vmatpush.msrb.mxu0 %v2480_v13 }
 0x944   :  { %v2366_v3 = vld [vmem:[#allocation2 + $0x11] sm:$0xff]  ;;  %v2367_v4 = vld [vmem:[#allocation2 + $0x19] sm:$0xff]  ;;  %2362 = vmatmul.f32.gmra.mxu1 %v2317_v1  ;;  %v2725_v13 = vld [vmem:[#allocation10 + $0xa40] sm:$0xff] }
 0x945   :  { %2384 = vmatmul.f32.vlgmr.msra.gmra.mxu2 %v2366_v3  ;;  %2451 = vst [vmem:[#allocation2 + $0x20] sm:$0xff] %v4080_v34  ;;  %2433 = vmatpush.msrb.mxu3 %v2405_v17  ;;  %v2468_v1 = vld [vmem:[#allocation7 + $0x430] sm:$0xff]  ;;  %v2504_v17 = vld [vmem:[#allocation7 + $0x540] sm:$0xff] }
 0x946   :  { %v2506_v3 = vld [vmem:[#allocation7 + $0x550] sm:$0xff]  ;;  %2567 = vmatpush.msrb.mxu1 %v2468_v1 }
 0x947   :  { %2434 = vmatpush.msrb.mxu3 %v2404_v18  ;;  %2588 = vmatpush.msrb.mxu2 %v2506_v3  ;;  %v2521_v18 = vld [vmem:[#allocation7 + $0x5c0] sm:$0xff]  ;;  %v2727_v1 = vld [vmem:[#allocation10 + $0xa50] sm:$0xff] }
 0x948   :  { %2568 = vmatpush.msrb.mxu1 %v2467_v5  ;;  %v2710_v3 = vld [vmem:[#allocation10 + $0x9d0] sm:$0xff]  ;;  %v2726_v5 = vld [vmem:[#allocation10 + $0xa48] sm:$0xff] }
 0x949   :  { %2435 = vmatpush.msrb.mxu3 %v2403_v10  ;;  %2589 = vmatpush.msrb.mxu2 %v2505_v7  ;;  %v2479_v10 = vld [vmem:[#allocation7 + $0x480] sm:$0xff]  ;;  %v2709_v7 = vld [vmem:[#allocation10 + $0x9c8] sm:$0xff] }
 0x94a   :  { %2569 = vmatpush.msrb.mxu1 %v2466_v15  ;;  %2550 = vmatpush.msrb.mxu0 %v2479_v10  ;;  %v2708_v15 = vld [vmem:[#allocation10 + $0x9c0] sm:$0xff]  ;;  %v2690_v10 = vld [vmem:[#allocation10 + $0x938] sm:$0xff] }
 0x94b   :  { %2436 = vmatpush.msrb.mxu3 %v2402_v19  ;;  %2590 = vmatpush.msrb.mxu2 %v2504_v17  ;;  %v2465_v19 = vld [vmem:[#allocation7 + $0x418] sm:$0xff] }
 0x94c   :  { %2570 = vmatpush.msrb.mxu1 %v2465_v19  ;;  %v2724_v19 = vld [vmem:[#allocation10 + $0xa38] sm:$0xff] }
 0x94d   :  { %2387 = vmatmul.f32.gmra.mxu2 %v2367_v4  ;;  %2437 = vmatpush.msrb.mxu3 %v2401_v20  ;;  %v2523_v4 = vld [vmem:[#allocation7 + $0x5d0] sm:$0xff]  ;;  %v2503_v20 = vld [vmem:[#allocation7 + $0x538] sm:$0xff] }
 0x94e   :  { %2591 = vmatpush.msrb.mxu2 %v2503_v20  ;;  %2571 = vmatpush.msrb.mxu1 %v2464_v21  ;;  %v2707_v20 = vld [vmem:[#allocation10 + $0x9b8] sm:$0xff]  ;;  %v2723_v21 = vld [vmem:[#allocation10 + $0xa30] sm:$0xff] }
 0x94f   :  { %2610 = vmatpush.msra.mxu3 %v2528_v36  ;;  %v2462_v36 = vld [vmem:[#allocation7 + $0x400] sm:$0xff] }
 0x950   :  { %2592 = vmatpush.msrb.mxu2 %v2502_v22  ;;  %2572 = vmatpush.msrb.mxu1 %v2463_v25  ;;  %v2706_v22 = vld [vmem:[#allocation10 + $0x9b0] sm:$0xff] }
 0x951   :  { %2611 = vmatpush.msra.mxu3 %v2527_v41  ;;  %v2498_v41 = vld [vmem:[#allocation7 + $0x510] sm:$0xff] }
 0x952   :  { %2593 = vmatpush.msrb.mxu2 %v2501_v29  ;;  %2573 = vmatpush.msrb.mxu1 %v2462_v36  ;;  %v2688_v29 = vld [vmem:[#allocation10 + $0x928] sm:$0xff] }
 0x953   :  { %2612 = vmatpush.msra.mxu3 %v2526_v35  ;;  %v2514_v35 = vld [vmem:[#allocation7 + $0x588] sm:$0xff] }
 0x954   :  { %2594 = vmatpush.msrb.mxu2 %v2500_v38  ;;  %v2687_v38 = vld [vmem:[#allocation10 + $0x920] sm:$0xff] }
 0x955   :  { %2613 = vmatpush.msra.mxu3 %v2525_v40  ;;  %v2513_v40 = vld [vmem:[#allocation7 + $0x580] sm:$0xff] }
 0x956   :  { %2595 = vmatpush.msrb.mxu2 %v2499_v33 }
 0x957   :  { %2614 = vmatpush.msra.mxu3 %v2524_v31 }
 0x958   :  { %2596 = vmatpush.msrb.mxu2 %v2498_v41 }
 0x959   :  { %2615 = vmatpush.msra.mxu3 %v2523_v4 }
 0x95a   :  { %2597 = vmatpush.msrb.mxu2 %v2497_v39 }
 0x95b   :  { %2616 = vmatpush.msra.mxu3 %v2522_v8  ;;  %v2691_v8 = vld [vmem:[#allocation10 + $0x940] sm:$0xff] }
 0x95c   :  { %2598 = vmatpush.msrb.mxu2 %v2496_v24 }
 0x95d   :  { %2617 = vmatpush.msra.mxu3 %v2521_v18 }
 0x95f   :  { %2618 = vmatpush.msra.mxu3 %v2520_v16  ;;  %v2689_v16 = vld [vmem:[#allocation10 + $0x930] sm:$0xff] }
 0x961   :  { %2619 = vmatpush.msra.mxu3 %v2519_v26 }
 0x963   :  { %2620 = vmatpush.msra.mxu3 %v2518_v14  ;;  %v2722_v14 = vld [vmem:[#allocation10 + $0xa28] sm:$0xff] }
 0x965   :  { %2621 = vmatpush.msra.mxu3 %v2517_v6  ;;  %v2721_v6 = vld [vmem:[#allocation10 + $0xa20] sm:$0xff] }
 0x967   :  { %2622 = vmatpush.msra.mxu3 %v2516_v11 }
 0x969   :  { %2623 = vmatpush.msra.mxu3 %v2515_v32  ;;  %v2686_v32 = vld [vmem:[#allocation10 + $0x918] sm:$0xff] }
 0x96b   :  { %2624 = vmatpush.msra.mxu3 %v2514_v35 }
 0x96d   :  { %2625 = vmatpush.msra.mxu3 %v2513_v40  ;;  %v3392_v40 = vld [vmem:[#allocation8 + $0x2] ss:$0 sm:$0xff] }
 0x9b1   :  { %v2337_v12 = vpop.f32.mrf.mxu0 }
 0x9b9   :  { %v2360_v43 = vpop.f32.mrf.mxu1  ;;  %v2340_v53 = vpop.f32.mrf.mxu0 }
 0x9ba   :  { %v2361_v48 = vadd.f32 %v2360_v43, %v2337_v12 }
 0x9c1   :  { %v2363_v47 = vpop.f32.mrf.mxu1 }
 0x9c2   :  { %v2364_v54 = vadd.f32 %v2363_v47, %v2340_v53  ;;  %v2696_v47 = vld [vmem:[#allocation10 + $0x968] sm:$0xff]  ;;  %v2714_v53 = vld [vmem:[#allocation10 + $0x9f0] sm:$0xff] }
 0x9c8   :  { %v2385_v49 = vpop.f32.mrf.mxu2 }
 0x9c9   :  { %v2391_v50 = vadd.f32 %v2385_v49, %v2361_v48  ;;  %v2732_v49 = vld [vmem:[#allocation10 + $0xa78] sm:$0xff] }
 0x9cb   :  { %v2396_v51 = vadd.f32 %v3390_v28, %v2391_v50  ;;  %v2731_v50 = vld [vmem:[#allocation10 + $0xa70] sm:$0xff] }
 0x9cd   :  { %v2398_v52 = vmax.f32 %v2396_v51, 0.0  ;;  %v2715_v51 = vld [vmem:[#allocation10 + $0x9f8] sm:$0xff] }
 0x9ce   :  { %2737 = vmatpush.msra.mxu1 %v2715_v51  ;;  %v2700_v51 = vld [vmem:[#allocation10 + $0x980] sm:$0xff] }
 0x9cf   :  { %2438 = vmatmul.f32.vlgmr.msrb.gmra.mxu3 %v2398_v52  ;;  %v2730_v52 = vld [vmem:[#allocation10 + $0xa68] sm:$0xff] }
 0x9d0   :  { %v2388_v55 = vpop.f32.mrf.mxu2  ;;  %2778 = vmatpush.msrb.mxu3 %v2732_v49  ;;  %2738 = vmatpush.msra.mxu1 %v2714_v53  ;;  %v2818_v53 = vld [vmem:[#allocation13 + $0x368] sm:$0xff] }
 0x9d1   :  { %v2392_v56 = vadd.f32 %v2388_v55, %v2364_v54  ;;  %v2713_v54 = vld [vmem:[#allocation10 + $0x9e8] sm:$0xff]  ;;  %v2695_v55 = vld [vmem:[#allocation10 + $0x960] sm:$0xff] }
 0x9d2   :  { %2779 = vmatpush.msrb.mxu3 %v2731_v50  ;;  %2739 = vmatpush.msra.mxu1 %v2713_v54  ;;  %v2701_v50 = vld [vmem:[#allocation10 + $0x988] sm:$0xff] }
 0x9d3   :  { %v2397_v57 = vadd.f32 %v3390_v28, %v2392_v56  ;;  %v2729_v56 = vld [vmem:[#allocation10 + $0xa60] sm:$0xff]  ;;  %v2817_v54 = vld [vmem:[#allocation13 + $0x360] sm:$0xff] }
 0x9d4   :  { %2780 = vmatpush.msrb.mxu3 %v2730_v52  ;;  %v2819_v52 = vld [vmem:[#allocation13 + $0x370] sm:$0xff] }
 0x9d5   :  { %v2399_v58 = vmax.f32 %v2397_v57, 0.0  ;;  %v2712_v57 = vld [vmem:[#allocation10 + $0x9e0] sm:$0xff] }
 0x9d6   :  { %2781 = vmatpush.msrb.mxu3 %v2729_v56  ;;  %2740 = vmatpush.msra.mxu1 %v2712_v57  ;;  %v2815_v56 = vld [vmem:[#allocation13 + $0x350] sm:$0xff]  ;;  %v2814_v57 = vld [vmem:[#allocation13 + $0x348] sm:$0xff] }
 0x9d7   :  { %2441 = vmatmul.f32.gmra.mxu3 %v2399_v58  ;;  %v2694_v58 = vld [vmem:[#allocation10 + $0x958] sm:$0xff] }
 0x9d8   :  { %2782 = vmatpush.msrb.mxu3 %v2728_v59  ;;  %2741 = vmatpush.msra.mxu1 %v2711_v60  ;;  %v2812_v59 = vld [vmem:[#allocation13 + $0x338] sm:$0xff]  ;;  %v2811_v60 = vld [vmem:[#allocation13 + $0x330] sm:$0xff] }
 0x9da   :  { %2783 = vmatpush.msrb.mxu3 %v2727_v1  ;;  %2742 = vmatpush.msra.mxu1 %v2710_v3  ;;  %v2809_v3 = vld [vmem:[#allocation13 + $0x320] sm:$0xff] }
 0x9dc   :  { %2784 = vmatpush.msrb.mxu3 %v2726_v5  ;;  %2743 = vmatpush.msra.mxu1 %v2709_v7  ;;  %v2806_v5 = vld [vmem:[#allocation13 + $0x308] sm:$0xff]  ;;  %v2805_v7 = vld [vmem:[#allocation13 + $0x300] sm:$0xff] }
 0x9de   :  { %2785 = vmatpush.msrb.mxu3 %v2725_v13  ;;  %2744 = vmatpush.msra.mxu1 %v2708_v15  ;;  %v2877_v13 = vld [vmem:[#allocation10 + $0xaf8] sm:$0xff] }
 0x9df   :  { %v2911_v15 = vld [vmem:[#allocation10 + $0xbf8] sm:$0xff] }
 0x9e0   :  { %2786 = vmatpush.msrb.mxu3 %v2724_v19  ;;  %2745 = vmatpush.msra.mxu1 %v2707_v20  ;;  %v2892_v19 = vld [vmem:[#allocation10 + $0xb68] sm:$0xff] }
 0x9e1   :  { %v2875_v20 = vld [vmem:[#allocation10 + $0xae8] sm:$0xff] }
 0x9e2   :  { %2787 = vmatpush.msrb.mxu3 %v2723_v21  ;;  %2746 = vmatpush.msra.mxu1 %v2706_v22  ;;  %v2891_v21 = vld [vmem:[#allocation10 + $0xb60] sm:$0xff] }
 0x9e3   :  { %v2874_v22 = vld [vmem:[#allocation10 + $0xae0] sm:$0xff] }
 0x9e4   :  { %2788 = vmatpush.msrb.mxu3 %v2722_v14  ;;  %v2907_v14 = vld [vmem:[#allocation10 + $0xbd8] sm:$0xff] }
 0x9e6   :  { %2789 = vmatpush.msrb.mxu3 %v2721_v6  ;;  %v2906_v6 = vld [vmem:[#allocation10 + $0xbd0] sm:$0xff] }
 0xa52   :  { %v2439_v2 = vpop.f32.mrf.mxu3 }
 0xa53   :  { %v2440_v42 = vadd.f32 %v3391_v37, %v2439_v2 }
 0xa55   :  { %v2445_v31 = vadd.f32 %v2440_v42, %v4073_v27  ;;  %v2698_v27 = vld [vmem:[#allocation10 + $0x978] sm:$0xff] }
 0xa56   :  { %2757 = vmatpush.msra.mxu2 %v2698_v27  ;;  %v2702_v27 = vld [vmem:[#allocation10 + $0x990] sm:$0xff] }
 0xa57   :  { %2459 = vst [vmem:[#allocation2 + $0x10] sm:$0xff] %v2445_v31  ;;  %2551 = vmatmul.f32.vlgmr.msrb.gmra.mxu0 %v2445_v31  ;;  %v2640_v31 = vld [vmem:[#allocation22] sm:$0xff] }
 0xa5a   :  { %v2442_v23 = vpop.f32.mrf.mxu3 }
 0xa5b   :  { %v2443_v9 = vadd.f32 %v3391_v37, %v2442_v23  ;;  %v2705_v23 = vld [vmem:[#allocation10 + $0x9a8] sm:$0xff] }
 0xa5c   :  { %2747 = vmatpush.msra.mxu1 %v2705_v23 }
 0xa5d   :  { %v2446_v43 = vadd.f32 %v2443_v9, %v4077_v61  ;;  %v2697_v61 = vld [vmem:[#allocation10 + $0x970] sm:$0xff] }
 0xa5e   :  { %v2531_v44 = vld [vmem:[#allocation2 + $0xf] sm:$0xff]  ;;  %2758 = vmatpush.msra.mxu2 %v2697_v61  ;;  %v2717_v61 = vld [vmem:[#allocation10 + $0xa00] sm:$0xff] }
 0xa5f   :  { %2460 = vst [vmem:[#allocation2 + $0x18] sm:$0xff] %v2446_v43  ;;  %2574 = vmatmul.f32.vlgmr.msrb.gmra.mxu1 %v2531_v44  ;;  %v2685_v9 = vld [vmem:[#allocation10 + $0x910] sm:$0xff]  ;;  %v2720_v43 = vld [vmem:[#allocation10 + $0xa18] sm:$0xff]  ;;  %v2704_v44 = vld [vmem:[#allocation10 + $0x9a0] sm:$0xff] }
 0xa60   :  { %2670 = vst [vmem:[#allocation2 + $0x8] sm:$0xff] %v4080_v34  ;;  %2759 = vmatpush.msra.mxu2 %v2696_v47  ;;  %2790 = vmatpush.msrb.mxu3 %v2720_v43  ;;  %v2820_v47 = vld [vmem:[#allocation13 + $0x378] sm:$0xff]  ;;  %v2886_v43 = vld [vmem:[#allocation10 + $0xb38] sm:$0xff] }
 0xa61   :  { %2748 = vmatpush.msra.mxu1 %v2704_v44  ;;  %v2885_v44 = vld [vmem:[#allocation10 + $0xb30] sm:$0xff] }
 0xa62   :  { %2760 = vmatpush.msra.mxu2 %v2695_v55  ;;  %v2816_v55 = vld [vmem:[#allocation13 + $0x358] sm:$0xff] }
 0xa64   :  { %2761 = vmatpush.msra.mxu2 %v2694_v58  ;;  %v2813_v58 = vld [vmem:[#allocation13 + $0x340] sm:$0xff] }
 0xa66   :  { %v2534_v45 = vld [vmem:[#allocation2 + $0x18] sm:$0x7f]  ;;  %2762 = vmatpush.msra.mxu2 %v2693_v63 }
 0xa67   :  { %v2532_v12 = vld [vmem:[#allocation2 + $0x17] sm:$0x7f]  ;;  %2554 = vmatmul.f32.gmra.mxu0 %v2534_v45  ;;  %v2684_v45 = vld [vmem:[#allocation10 + $0x908] sm:$0xff] }
 0xa68   :  { %v2581_v46 = vld [vmem:[#allocation2 + $0x11] sm:$0xff]  ;;  %2577 = vmatmul.f32.gmra.mxu1 %v2532_v12  ;;  %v2582_v48 = vld [vmem:[#allocation2 + $0x19] sm:$0x7f]  ;;  %2763 = vmatpush.msra.mxu2 %v2692_v30  ;;  %v2807_v30 = vld [vmem:[#allocation13 + $0x310] sm:$0xff] }
 0xa69   :  { %v2608_v0 = vld [vmem:[#allocation2 + $0x12] sm:$0xff]  ;;  %v2609_v28 = vld [vmem:[#allocation2 + $0x1a] sm:$0x7f]  ;;  %2599 = vmatmul.f32.vlgmr.msrb.gmra.mxu2 %v2581_v46 }
 0xa6a   :  { %2626 = vmatmul.f32.vlgmr.msra.gmra.mxu3 %v2608_v0  ;;  %2672 = vst [vmem:[#allocation2 + $0x18] sm:$0xff] %v4080_v34  ;;  %2764 = vmatpush.msra.mxu2 %v2691_v8  ;;  %v2719_v12 = vld [vmem:[#allocation10 + $0xa10] sm:$0xff]  ;;  %v2703_v46 = vld [vmem:[#allocation10 + $0x998] sm:$0xff]  ;;  %v2683_v0 = vld [vmem:[#allocation10 + $0x900] sm:$0xff] }
 0xa6b   :  { %2673 = vst [vmem:[#allocation2 + $0x20] sm:$0xff] %v4080_v34  ;;  %2791 = vmatpush.msrb.mxu3 %v2719_v12  ;;  %2749 = vmatpush.msra.mxu1 %v2703_v46  ;;  %v2894_v8 = vld [vmem:[#allocation10 + $0xb78] sm:$0xff]  ;;  %v2883_v12 = vld [vmem:[#allocation10 + $0xb20] sm:$0xff] }
 0xa6c   :  { %2765 = vmatpush.msra.mxu2 %v2690_v10  ;;  %v2910_v10 = vld [vmem:[#allocation10 + $0xbf0] sm:$0xff]  ;;  %v2869_v46 = vld [vmem:[#allocation10 + $0xab8] sm:$0xff] }
 0xa6d   :  { %2750 = vmatpush.msra.mxu1 %v2702_v27  ;;  %v2902_v27 = vld [vmem:[#allocation10 + $0xbb0] sm:$0xff] }
 0xa6e   :  { %2766 = vmatpush.msra.mxu2 %v2689_v16  ;;  %v2909_v16 = vld [vmem:[#allocation10 + $0xbe8] sm:$0xff] }
 0xa6f   :  { %2751 = vmatpush.msra.mxu1 %v2701_v50  ;;  %v2901_v50 = vld [vmem:[#allocation10 + $0xba8] sm:$0xff] }
 0xa70   :  { %2767 = vmatpush.msra.mxu2 %v2688_v29  ;;  %v2873_v29 = vld [vmem:[#allocation10 + $0xad8] sm:$0xff] }
 0xa71   :  { %2602 = vmatmul.f32.gmra.mxu2 %v2582_v48  ;;  %v2718_v48 = vld [vmem:[#allocation10 + $0xa08] sm:$0xff]  ;;  %2752 = vmatpush.msra.mxu1 %v2700_v51 }
 0xa72   :  { %2629 = vmatmul.f32.gmra.mxu3 %v2609_v28  ;;  %2768 = vmatpush.msra.mxu2 %v2687_v38  ;;  %v2735_v28 = vld [vmem:[#allocation2 + $0x7] sm:$0xff]  ;;  %v2777_v49 = vld [vmem:[#allocation2 + $0x19] sm:$0xff] }
 0xa73   :  { %2792 = vmatpush.msrb.mxu3 %v2718_v48  ;;  %3205 = vst [vmem:[#allocation2] sm:$0xff] %v4080_v34  ;;  %2916 = vmatpush.msrb.mxu1 %v2894_v8  ;;  %v2872_v38 = vld [vmem:[#allocation10 + $0xad0] sm:$0xff]  ;;  %v2882_v48 = vld [vmem:[#allocation10 + $0xb18] sm:$0xff]  ;;  %v2880_v51 = vld [vmem:[#allocation10 + $0xb08] sm:$0xff] }
 0xa74   :  { %2769 = vmatpush.msra.mxu2 %v2686_v32  ;;  %2849 = vst [vmem:[#allocation2 + $0x8] sm:$0xff] %v4080_v34  ;;  %v2887_v32 = vld [vmem:[#allocation10 + $0xb40] sm:$0xff]  ;;  %v2993_v8 = vld [vmem:[#allocation13 + $0x3c8] sm:$0xff] }
 0xa75   :  { %2793 = vmatpush.msrb.mxu3 %v2717_v61  ;;  %3209 = vst [vmem:[#allocation2 + $0x20] sm:$0xff] %v4080_v34  ;;  %v2881_v61 = vld [vmem:[#allocation10 + $0xb10] sm:$0xff] }
 0xa76   :  { %2770 = vmatpush.msra.mxu2 %v2685_v9  ;;  %2851 = vst [vmem:[#allocation2 + $0x18] sm:$0xff] %v4080_v34 }
 0xa77   :  { %2957 = vmatpush.msra.mxu3 %v2911_v15  ;;  %v3394_v15 = vld [vmem:[#allocation14 + $0x6] ss:$0 sm:$0xff] }
 0xa78   :  { %2771 = vmatpush.msra.mxu2 %v2684_v45  ;;  %v2884_v45 = vld [vmem:[#allocation10 + $0xb28] sm:$0xff] }
 0xa79   :  { %2958 = vmatpush.msra.mxu3 %v2910_v10 }
 0xa7a   :  { %2772 = vmatpush.msra.mxu2 %v2683_v0  ;;  %2794 = vmatmul.f32.vlgmr.msrb.gmra.mxu3 %v2777_v49  ;;  %v2903_v0 = vld [vmem:[#allocation10 + $0xbb8] sm:$0xff]  ;;  %v2867_v49 = vld [vmem:[#allocation10 + $0xaa8] sm:$0xff] }
 0xa7b   :  { %2773 = vmatmul.f32.vlgmr.msra.gmra.mxu2 %v2735_v28  ;;  %2959 = vmatpush.msra.mxu3 %v2909_v16  ;;  %v2868_v28 = vld [vmem:[#allocation10 + $0xab0] sm:$0xff] }
 0xa7c   :  { %2936 = vmatpush.msrb.mxu2 %v2877_v13  ;;  %v2992_v13 = vld [vmem:[#allocation13 + $0x3c0] sm:$0xff] }
 0xad4   :  { %v2552_v4 = vpop.f32.mrf.mxu0 }
 0xadc   :  { %v2575_v62 = vpop.f32.mrf.mxu1 }
 0xadd   :  { %v2576_v36 = vadd.f32 %v2575_v62, %v2552_v4  ;;  %v2810_v62 = vld [vmem:[#allocation13 + $0x328] sm:$0xff]  ;;  %v2808_v4 = vld [vmem:[#allocation13 + $0x318] sm:$0xff] }
 0xae4   :  { %v2555_v26 = vpop.f32.mrf.mxu0 }
 0xae5   :  { %v2578_v25 = vpop.f32.mrf.mxu1 }
 0xae6   :  { %v2579_v33 = vadd.f32 %v2578_v25, %v2555_v26  ;;  %v2908_v26 = vld [vmem:[#allocation10 + $0xbe0] sm:$0xff]  ;;  %v2890_v25 = vld [vmem:[#allocation10 + $0xb58] sm:$0xff] }
 0xae7   :  { %2960 = vmatpush.msra.mxu3 %v2908_v26  ;;  %v2989_v26 = vld [vmem:[#allocation13 + $0x3a8] sm:$0xff] }
 0xae9   :  { %2961 = vmatpush.msra.mxu3 %v2907_v14  ;;  %v2985_v14 = vld [vmem:[#allocation13 + $0x388] sm:$0xff] }
 0xaeb   :  { %2962 = vmatpush.msra.mxu3 %v2906_v6  ;;  %v3056_v6 = vld [vmem:[#allocation10 + $0xc78] sm:$0xff] }
 0xaec   :  { %v2600_v17 = vpop.f32.mrf.mxu2 }
 0xaed   :  { %v2627_v18 = vpop.f32.mrf.mxu3  ;;  %v2606_v11 = vadd.f32 %v2600_v17, %v2576_v36  ;;  %v2893_v17 = vld [vmem:[#allocation10 + $0xb70] sm:$0xff] }
 0xaee   :  { %2917 = vmatpush.msrb.mxu1 %v2893_v17  ;;  %v2889_v36 = vld [vmem:[#allocation10 + $0xb50] sm:$0xff] }
 0xaef   :  { %v2633_v24 = vadd.f32 %v2627_v18, %v2606_v11  ;;  %v2876_v18 = vld [vmem:[#allocation10 + $0xaf0] sm:$0xff]  ;;  %v2871_v11 = vld [vmem:[#allocation10 + $0xac8] sm:$0xff] }
 0xaf0   :  { %2937 = vmatpush.msrb.mxu2 %v2876_v18  ;;  %2918 = vmatpush.msrb.mxu1 %v2892_v19 }
 0xaf1   :  { %v2638_v42 = vadd.f32 %v3392_v40, %v2633_v24 }
 0xaf2   :  { %2938 = vmatpush.msrb.mxu2 %v2875_v20  ;;  %2919 = vmatpush.msrb.mxu1 %v2891_v21  ;;  %v2991_v21 = vld [vmem:[#allocation13 + $0x3b8] sm:$0xff] }
 0xaf4   :  { %v2603_v41 = vpop.f32.mrf.mxu2  ;;  %2939 = vmatpush.msrb.mxu2 %v2874_v22  ;;  %2920 = vmatpush.msrb.mxu1 %v2890_v25  ;;  %v2990_v22 = vld [vmem:[#allocation13 + $0x3b0] sm:$0xff]  ;;  %v2987_v25 = vld [vmem:[#allocation13 + $0x398] sm:$0xff] }
 0xaf5   :  { %v2607_v39 = vadd.f32 %v2603_v41, %v2579_v33  ;;  %v2630_v35 = vpop.f32.mrf.mxu3  ;;  %v2888_v33 = vld [vmem:[#allocation10 + $0xb48] sm:$0xff] }
 0xaf6   :  { %2940 = vmatpush.msrb.mxu2 %v2873_v29  ;;  %2921 = vmatpush.msrb.mxu1 %v2889_v36  ;;  %v2905_v41 = vld [vmem:[#allocation10 + $0xbc8] sm:$0xff]  ;;  %v2986_v29 = vld [vmem:[#allocation13 + $0x390] sm:$0xff] }
 0xaf7   :  { %v2634_v37 = vadd.f32 %v2630_v35, %v2607_v39  ;;  %v2870_v39 = vld [vmem:[#allocation10 + $0xac0] sm:$0xff]  ;;  %2963 = vmatpush.msra.mxu3 %v2905_v41  ;;  %v2984_v36 = vld [vmem:[#allocation13 + $0x380] sm:$0xff] }
 0xaf8   :  { %2941 = vmatpush.msrb.mxu2 %v2872_v38  ;;  %2922 = vmatpush.msrb.mxu1 %v2888_v33  ;;  %v2904_v35 = vld [vmem:[#allocation10 + $0xbc0] sm:$0xff]  ;;  %v3073_v38 = vld [vmem:[#allocation10 + $0xcf8] sm:$0xff]  ;;  %v3089_v41 = vld [vmem:[#allocation10 + $0xd70] sm:$0xff] }
 0xaf9   :  { %v2639_v2 = vadd.f32 %v3392_v40, %v2634_v37  ;;  %2964 = vmatpush.msra.mxu3 %v2904_v35  ;;  %v3090_v33 = vld [vmem:[#allocation10 + $0xd78] sm:$0xff]  ;;  %v3088_v35 = vld [vmem:[#allocation10 + $0xd68] sm:$0xff] }
 0xafa   :  { %2942 = vmatpush.msrb.mxu2 %v2871_v11  ;;  %2923 = vmatpush.msrb.mxu1 %v2887_v32  ;;  %v3055_v11 = vld [vmem:[#allocation10 + $0xc70] sm:$0xff]  ;;  %v3071_v32 = vld [vmem:[#allocation10 + $0xce8] sm:$0xff] }
 0xafb   :  { %3357 = vmatpush.msk.msra.mxu0 %vm824_vm0, %v2639_v2  ;;  %2965 = vmatpush.msra.mxu3 %v2903_v0  ;;  %v3049_v0 = vld [vmem:[#allocation10 + $0xc40] sm:$0xff] }
 0xafc   :  { %2943 = vmatpush.msrb.mxu2 %v2870_v39  ;;  %2924 = vmatpush.msrb.mxu1 %v2886_v43  ;;  %v3054_v39 = vld [vmem:[#allocation10 + $0xc68] sm:$0xff]  ;;  %v3085_v43 = vld [vmem:[#allocation10 + $0xd50] sm:$0xff] }
 0xafd   :  { %2663 = vmatpush.msra.mxu0 %v2638_v42  ;;  %v2795_v37 = vpop.f32.mrf.mxu3  ;;  %v3393_v42 = vld [vmem:[#allocation11 + $0x6] ss:$0 sm:$0xff]  ;;  %2966 = vmatpush.msra.mxu3 %v2902_v27 }
 0xafe   :  { %3358 = vmatmul.msk.f32.vlgmr.msra.gmra.mxu0 %vm2641_vm3, %v2640_v31  ;;  %v2774_v24 = vpop.f32.mrf.mxu2  ;;  %2925 = vmatpush.msrb.mxu1 %v2885_v44  ;;  %v3067_v44 = vld [vmem:[#allocation10 + $0xcc8] sm:$0xff] }
 0xaff   :  { %2826 = vmatpush.msrb.mxu0 %v2820_v47  ;;  %2944 = vmatpush.msrb.mxu2 %v2869_v46  ;;  %v2866_v47 = vld [vmem:[#allocation10 + $0xaa0] sm:$0xff] }
 0xb00   :  { %2926 = vmatpush.msrb.mxu1 %v2884_v45  ;;  %2967 = vmatpush.msra.mxu3 %v2901_v50  ;;  %v3050_v45 = vld [vmem:[#allocation10 + $0xc48] sm:$0xff]  ;;  %v3066_v46 = vld [vmem:[#allocation10 + $0xcc0] sm:$0xff] }
 0xb01   :  { %2827 = vmatpush.msrb.mxu0 %v2819_v52  ;;  %2945 = vmatpush.msrb.mxu2 %v2868_v28  ;;  %v2900_v52 = vld [vmem:[#allocation10 + $0xba0] sm:$0xff] }
 0xb02   :  { %2927 = vmatpush.msrb.mxu1 %v2883_v12  ;;  %2968 = vmatpush.msra.mxu3 %v2900_v52  ;;  %v3084_v12 = vld [vmem:[#allocation10 + $0xd48] sm:$0xff] }
 0xb03   :  { %2828 = vmatpush.msrb.mxu0 %v2818_v53  ;;  %2946 = vmatpush.msrb.mxu2 %v2867_v49  ;;  %v2879_v53 = vld [vmem:[#allocation10 + $0xb00] sm:$0xff] }
 0xb04   :  { %2928 = vmatpush.msrb.mxu1 %v2882_v48  ;;  %v3083_v48 = vld [vmem:[#allocation10 + $0xd40] sm:$0xff] }
 0xb05   :  { %2829 = vmatpush.msrb.mxu0 %v2817_v54  ;;  %2947 = vmatpush.msrb.mxu2 %v2866_v47  ;;  %v2865_v54 = vld [vmem:[#allocation10 + $0xa98] sm:$0xff]  ;;  %v3395_v49 = vld [vmem:[#allocation11 + $0x7] ss:$0 sm:$0xff] }
 0xb06   :  { %2929 = vmatpush.msrb.mxu1 %v2881_v61 }
 0xb07   :  { %2830 = vmatpush.msrb.mxu0 %v2816_v55  ;;  %v2899_v55 = vld [vmem:[#allocation10 + $0xb98] sm:$0xff]  ;;  %2948 = vmatpush.msrb.mxu2 %v2865_v54  ;;  %v3064_v54 = vld [vmem:[#allocation10 + $0xcb0] sm:$0xff] }
 0xb08   :  { %2930 = vmatpush.msrb.mxu1 %v2880_v51  ;;  %2969 = vmatpush.msra.mxu3 %v2899_v55  ;;  %v3063_v55 = vld [vmem:[#allocation10 + $0xca8] sm:$0xff] }
 0xb09   :  { %2831 = vmatpush.msrb.mxu0 %v2815_v56  ;;  %v2864_v56 = vld [vmem:[#allocation10 + $0xa90] sm:$0xff] }
 0xb0a   :  { %2931 = vmatpush.msrb.mxu1 %v2879_v53  ;;  %2949 = vmatpush.msrb.mxu2 %v2864_v56  ;;  %v3065_v53 = vld [vmem:[#allocation10 + $0xcb8] sm:$0xff]  ;;  %v3062_v56 = vld [vmem:[#allocation10 + $0xca0] sm:$0xff] }
 0xb0b   :  { %2832 = vmatpush.msrb.mxu0 %v2814_v57  ;;  %v2898_v57 = vld [vmem:[#allocation10 + $0xb90] sm:$0xff] }
 0xb0c   :  { %2970 = vmatpush.msra.mxu3 %v2898_v57  ;;  %v3048_v57 = vld [vmem:[#allocation10 + $0xc38] sm:$0xff] }
 0xb0d   :  { %2833 = vmatpush.msrb.mxu0 %v2813_v58  ;;  %v2863_v58 = vld [vmem:[#allocation10 + $0xa88] sm:$0xff] }
 0xb0e   :  { %2950 = vmatpush.msrb.mxu2 %v2863_v58  ;;  %v3082_v58 = vld [vmem:[#allocation10 + $0xd38] sm:$0xff] }
 0xb0f   :  { %2834 = vmatpush.msrb.mxu0 %v2812_v59  ;;  %v2897_v59 = vld [vmem:[#allocation10 + $0xb88] sm:$0xff] }
 0xb10   :  { %2971 = vmatpush.msra.mxu3 %v2897_v59  ;;  %v3061_v59 = vld [vmem:[#allocation10 + $0xc98] sm:$0xff] }
 0xb11   :  { %2835 = vmatpush.msrb.mxu0 %v2811_v60  ;;  %v2862_v60 = vld [vmem:[#allocation10 + $0xa80] sm:$0xff] }
 0xb12   :  { %2951 = vmatpush.msrb.mxu2 %v2862_v60  ;;  %v3047_v60 = vld [vmem:[#allocation10 + $0xc30] sm:$0xff] }
 0xb13   :  { %2836 = vmatpush.msrb.mxu0 %v2810_v62  ;;  %v2896_v62 = vld [vmem:[#allocation10 + $0xb80] sm:$0xff] }
 0xb14   :  { %2972 = vmatpush.msra.mxu3 %v2896_v62  ;;  %3115 = vmatpush.msra.mxu2 %v3056_v6  ;;  %v3081_v62 = vld [vmem:[#allocation10 + $0xd30] sm:$0xff] }
 0xb15   :  { %2837 = vmatpush.msrb.mxu0 %v2809_v3  ;;  %v2998_v3 = vld [vmem:[#allocation13 + $0x3f0] sm:$0xff]  ;;  %v3396_v6 = vld [vmem:[#allocation14 + $0x7] ss:$0 sm:$0xff] }
 0xb16   :  { %3136 = vmatpush.msrb.mxu3 %v3090_v33  ;;  %3116 = vmatpush.msra.mxu2 %v3055_v11 }
 0xb17   :  { %2838 = vmatpush.msrb.mxu0 %v2808_v4  ;;  %v2997_v4 = vld [vmem:[#allocation13 + $0x3e8] sm:$0xff] }
 0xb18   :  { %3137 = vmatpush.msrb.mxu3 %v3089_v41  ;;  %3117 = vmatpush.msra.mxu2 %v3054_v39 }
 0xb19   :  { %2839 = vmatpush.msrb.mxu0 %v2807_v30  ;;  %v2996_v30 = vld [vmem:[#allocation13 + $0x3e0] sm:$0xff] }
 0xb1a   :  { %3138 = vmatpush.msrb.mxu3 %v3088_v35  ;;  %v3403_v35 = vld [vmem:[#allocation2 + $0x58] sm:$0xff] }
 0xb1b   :  { %2840 = vmatpush.msrb.mxu0 %v2806_v5  ;;  %v2995_v5 = vld [vmem:[#allocation13 + $0x3d8] sm:$0xff] }
 0xb1d   :  { %2841 = vmatpush.msrb.mxu0 %v2805_v7  ;;  %v2994_v7 = vld [vmem:[#allocation13 + $0x3d0] sm:$0xff] }
 0xb7b   :  { %v4094_v63 = vpop.f32.mrf.mxu0 }
 0xb7c   :  { %v2668_v1 = vmax.f32 %v4094_v63, 0.0 }
 0xb7e   :  { %2753 = vmatmul.f32.vlgmr.msra.gmra.mxu1 %v2668_v1  ;;  %v2999_v1 = vld [vmem:[#allocation13 + $0x3f8] sm:$0xff] }
 0xb7f   :  { %3005 = vmatpush.msra.mxu0 %v2999_v1  ;;  %3095 = vmatpush.msra.mxu1 %v3073_v38  ;;  %v3060_v1 = vld [vmem:[#allocation10 + $0xc90] sm:$0xff] }
 0xb80   :  { %v3171_v38 = vld [vmem:[#allocation13 + $0x440] sm:$0xff] }
 0xb81   :  { %3006 = vmatpush.msra.mxu0 %v2998_v3  ;;  %v3046_v3 = vld [vmem:[#allocation10 + $0xc28] sm:$0xff] }
 0xb83   :  { %3007 = vmatpush.msra.mxu0 %v2997_v4  ;;  %v3080_v4 = vld [vmem:[#allocation10 + $0xd28] sm:$0xff] }
 0xb85   :  { %3008 = vmatpush.msra.mxu0 %v2996_v30  ;;  %v3059_v30 = vld [vmem:[#allocation10 + $0xc88] sm:$0xff] }
 0xb87   :  { %3009 = vmatpush.msra.mxu0 %v2995_v5  ;;  %v3045_v5 = vld [vmem:[#allocation10 + $0xc20] sm:$0xff] }
 0xb89   :  { %3010 = vmatpush.msra.mxu0 %v2994_v7  ;;  %v3079_v7 = vld [vmem:[#allocation10 + $0xd20] sm:$0xff] }
 0xb8b   :  { %3011 = vmatpush.msra.mxu0 %v2993_v8  ;;  %v3058_v8 = vld [vmem:[#allocation10 + $0xc80] sm:$0xff] }
 0xb8d   :  { %3012 = vmatpush.msra.mxu0 %v2992_v13  ;;  %v3044_v13 = vld [vmem:[#allocation10 + $0xc18] sm:$0xff] }
 0xb8f   :  { %3013 = vmatpush.msra.mxu0 %v2991_v21  ;;  %v3075_v21 = vld [vmem:[#allocation10 + $0xd00] sm:$0xff] }
 0xb91   :  { %3014 = vmatpush.msra.mxu0 %v2990_v22  ;;  %v3178_v22 = vld [vmem:[#allocation13 + $0x478] sm:$0xff] }
 0xb93   :  { %3015 = vmatpush.msra.mxu0 %v2989_v26  ;;  %v3177_v26 = vld [vmem:[#allocation13 + $0x470] sm:$0xff] }
 0xbfb   :  { %v2754_v40 = vpop.f32.mrf.mxu1 }
 0xbfc   :  { %v2775_v2 = vadd.f32 %v2774_v24, %v2754_v40  ;;  %v3070_v24 = vld [vmem:[#allocation10 + $0xce0] sm:$0xff] }
 0xbfd   :  { %v3053_v40 = vld [vmem:[#allocation10 + $0xc60] sm:$0xff] }
 0xbfe   :  { %v2798_v31 = vadd.f32 %v2795_v37, %v2775_v2  ;;  %v3087_v37 = vld [vmem:[#allocation10 + $0xd60] sm:$0xff]  ;;  %v3069_v2 = vld [vmem:[#allocation10 + $0xcd8] sm:$0xff]  ;;  %3118 = vmatpush.msra.mxu2 %v3053_v40 }
 0xbff   :  { %3139 = vmatpush.msrb.mxu3 %v3087_v37  ;;  %v3169_v40 = vld [vmem:[#allocation13 + $0x430] sm:$0xff]  ;;  %v3168_v37 = vld [vmem:[#allocation13 + $0x428] sm:$0xff] }
 0xc00   :  { %v2802_v23 = vadd.f32 %v3393_v42, %v2798_v31  ;;  %v3052_v42 = vld [vmem:[#allocation10 + $0xc58] sm:$0xff] }
 0xc01   :  { %v3086_v31 = vld [vmem:[#allocation10 + $0xd58] sm:$0xff]  ;;  %3119 = vmatpush.msra.mxu2 %v3052_v42 }
 0xc02   :  { %v2803_v9 = vmax.f32 %v2802_v23, 0.0  ;;  %v3068_v23 = vld [vmem:[#allocation10 + $0xcd0] sm:$0xff]  ;;  %3140 = vmatpush.msrb.mxu3 %v3086_v31  ;;  %v3165_v42 = vld [vmem:[#allocation13 + $0x410] sm:$0xff] }
 0xc03   :  { %v3164_v31 = vld [vmem:[#allocation13 + $0x408] sm:$0xff] }
 0xc04   :  { %2842 = vmatmul.f32.vlgmr.msrb.gmra.mxu0 %v2803_v9  ;;  %v3051_v9 = vld [vmem:[#allocation10 + $0xc50] sm:$0xff]  ;;  %3141 = vmatpush.msrb.mxu3 %v3085_v43 }
 0xc05   :  { %3120 = vmatpush.msra.mxu2 %v3051_v9  ;;  %v3250_v9 = vld [vmem:[#allocation16 + $0xf8] sm:$0xff] }
 0xc06   :  { %3142 = vmatpush.msrb.mxu3 %v3084_v12  ;;  %v3233_v43 = vld [vmem:[#allocation16 + $0x78] sm:$0xff]  ;;  %v3232_v12 = vld [vmem:[#allocation16 + $0x70] sm:$0xff] }
 0xc07   :  { %3121 = vmatpush.msra.mxu2 %v3050_v45  ;;  %v3249_v45 = vld [vmem:[#allocation16 + $0xf0] sm:$0xff] }
 0xc08   :  { %3143 = vmatpush.msrb.mxu3 %v3083_v48  ;;  %v3231_v48 = vld [vmem:[#allocation16 + $0x68] sm:$0xff] }
 0xc09   :  { %3122 = vmatpush.msra.mxu2 %v3049_v0  ;;  %v3248_v0 = vld [vmem:[#allocation16 + $0xe8] sm:$0xff] }
 0xc0a   :  { %3144 = vmatpush.msrb.mxu3 %v3082_v58  ;;  %v3243_v58 = vld [vmem:[#allocation16 + $0xc0] sm:$0xff] }
 0xc0b   :  { %3123 = vmatpush.msra.mxu2 %v3048_v57  ;;  %v3261_v57 = vld [vmem:[#allocation16 + $0x148] sm:$0xff] }
 0xc0c   :  { %3145 = vmatpush.msrb.mxu3 %v3081_v62  ;;  %v3242_v62 = vld [vmem:[#allocation16 + $0xb8] sm:$0xff] }
 0xc0d   :  { %3124 = vmatpush.msra.mxu2 %v3047_v60  ;;  %v3260_v60 = vld [vmem:[#allocation16 + $0x140] sm:$0xff] }
 0xc0e   :  { %3146 = vmatpush.msrb.mxu3 %v3080_v4 }
 0xc0f   :  { %3125 = vmatpush.msra.mxu2 %v3046_v3  ;;  %v3259_v3 = vld [vmem:[#allocation16 + $0x138] sm:$0xff] }
 0xc10   :  { %3147 = vmatpush.msrb.mxu3 %v3079_v7  ;;  %v3397_v7 = vld [vmem:[#allocation11 + $0x8] ss:$0 sm:$0xff] }
 0xc11   :  { %3126 = vmatpush.msra.mxu2 %v3045_v5 }
 0xc13   :  { %3127 = vmatpush.msra.mxu2 %v3044_v13 }
 0xc81   :  { %v2843_v17 = vpop.f32.mrf.mxu0 }
 0xc82   :  { %v2844_v18 = vadd.f32 %v3394_v15, %v2843_v17  ;;  %v3078_v15 = vld [vmem:[#allocation10 + $0xd18] sm:$0xff]  ;;  %v3043_v17 = vld [vmem:[#allocation10 + $0xc10] sm:$0xff] }
 0xc83   :  { %3148 = vmatpush.msrb.mxu3 %v3078_v15  ;;  %3128 = vmatpush.msra.mxu2 %v3043_v17 }
 0xc84   :  { %v4098_v10 = vadd.f32 %v2844_v18, %v4094_v63  ;;  %v2988_v63 = vld [vmem:[#allocation13 + $0x3a0] sm:$0xff] }
 0xc85   :  { %3016 = vmatpush.msra.mxu0 %v2988_v63  ;;  %v3077_v18 = vld [vmem:[#allocation10 + $0xd10] sm:$0xff] }
 0xc86   :  { %v2847_v19 = vmax.f32 %v4098_v10, 0.0  ;;  %3149 = vmatpush.msrb.mxu3 %v3077_v18  ;;  %v3176_v63 = vld [vmem:[#allocation13 + $0x468] sm:$0xff]  ;;  %v3241_v18 = vld [vmem:[#allocation16 + $0xb0] sm:$0xff] }
 0xc87   :  { %3017 = vmatpush.msra.mxu0 %v2987_v25  ;;  %v3175_v25 = vld [vmem:[#allocation13 + $0x460] sm:$0xff] }
 0xc88   :  { %2860 = vst [vmem:[#allocation2 + $0x10] sm:$0xff] %v2847_v19  ;;  %2932 = vmatmul.f32.vlgmr.msrb.gmra.mxu1 %v2847_v19  ;;  %v3042_v19 = vld [vmem:[#allocation10 + $0xc08] sm:$0xff] }
 0xc89   :  { %3018 = vmatpush.msra.mxu0 %v2986_v29  ;;  %3129 = vmatpush.msra.mxu2 %v3042_v19  ;;  %v3174_v29 = vld [vmem:[#allocation13 + $0x458] sm:$0xff] }
 0xc8a   :  { %v3240_v19 = vld [vmem:[#allocation16 + $0xa8] sm:$0xff] }
 0xc8b   :  { %3019 = vmatpush.msra.mxu0 %v2985_v14  ;;  %v3173_v14 = vld [vmem:[#allocation13 + $0x450] sm:$0xff] }
 0xc8d   :  { %3020 = vmatpush.msra.mxu0 %v2984_v36  ;;  %v3172_v36 = vld [vmem:[#allocation13 + $0x448] sm:$0xff] }
 0xc8f   :  { %v2914_v20 = vld [vmem:[#allocation2 + $0xd] sm:$0xff]  ;;  %3184 = vmatpush.msrb.mxu0 %v3178_v22 }
 0xc90   :  { %v2956_v16 = vld [vmem:[#allocation2 + $0x13] sm:$0xff]  ;;  %2952 = vmatmul.f32.vlgmr.msrb.gmra.mxu2 %v2914_v20  ;;  %3028 = vst [vmem:[#allocation2 + $0x8] sm:$0xff] %v4080_v34  ;;  %v3258_v22 = vld [vmem:[#allocation16 + $0x130] sm:$0xff] }
 0xc91   :  { %2973 = vmatmul.f32.vlgmr.msra.gmra.mxu3 %v2956_v16  ;;  %3030 = vst [vmem:[#allocation2 + $0x18] sm:$0xff] %v4080_v34  ;;  %v3072_v34 = vld [vmem:[#allocation10 + $0xcf0] sm:$0xff]  ;;  %v3076_v20 = vld [vmem:[#allocation10 + $0xd08] sm:$0xff]  ;;  %v3041_v16 = vld [vmem:[#allocation10 + $0xc00] sm:$0xff]  ;;  %3185 = vmatpush.msrb.mxu0 %v3177_v26 }
 0xc92   :  { %3096 = vmatpush.msra.mxu1 %v3072_v34  ;;  %3150 = vmatpush.msrb.mxu3 %v3076_v20  ;;  %v3239_v20 = vld [vmem:[#allocation16 + $0xa0] sm:$0xff]  ;;  %v3237_v26 = vld [vmem:[#allocation16 + $0x90] sm:$0xff] }
 0xc93   :  { %3130 = vmatpush.msra.mxu2 %v3041_v16  ;;  %3186 = vmatpush.msrb.mxu0 %v3176_v63  ;;  %v3238_v16 = vld [vmem:[#allocation16 + $0x98] sm:$0xff]  ;;  %v3223_v63 = vld [vmem:[#allocation16 + $0x28] sm:$0xff] }
 0xc94   :  { %3097 = vmatpush.msra.mxu1 %v3071_v32  ;;  %3151 = vmatpush.msrb.mxu3 %v3075_v21  ;;  %v3224_v21 = vld [vmem:[#allocation16 + $0x30] sm:$0xff] }
 0xc95   :  { %3187 = vmatpush.msrb.mxu0 %v3175_v25  ;;  %3291 = vmatpush.msrb.mxu2 %v3233_v43  ;;  %v3257_v25 = vld [vmem:[#allocation16 + $0x128] sm:$0xff] }
 0xc96   :  { %3098 = vmatpush.msra.mxu1 %v3070_v24  ;;  %v3170_v24 = vld [vmem:[#allocation13 + $0x438] sm:$0xff] }
 0xc97   :  { %3188 = vmatpush.msrb.mxu0 %v3174_v29  ;;  %3292 = vmatpush.msrb.mxu2 %v3232_v12  ;;  %v3236_v29 = vld [vmem:[#allocation16 + $0x88] sm:$0xff] }
 0xc98   :  { %3099 = vmatpush.msra.mxu1 %v3069_v2  ;;  %v3167_v2 = vld [vmem:[#allocation13 + $0x420] sm:$0xff] }
 0xc99   :  { %3189 = vmatpush.msrb.mxu0 %v3173_v14  ;;  %3293 = vmatpush.msrb.mxu2 %v3231_v48  ;;  %v3222_v14 = vld [vmem:[#allocation16 + $0x20] sm:$0xff] }
 0xc9a   :  { %3100 = vmatpush.msra.mxu1 %v3068_v23  ;;  %v3163_v23 = vld [vmem:[#allocation13 + $0x400] sm:$0xff] }
 0xc9b   :  { %3190 = vmatpush.msrb.mxu0 %v3172_v36  ;;  %v3256_v36 = vld [vmem:[#allocation16 + $0x120] sm:$0xff] }
 0xc9c   :  { %3101 = vmatpush.msra.mxu1 %v3067_v44  ;;  %v3267_v44 = vld [vmem:[#allocation16 + $0x178] sm:$0xff] }
 0xc9d   :  { %3191 = vmatpush.msrb.mxu0 %v3171_v38  ;;  %3312 = vmatpush.msra.mxu3 %v3267_v44  ;;  %v3235_v38 = vld [vmem:[#allocation16 + $0x80] sm:$0xff] }
 0xc9e   :  { %3102 = vmatpush.msra.mxu1 %v3066_v46  ;;  %v3266_v46 = vld [vmem:[#allocation16 + $0x170] sm:$0xff]  ;;  %v3399_v44 = vld [vmem:[#allocation17] ss:$0 sm:$0xff] }
 0xc9f   :  { %3192 = vmatpush.msrb.mxu0 %v3170_v24  ;;  %3313 = vmatpush.msra.mxu3 %v3266_v46  ;;  %v3252_v24 = vld [vmem:[#allocation16 + $0x100] sm:$0xff] }
 0xca0   :  { %3103 = vmatpush.msra.mxu1 %v3065_v53  ;;  %v3228_v53 = vld [vmem:[#allocation16 + $0x50] sm:$0xff] }
 0xca1   :  { %3193 = vmatpush.msrb.mxu0 %v3169_v40  ;;  %v3398_v40 = vld [vmem:[#allocation14 + $0x8] ss:$0 sm:$0xff] }
 0xca2   :  { %3104 = vmatpush.msra.mxu1 %v3064_v54  ;;  %v3262_v54 = vld [vmem:[#allocation16 + $0x150] sm:$0xff] }
 0xca3   :  { %3194 = vmatpush.msrb.mxu0 %v3168_v37 }
 0xca4   :  { %3105 = vmatpush.msra.mxu1 %v3063_v55  ;;  %v3244_v55 = vld [vmem:[#allocation16 + $0xc8] sm:$0xff] }
 0xca5   :  { %3195 = vmatpush.msrb.mxu0 %v3167_v2 }
 0xca6   :  { %3106 = vmatpush.msra.mxu1 %v3062_v56  ;;  %v3227_v56 = vld [vmem:[#allocation16 + $0x48] sm:$0xff] }
 0xca8   :  { %3107 = vmatpush.msra.mxu1 %v3061_v59  ;;  %v3226_v59 = vld [vmem:[#allocation16 + $0x40] sm:$0xff] }
 0xcaa   :  { %3108 = vmatpush.msra.mxu1 %v3060_v1  ;;  %v3225_v1 = vld [vmem:[#allocation16 + $0x38] sm:$0xff] }
 0xcac   :  { %3109 = vmatpush.msra.mxu1 %v3059_v30 }
 0xcae   :  { %3110 = vmatpush.msra.mxu1 %v3058_v8 }
 0xcb0   :  { %3271 = vmatpush.msrb.mxu1 %v3250_v9 }
 0xcb2   :  { %3272 = vmatpush.msrb.mxu1 %v3249_v45 }
 0xcb4   :  { %3273 = vmatpush.msrb.mxu1 %v3248_v0 }
 0xd05   :  { %v2933_v28 = vpop.f32.mrf.mxu1 }
 0xd13   :  { %v2953_v27 = vpop.f32.mrf.mxu2 }
 0xd14   :  { %v2954_v61 = vadd.f32 %v2953_v27, %v2933_v28  ;;  %v2974_v50 = vpop.f32.mrf.mxu3  ;;  %v3265_v28 = vld [vmem:[#allocation16 + $0x168] sm:$0xff]  ;;  %v3247_v27 = vld [vmem:[#allocation16 + $0xe0] sm:$0xff] }
 0xd15   :  { %3314 = vmatpush.msra.mxu3 %v3265_v28  ;;  %3274 = vmatpush.msrb.mxu1 %v3247_v27 }
 0xd16   :  { %v2977_v51 = vadd.f32 %v2974_v50, %v2954_v61  ;;  %v3230_v61 = vld [vmem:[#allocation16 + $0x60] sm:$0xff]  ;;  %v3246_v50 = vld [vmem:[#allocation16 + $0xd8] sm:$0xff] }
 0xd17   :  { %3294 = vmatpush.msrb.mxu2 %v3230_v61  ;;  %3275 = vmatpush.msrb.mxu1 %v3246_v50 }
 0xd18   :  { %v2981_v47 = vadd.f32 %v3395_v49, %v2977_v51  ;;  %v3264_v49 = vld [vmem:[#allocation16 + $0x160] sm:$0xff]  ;;  %v3229_v51 = vld [vmem:[#allocation16 + $0x58] sm:$0xff] }
 0xd19   :  { %3315 = vmatpush.msra.mxu3 %v3264_v49  ;;  %3295 = vmatpush.msrb.mxu2 %v3229_v51 }
 0xd1a   :  { %v2982_v52 = vmax.f32 %v2981_v47, 0.0  ;;  %v3263_v47 = vld [vmem:[#allocation16 + $0x158] sm:$0xff] }
 0xd1b   :  { %3316 = vmatpush.msra.mxu3 %v3263_v47  ;;  %3296 = vmatpush.msrb.mxu2 %v3228_v53 }
 0xd1c   :  { %3021 = vmatmul.f32.vlgmr.msra.gmra.mxu0 %v2982_v52  ;;  %v3245_v52 = vld [vmem:[#allocation16 + $0xd0] sm:$0xff] }
 0xd1d   :  { %3276 = vmatpush.msrb.mxu1 %v3245_v52  ;;  %3317 = vmatpush.msra.mxu3 %v3262_v54 }
 0xd1e   :  { %3297 = vmatpush.msrb.mxu2 %v3227_v56 }
 0xd1f   :  { %3277 = vmatpush.msrb.mxu1 %v3244_v55  ;;  %3318 = vmatpush.msra.mxu3 %v3261_v57 }
 0xd20   :  { %3298 = vmatpush.msrb.mxu2 %v3226_v59 }
 0xd21   :  { %3278 = vmatpush.msrb.mxu1 %v3243_v58  ;;  %3319 = vmatpush.msra.mxu3 %v3260_v60 }
 0xd22   :  { %3299 = vmatpush.msrb.mxu2 %v3225_v1 }
 0xd23   :  { %3279 = vmatpush.msrb.mxu1 %v3242_v62  ;;  %3320 = vmatpush.msra.mxu3 %v3259_v3 }
 0xd24   :  { %3300 = vmatpush.msrb.mxu2 %v3224_v21 }
 0xd25   :  { %3280 = vmatpush.msrb.mxu1 %v3241_v18  ;;  %3321 = vmatpush.msra.mxu3 %v3258_v22 }
 0xd26   :  { %3301 = vmatpush.msrb.mxu2 %v3223_v63 }
 0xd27   :  { %3281 = vmatpush.msrb.mxu1 %v3240_v19  ;;  %3322 = vmatpush.msra.mxu3 %v3257_v25 }
 0xd28   :  { %3302 = vmatpush.msrb.mxu2 %v3222_v14 }
 0xd29   :  { %3282 = vmatpush.msrb.mxu1 %v3239_v20  ;;  %3323 = vmatpush.msra.mxu3 %v3256_v36 }
 0xd2b   :  { %3283 = vmatpush.msrb.mxu1 %v3238_v16 }
 0xd2d   :  { %3284 = vmatpush.msrb.mxu1 %v3237_v26 }
 0xd2f   :  { %3285 = vmatpush.msrb.mxu1 %v3236_v29 }
 0xd31   :  { %3286 = vmatpush.msrb.mxu1 %v3235_v38 }
 0xd99   :  { %v3022_v33 = vpop.f32.mrf.mxu0 }
 0xd9a   :  { %v3023_v34 = vadd.f32 %v3396_v6, %v3022_v33  ;;  %v3221_v6 = vld [vmem:[#allocation16 + $0x18] sm:$0xff] }
 0xd9b   :  { %v3255_v33 = vld [vmem:[#allocation16 + $0x118] sm:$0xff]  ;;  %3303 = vmatpush.msrb.mxu2 %v3221_v6 }
 0xd9c   :  { %v4104_v11 = vadd.f32 %v3023_v34, %v4098_v10  ;;  %v3166_v10 = vld [vmem:[#allocation13 + $0x418] sm:$0xff]  ;;  %3324 = vmatpush.msra.mxu3 %v3255_v33 }
 0xd9d   :  { %3196 = vmatpush.msrb.mxu0 %v3166_v10  ;;  %v3220_v34 = vld [vmem:[#allocation16 + $0x10] sm:$0xff] }
 0xd9e   :  { %v3026_v41 = vmax.f32 %v4104_v11, 0.0  ;;  %3304 = vmatpush.msrb.mxu2 %v3220_v34 }
 0xd9f   :  { %3197 = vmatpush.msrb.mxu0 %v3165_v42 }
 0xda0   :  { %3039 = vst [vmem:[#allocation2 + $0x10] sm:$0xff] %v3026_v41  ;;  %3111 = vmatmul.f32.vlgmr.msra.gmra.mxu1 %v3026_v41  ;;  %v3254_v41 = vld [vmem:[#allocation16 + $0x110] sm:$0xff] }
 0xda1   :  { %3198 = vmatpush.msrb.mxu0 %v3164_v31  ;;  %3325 = vmatpush.msra.mxu3 %v3254_v41 }
 0xda3   :  { %3199 = vmatpush.msrb.mxu0 %v3163_v23 }
 0xda7   :  { %v3093_v32 = vld [vmem:[#allocation2 + $0xf] sm:$0xff] }
 0xda8   :  { %v3135_v39 = vld [vmem:[#allocation2 + $0x11] sm:$0xff]  ;;  %3131 = vmatmul.f32.vlgmr.msra.gmra.mxu2 %v3093_v32  ;;  %3206 = vst [vmem:[#allocation2 + $0x8] sm:$0xff] %v3403_v35  ;;  %v3219_v32 = vld [vmem:[#allocation16 + $0x8] sm:$0xff] }
 0xda9   :  { %3152 = vmatmul.f32.vlgmr.msrb.gmra.mxu3 %v3135_v39  ;;  %3208 = vst [vmem:[#allocation2 + $0x18] sm:$0xff] %v3403_v35  ;;  %v3253_v39 = vld [vmem:[#allocation16 + $0x108] sm:$0xff]  ;;  %v3218_v35 = vld [vmem:[#allocation16] sm:$0xff]  ;;  %3305 = vmatpush.msrb.mxu2 %v3219_v32 }
 0xdaa   :  { %3326 = vmatpush.msra.mxu3 %v3253_v39 }
 0xdab   :  { %3306 = vmatpush.msrb.mxu2 %v3218_v35 }
 0xdac   :  { %3327 = vmatpush.msra.mxu3 %v3252_v24 }
 0xe1d   :  { %v3112_v4 = vpop.f32.mrf.mxu1 }
 0xe2b   :  { %v3132_v30 = vpop.f32.mrf.mxu2 }
 0xe2c   :  { %v3133_v5 = vadd.f32 %v3132_v30, %v3112_v4  ;;  %v3153_v8 = vpop.f32.mrf.mxu3 }
 0xe2e   :  { %v3156_v13 = vadd.f32 %v3153_v8, %v3133_v5 }
 0xe30   :  { %v3160_v15 = vadd.f32 %v3397_v7, %v3156_v13 }
 0xe32   :  { %v3161_v17 = vmax.f32 %v3160_v15, 0.0 }
 0xe34   :  { %3200 = vmatmul.f32.vlgmr.msrb.gmra.mxu0 %v3161_v17 }
 0xeb1   :  { %v3201_v37 = vpop.f32.mrf.mxu0 }
 0xeb2   :  { %v3202_v2 = vadd.f32 %v3398_v40, %v3201_v37 }
 0xeb4   :  { %v3204_v10 = vadd.f32 %v3202_v2, %v4104_v11 }
 0xeb6   :  { %3217 = vst [vmem:[#allocation2 + $0x10] sm:$0xff] %v3204_v10  ;;  %3287 = vmatmul.f32.vlgmr.msrb.gmra.mxu1 %v3204_v10 }
 0xebd   :  { %v3269_v42 = vld [vmem:[#allocation2 + $0xf] sm:$0xff] }
 0xebe   :  { %v3311_v31 = vld [vmem:[#allocation2 + $0x11] sm:$0xff]  ;;  %3307 = vmatmul.f32.vlgmr.msrb.gmra.mxu2 %v3269_v42 }
 0xebf   :  { %3328 = vmatmul.f32.vlgmr.msra.gmra.mxu3 %v3311_v31 }
 0xf33   :  { %v3288_v23 = vpop.f32.mrf.mxu1 }
 0xf41   :  { %v3308_v9 = vpop.f32.mrf.mxu2 }
 0xf42   :  { %v3309_v43 = vadd.f32 %v3308_v9, %v3288_v23  ;;  %v3329_v45 = vpop.f32.mrf.mxu3 }
 0xf44   :  { %v3332_v12 = vadd.f32 %v3329_v45, %v3309_v43 }
 0xf46   :  { %v3336_v46 = vadd.f32 %v3399_v44, %v3332_v12 }
 0xf48   :  { %3337 = vst [vmem:[%s4125_s14] sm:$0xff] %v3336_v46 }
 0xf49   :  { %3342 = vsyncpa [#allocation4], 1 }
 0xf4a   :  { %3343 = vsyncpa [#allocation6], 1 }
 0xf4b   :  { %3344 = vsyncpa [#allocation9], 1 }
 0xf4c   :  { %3345 = vsyncpa [#allocation12], 1 }
 0xf4d   :  { %3346 = vsyncpa [#allocation15], 1 }
 0xf4e   :  { %3347 = vsyncpa [#allocation18], 1 }
 0xf4f   :  { %3348 = vsyncpa [#allocation21], 1 }

</bundles_post_ra>
